<compile_context>
chip_gen: v7x
topology: tpu7x:2x2x1
jax: 0.10.0
libtpu: 0.0.40
codegen_flags: <defaults>
</compile_context>

<pallas_src>
import functools

import jax
import jax.numpy as jnp
from jax.experimental import pallas as pl
from jax.experimental.pallas import tpu as pltpu

LANE = 128  # TPU lane width; channels padded to this for lane-dense layouts.


def _round_up(x, m):
    return (x + m - 1) // m * m


def _vmem_budget_bytes():
    """Generation-aware VMEM budget (v5e/v6e: 128 MiB, v7x: 64 MiB per core)."""
    cap = 64 * 1024 * 1024
    try:
        info = pltpu.get_tpu_info()
        cap = int(getattr(info, "vmem_capacity_bytes", cap))
    except Exception:
        pass
    return max(32 * 1024 * 1024, min(cap * 3 // 4, 100 * 1024 * 1024))


def _band_vmem_bytes(tH, W, Cp, mat_bytes):
    """Rough per-band VMEM footprint estimate (scratches + blocks + temps)."""
    xband = (tH + 4) * W * Cp * 4                        # f32 input band
    shift = (tH + 4) * W * 3 * Cp * mat_bytes            # shared kw-shift slab
    out_blk = 2 * tH * W * Cp * 4                        # double-buffered output
    weights = 2 * 2 * (9 * Cp) * (2 * Cp) * mat_bytes    # w1/w2, 2 buffers each
    acc = (tH + 2) * W * 2 * Cp * 4                      # f32 accumulator temp
    mid = (tH + 2) * W * Cp * 4                          # mfm1 value temp
    return xband + shift + out_blk + weights + acc + mid


def _pick_band_rows(H, W, Cp, mat_bytes, budget):
    """Largest band height dividing H that fits the VMEM budget (with margin)."""
    cands = [t for t in (64, 32, 16, 8, 4, 2, 1) if H % t == 0]
    for t in cands:                      # prefer >=2 bands (pipelining / megacore)
        if H // t >= 2 and 2 * _band_vmem_bytes(t, W, Cp, mat_bytes) <= budget:
            return t
    for t in cands:
        if 2 * _band_vmem_bytes(t, W, Cp, mat_bytes) <= budget:
            return t
    return cands[-1]


def _fused_resblock_kernel(x_hbm, w1_ref, b1_ref, w2_ref, b2_ref, o_ref,
                           xband_ref, shift_ref, dma_sem, *, tH, W, Cp):
    """One grid step = one (batch, row-band) tile of the fused resblock.

      x_hbm     : (N, H+4, W, Cp) f32, HBM (memory_space=ANY); H pre-padded by 2
      w*_ref    : (9*Cp, 2*Cp)    conv weights, row = (kh*3+kw)*Cp + cin
      b*_ref    : (1, 2*Cp) f32   conv bias (each mfm half padded separately)
      o_ref     : (1, tH, W, Cp)  output row-band
      xband_ref : (tH+4, W, Cp) f32     scratch: DMA'd input band (with row halo)
      shift_ref : (tH+4, W, 3*Cp)       scratch: kw-shifted slab, reused by both
                                        stages; dtype = matmul operand dtype
    """
    f32 = jnp.float32
    mdt = shift_ref.dtype                       # matmul operand dtype (bf16/f32)
    n = pl.program_id(0)
    bh = pl.program_id(1)
    r0 = pl.multiple_of(bh * tH, tH)            # first padded-image row of band

    # ---- band-sized input DMA (HBM -> VMEM), halo rows included -------------
    copy = pltpu.make_async_copy(x_hbm.at[n, pl.ds(r0, tH + 4)], xband_ref, dma_sem)
    copy.start()
    copy.wait()

    def build_shift_slab(src, rows):
        """Write rows [0, rows) of shift_ref: K ordered (kw, cin); only the two
        shifted border columns get zeroed (no full-slab zero pass)."""
        zcol = jnp.zeros((rows, 1, Cp), mdt)
        shift_ref[0:rows, 1:W, 0:Cp] = src[:, 0:W - 1, :]        # kw = 0
        shift_ref[0:rows, 0:1, 0:Cp] = zcol
        shift_ref[0:rows, :, Cp:2 * Cp] = src                    # kw = 1 (no shift)
        shift_ref[0:rows, 0:W - 1, 2 * Cp:3 * Cp] = src[:, 1:W, :]  # kw = 2
        shift_ref[0:rows, W - 1:W, 2 * Cp:3 * Cp] = zcol

    def conv_mfm(rows_out, w_ref, b_ref):
        """3 accumulating MXU dots over kh (K = 3*Cp each), f32 accumulation."""
        acc = b_ref[...].astype(f32)                              # (1, 2*Cp)
        for kh in range(3):
            m = shift_ref[kh:kh + rows_out, :, :].reshape(rows_out * W, 3 * Cp)
            acc = acc + jnp.dot(m, w_ref[kh * 3 * Cp:(kh + 1) * 3 * Cp, :],
                                preferred_element_type=f32)
            # mfm: max over the two channel halves
        return jnp.maximum(acc[:, :Cp], acc[:, Cp:])              # (rows_out*W, Cp)

    # ---- stage 1: conv1 + mfm for mfm1 rows [r0-1, r0+tH+1) ------------------
    xb = xband_ref[...].astype(mdt)                               # (tH+4, W, Cp)
    build_shift_slab(xb, tH + 4)
    mid = conv_mfm(tH + 2, w1_ref, b1_ref)                        # f32
    mid3 = mid.reshape(tH + 2, W, Cp).astype(mdt)

    # ---- stage 2: conv2 + mfm + residual for rows [r0, r0+tH) ----------------
    build_shift_slab(mid3, tH + 2)

    @pl.when(bh == 0)
    def _():  # mfm1 "row -1" above the image is zero padding, not conv1 output
        shift_ref[0:1, :, :] = jnp.zeros((1, W, 3 * Cp), mdt)

    @pl.when(bh == pl.num_programs(1) - 1)
    def _():  # mfm1 "row H" below the image is zero padding
        shift_ref[tH + 1:tH + 2, :, :] = jnp.zeros((1, W, 3 * Cp), mdt)

    out = conv_mfm(tH, w2_ref, b2_ref)                            # (tH*W, Cp) f32
    out3 = out.reshape(tH, W, Cp)
    res = xband_ref[2:tH + 2, :, :]          # residual in f32, leading-dim slice
    o_ref[...] = (out3 + res).reshape(1, tH, W, Cp).astype(o_ref.dtype)


def _prep_conv_weight(w_oihw, C, Cp, mat_dtype):
    """(2*C, C, 3, 3) OIHW -> (9*Cp, 2*Cp), row = (kh*3+kw)*Cp + cin.

    Each mfm half of the output channels is padded to Cp independently so
    max(acc[:, :Cp], acc[:, Cp:]) pairs the correct channels."""
    two_c, cin, kh, kw = w_oihw.shape
    assert (kh, kw) == (3, 3) and two_c == 2 * C
    w = jnp.transpose(w_oihw, (2, 3, 1, 0))                       # (3, 3, Cin, 2C)
    w = jnp.pad(w, ((0, 0), (0, 0), (0, Cp - cin), (0, 0)))       # pad Cin -> Cp
    pad_o = ((0, 0), (0, 0), (0, 0), (0, Cp - C))
    w = jnp.concatenate([jnp.pad(w[..., :C], pad_o),
                         jnp.pad(w[..., C:], pad_o)], axis=-1)    # (3, 3, Cp, 2Cp)
    return w.reshape(9 * Cp, 2 * Cp).astype(mat_dtype)


def _prep_conv_bias(b, C, Cp):
    b = jnp.concatenate([jnp.pad(b[:C], (0, Cp - C)),
                         jnp.pad(b[C:], (0, Cp - C))])
    return b.reshape(1, 2 * Cp).astype(jnp.float32)


def resblock_forward(x_nchw, params, *, mat_dtype=jnp.bfloat16):
    """Full resblock forward. Input/output in PyTorch NCHW layout.

    mat_dtype: dtype of the MXU matmul operands (bf16 default per perf review;
    accumulation, bias, mfm max and the residual add are always f32).
    Use mat_dtype=jnp.float32 to reproduce the exact PyTorch f32 numerics."""
    N, C, H, W = x_nchw.shape
    assert params["conv1_w"].shape == (2 * C, C, 3, 3)
    assert params["conv2_w"].shape == (2 * C, C, 3, 3)
    assert W >= 2

    Cp = _round_up(C, LANE)
    mat_bytes = jnp.dtype(mat_dtype).itemsize
    budget = _vmem_budget_bytes()
    tH = _pick_band_rows(H, W, Cp, mat_bytes, budget)
    num_bands = H // tH

    # NHWC, channels padded to the lane width, H padded by 2 rows top/bottom so
    # every band's DMA window [b*tH, b*tH + tH + 4) is in-bounds and uniform.
    x_nhwc = jnp.transpose(x_nchw, (0, 2, 3, 1)).astype(jnp.float32)
    x_p = jnp.pad(x_nhwc, ((0, 0), (2, 2), (0, 0), (0, Cp - C)))

    w1 = _prep_conv_weight(params["conv1_w"], C, Cp, mat_dtype)
    b1 = _prep_conv_bias(params["conv1_b"], C, Cp)
    w2 = _prep_conv_weight(params["conv2_w"], C, Cp, mat_dtype)
    b2 = _prep_conv_bias(params["conv2_b"], C, Cp)

    kernel = functools.partial(_fused_resblock_kernel, tH=tH, W=W, Cp=Cp)

    out_p = pl.pallas_call(
        kernel,
        out_shape=jax.ShapeDtypeStruct((N, H, W, Cp), x_nchw.dtype),
        grid=(N, num_bands),
        in_specs=[
            pl.BlockSpec(memory_space=pl.ANY),                     # x: stays in HBM
            # Weight/bias index_maps are constant, so the pipeliner keeps reusing
            # the same fetched block across the whole grid.
            pl.BlockSpec((9 * Cp, 2 * Cp), lambda n, b: (0, 0)),   # w1
            pl.BlockSpec((1, 2 * Cp), lambda n, b: (0, 0)),        # b1
            pl.BlockSpec((9 * Cp, 2 * Cp), lambda n, b: (0, 0)),   # w2
            pl.BlockSpec((1, 2 * Cp), lambda n, b: (0, 0)),        # b2
        ],
        out_specs=pl.BlockSpec((1, tH, W, Cp), lambda n, b: (n, b, 0, 0)),
        scratch_shapes=[
            pltpu.VMEM((tH + 4, W, Cp), jnp.float32),      # input band (+halo)
            pltpu.VMEM((tH + 4, W, 3 * Cp), mat_dtype),    # shared kw-shift slab
            pltpu.SemaphoreType.DMA,                       # input-band DMA sem
        ],
        compiler_params=pltpu.CompilerParams(
            dimension_semantics=("parallel", "parallel"),
            vmem_limit_bytes=int(budget),
        ),
    )(x_p, w1, b1, w2, b2)

    out = out_p[..., :C]                                   # drop padded channels
    return jnp.transpose(out, (0, 3, 1, 2)).astype(x_nchw.dtype)


# ----------------------------- reference (pure JAX) -----------------------------
def _ref_mfm_conv(x_nchw, w_oihw, bias, cout, mat_dtype):
    y = jax.lax.conv_general_dilated(
        x_nchw.astype(mat_dtype), w_oihw.astype(mat_dtype),
        window_strides=(1, 1), padding=((1, 1), (1, 1)),
        dimension_numbers=("NCHW", "OIHW", "NCHW"),
        preferred_element_type=jnp.float32,
    )
    y = y + bias[None, :, None, None].astype(jnp.float32)
    return jnp.maximum(y[:, :cout], y[:, cout:])


def _ref_resblock(x_nchw, params, cout, mat_dtype=jnp.float32):
    out = _ref_mfm_conv(x_nchw, params["conv1_w"], params["conv1_b"], cout, mat_dtype)
    out = _ref_mfm_conv(out, params["conv2_w"], params["conv2_b"], cout, mat_dtype)
    return out + x_nchw.astype(jnp.float32)


if __name__ == "__main__":
    N, C, H, W = 2, 4, 16, 16            # resblock requires in_channels == out_channels
    Cout = C

    key = jax.random.PRNGKey(0)
    kx, k1w, k1b, k2w, k2b = jax.random.split(key, 5)

    x = jax.random.normal(kx, (N, C, H, W), dtype=jnp.float32)

    # Deterministic synthetic parameters (PyTorch Conv2d shapes: (2*Cout, Cin, 3, 3)).
    params = {
        "conv1_w": 0.1 * jax.random.normal(k1w, (2 * Cout, C, 3, 3), dtype=jnp.float32),
        "conv1_b": 0.1 * jax.random.normal(k1b, (2 * Cout,), dtype=jnp.float32),
        "conv2_w": 0.1 * jax.random.normal(k2w, (2 * Cout, Cout, 3, 3), dtype=jnp.float32),
        "conv2_b": 0.1 * jax.random.normal(k2b, (2 * Cout,), dtype=jnp.float32),
    }

    # bf16 matmul operands (default, per perf review) vs a mode-matched reference.
    out_bf16 = jax.block_until_ready(resblock_forward(x, params, mat_dtype=jnp.bfloat16))
    ref_bf16 = jax.block_until_ready(_ref_resblock(x, params, Cout, mat_dtype=jnp.bfloat16))
    assert out_bf16.shape == (N, Cout, H, W)
    assert jnp.allclose(out_bf16, ref_bf16, atol=2e-3, rtol=2e-3), \
        "bf16-matmul mode mismatch vs mode-matched reference"

    # f32 mode reproduces the exact PyTorch (f32) numerics.
    out_f32 = jax.block_until_ready(resblock_forward(x, params, mat_dtype=jnp.float32))
    ref_f32 = jax.block_until_ready(_ref_resblock(x, params, Cout, mat_dtype=jnp.float32))
    assert out_f32.shape == (N, Cout, H, W)
    assert jnp.allclose(out_f32, ref_f32, atol=1e-3, rtol=1e-3), \
        "f32 mode mismatch vs pure-JAX reference"

    print("KERNEL_OK")
</pallas_src>

<mosaic_0001>
module attributes {stable_mosaic.version = 11 : i64} {
  func.func @_fused_resblock_kernel(%arg0: i32, %arg1: i32, %arg2: memref<2x20x16x128xf32, #tpu.memory_space<any>>, %arg3: memref<1152x256xbf16, #tpu.memory_space<vmem>>, %arg4: memref<1x256xf32, #tpu.memory_space<vmem>>, %arg5: memref<1152x256xbf16, #tpu.memory_space<vmem>>, %arg6: memref<1x256xf32, #tpu.memory_space<vmem>>, %arg7: memref<1x8x16x128xf32, #tpu.memory_space<vmem>>, %arg8: memref<12x16x128xf32, #tpu.memory_space<vmem>>, %arg9: memref<12x16x384xbf16, #tpu.memory_space<vmem>>, %arg10: memref<!tpu.dma_semaphore, #tpu.memory_space<semaphore_mem>>) attributes {dimension_semantics = [#tpu.dimension_semantics<parallel>, #tpu.dimension_semantics<parallel>], iteration_bounds = array<i64: 2, 2>, scalar_prefetch = 0 : i64, scratch_operands = 3 : i64, tpu.core_type = #tpu.core_type<tc>, window_params = [{}, {pipeline_mode = #tpu.pipeline_mode<synchronous>, transform_indices = @transform_1, window_bounds = array<i64: 1152, 256>}, {pipeline_mode = #tpu.pipeline_mode<synchronous>, transform_indices = @transform_2, window_bounds = array<i64: 1, 256>}, {pipeline_mode = #tpu.pipeline_mode<synchronous>, transform_indices = @transform_3, window_bounds = array<i64: 1152, 256>}, {pipeline_mode = #tpu.pipeline_mode<synchronous>, transform_indices = @transform_4, window_bounds = array<i64: 1, 256>}, {transform_indices = @transform_5, window_bounds = array<i64: 1, 8, 16, 128>}]} {
    %c8_i32 = arith.constant 8 : i32
    %0 = arith.muli %arg1, %c8_i32 : i32
    %1 = tpu.assume_multiple %0, 8 : i32
    %c0_i32 = arith.constant 0 : i32
    %c0_i32_0 = arith.constant 0 : i32
    %2 = tpu.memref_slice %arg2[%arg0, %1, %c0_i32, %c0_i32_0] : memref<2x20x16x128xf32, #tpu.memory_space<any>> -> memref<1x12x16x128xf32, #tpu.memory_space<any>>
    %3 = tpu.memref_squeeze %2 : memref<1x12x16x128xf32, #tpu.memory_space<any>> -> memref<12x16x128xf32, #tpu.memory_space<any>>
    tpu.enqueue_dma source(%3 : memref<12x16x128xf32, #tpu.memory_space<any>>) target(%arg8 : memref<12x16x128xf32, #tpu.memory_space<vmem>>) target_semaphore(%arg10 : memref<!tpu.dma_semaphore, #tpu.memory_space<semaphore_mem>>)
    %c0_i32_1 = arith.constant 0 : i32
    %c0_i32_2 = arith.constant 0 : i32
    %4 = tpu.memref_slice %arg2[%arg0, %1, %c0_i32_1, %c0_i32_2] : memref<2x20x16x128xf32, #tpu.memory_space<any>> -> memref<1x12x16x128xf32, #tpu.memory_space<any>>
    %5 = tpu.memref_squeeze %4 : memref<1x12x16x128xf32, #tpu.memory_space<any>> -> memref<12x16x128xf32, #tpu.memory_space<any>>
    tpu.wait_dma2 semaphore(%arg10 : memref<!tpu.dma_semaphore, #tpu.memory_space<semaphore_mem>>) src(%5 : memref<12x16x128xf32, #tpu.memory_space<any>>) dst(%arg8 : memref<12x16x128xf32, #tpu.memory_space<vmem>>)
    %c0 = arith.constant 0 : index
    %c0_3 = arith.constant 0 : index
    %c0_4 = arith.constant 0 : index
    %6 = vector.load %arg8[%c0, %c0_3, %c0_4] : memref<12x16x128xf32, #tpu.memory_space<vmem>>, vector<12x16x128xf32>
    %7 = arith.truncf %6 : vector<12x16x128xf32> to vector<12x16x128xbf16>
    %cst = arith.constant 0.000000e+00 : bf16
    %8 = vector.broadcast %cst : bf16 to vector<12x1x128xbf16>
    %9 = vector.extract_strided_slice %7 {offsets = [0, 0, 0], sizes = [12, 15, 128], strides = [1, 1, 1]} : vector<12x16x128xbf16> to vector<12x15x128xbf16>
    %c0_5 = arith.constant 0 : index
    %c1 = arith.constant 1 : index
    %c0_6 = arith.constant 0 : index
    %10 = vector.load %arg9[%c0_5, %c1, %c0_6] : memref<12x16x384xbf16, #tpu.memory_space<vmem>>, vector<12x15x128xbf16>
    tpu.vector_store %arg9[%c0_5, %c1, %c0_6], %9 {strides = array<i32>} : memref<12x16x384xbf16, #tpu.memory_space<vmem>>, vector<12x15x128xbf16>,
    %c0_7 = arith.constant 0 : index
    %c0_8 = arith.constant 0 : index
    %c0_9 = arith.constant 0 : index
    %11 = vector.load %arg9[%c0_7, %c0_8, %c0_9] : memref<12x16x384xbf16, #tpu.memory_space<vmem>>, vector<12x1x128xbf16>
    tpu.vector_store %arg9[%c0_7, %c0_8, %c0_9], %8 {strides = array<i32>} : memref<12x16x384xbf16, #tpu.memory_space<vmem>>, vector<12x1x128xbf16>,
    %c0_10 = arith.constant 0 : index
    %c0_11 = arith.constant 0 : index
    %c128 = arith.constant 128 : index
    %12 = vector.load %arg9[%c0_10, %c0_11, %c128] : memref<12x16x384xbf16, #tpu.memory_space<vmem>>, vector<12x16x128xbf16>
    tpu.vector_store %arg9[%c0_10, %c0_11, %c128], %7 {strides = array<i32>} : memref<12x16x384xbf16, #tpu.memory_space<vmem>>, vector<12x16x128xbf16>,
    %13 = vector.extract_strided_slice %7 {offsets = [0, 1, 0], sizes = [12, 15, 128], strides = [1, 1, 1]} : vector<12x16x128xbf16> to vector<12x15x128xbf16>
    %c0_12 = arith.constant 0 : index
    %c0_13 = arith.constant 0 : index
    %c256 = arith.constant 256 : index
    %14 = vector.load %arg9[%c0_12, %c0_13, %c256] : memref<12x16x384xbf16, #tpu.memory_space<vmem>>, vector<12x15x128xbf16>
    tpu.vector_store %arg9[%c0_12, %c0_13, %c256], %13 {strides = array<i32>} : memref<12x16x384xbf16, #tpu.memory_space<vmem>>, vector<12x15x128xbf16>,
    %c0_14 = arith.constant 0 : index
    %c15 = arith.constant 15 : index
    %c256_15 = arith.constant 256 : index
    %15 = vector.load %arg9[%c0_14, %c15, %c256_15] : memref<12x16x384xbf16, #tpu.memory_space<vmem>>, vector<12x1x128xbf16>
    tpu.vector_store %arg9[%c0_14, %c15, %c256_15], %8 {strides = array<i32>} : memref<12x16x384xbf16, #tpu.memory_space<vmem>>, vector<12x1x128xbf16>,
    %c0_16 = arith.constant 0 : index
    %c0_17 = arith.constant 0 : index
    %16 = vector.load %arg4[%c0_16, %c0_17] : memref<1x256xf32, #tpu.memory_space<vmem>>, vector<1x256xf32>
    %c0_18 = arith.constant 0 : index
    %c0_19 = arith.constant 0 : index
    %c0_20 = arith.constant 0 : index
    %17 = vector.load %arg9[%c0_18, %c0_19, %c0_20] : memref<12x16x384xbf16, #tpu.memory_space<vmem>>, vector<10x16x384xbf16>
    %18 = vector.shape_cast %17 : vector<10x16x384xbf16> to vector<160x384xbf16>
    %c0_21 = arith.constant 0 : index
    %c0_22 = arith.constant 0 : index
    %19 = vector.load %arg3[%c0_21, %c0_22] : memref<1152x256xbf16, #tpu.memory_space<vmem>>, vector<384x256xbf16>
    %cst_23 = arith.constant dense<0.000000e+00> : vector<160x256xf32>
    %20 = tpu.matmul %18, %19, %cst_23 {dimension_numbers = #tpu.dot_dimension_numbers<[1], [0], [0], [1], [0, 0, 1, 1], [], []>} : vector<160x384xbf16>, vector<384x256xbf16>, vector<160x256xf32> -> vector<160x256xf32>
    %21 = vector.broadcast %16 : vector<1x256xf32> to vector<160x256xf32>
    %22 = arith.addf %21, %20 : vector<160x256xf32>
    %c1_24 = arith.constant 1 : index
    %c0_25 = arith.constant 0 : index
    %c0_26 = arith.constant 0 : index
    %23 = vector.load %arg9[%c1_24, %c0_25, %c0_26] : memref<12x16x384xbf16, #tpu.memory_space<vmem>>, vector<10x16x384xbf16>
    %24 = vector.shape_cast %23 : vector<10x16x384xbf16> to vector<160x384xbf16>
    %c384 = arith.constant 384 : index
    %c0_27 = arith.constant 0 : index
    %25 = vector.load %arg3[%c384, %c0_27] : memref<1152x256xbf16, #tpu.memory_space<vmem>>, vector<384x256xbf16>
    %cst_28 = arith.constant dense<0.000000e+00> : vector<160x256xf32>
    %26 = tpu.matmul %24, %25, %cst_28 {dimension_numbers = #tpu.dot_dimension_numbers<[1], [0], [0], [1], [0, 0, 1, 1], [], []>} : vector<160x384xbf16>, vector<384x256xbf16>, vector<160x256xf32> -> vector<160x256xf32>
    %27 = arith.addf %22, %26 : vector<160x256xf32>
    %c2 = arith.constant 2 : index
    %c0_29 = arith.constant 0 : index
    %c0_30 = arith.constant 0 : index
    %28 = vector.load %arg9[%c2, %c0_29, %c0_30] : memref<12x16x384xbf16, #tpu.memory_space<vmem>>, vector<10x16x384xbf16>
    %29 = vector.shape_cast %28 : vector<10x16x384xbf16> to vector<160x384xbf16>
    %c768 = arith.constant 768 : index
    %c0_31 = arith.constant 0 : index
    %30 = vector.load %arg3[%c768, %c0_31] : memref<1152x256xbf16, #tpu.memory_space<vmem>>, vector<384x256xbf16>
    %cst_32 = arith.constant dense<0.000000e+00> : vector<160x256xf32>
    %31 = tpu.matmul %29, %30, %cst_32 {dimension_numbers = #tpu.dot_dimension_numbers<[1], [0], [0], [1], [0, 0, 1, 1], [], []>} : vector<160x384xbf16>, vector<384x256xbf16>, vector<160x256xf32> -> vector<160x256xf32>
    %32 = arith.addf %27, %31 : vector<160x256xf32>
    %33 = vector.extract_strided_slice %32 {offsets = [0, 0], sizes = [160, 128], strides = [1, 1]} : vector<160x256xf32> to vector<160x128xf32>
    %34 = vector.extract_strided_slice %32 {offsets = [0, 128], sizes = [160, 128], strides = [1, 1]} : vector<160x256xf32> to vector<160x128xf32>
    %35 = arith.maximumf %33, %34 : vector<160x128xf32>
    %36 = vector.shape_cast %35 : vector<160x128xf32> to vector<10x16x128xf32>
    %37 = arith.truncf %36 : vector<10x16x128xf32> to vector<10x16x128xbf16>
    %cst_33 = arith.constant 0.000000e+00 : bf16
    %38 = vector.broadcast %cst_33 : bf16 to vector<10x1x128xbf16>
    %39 = vector.extract_strided_slice %37 {offsets = [0, 0, 0], sizes = [10, 15, 128], strides = [1, 1, 1]} : vector<10x16x128xbf16> to vector<10x15x128xbf16>
    %c0_34 = arith.constant 0 : index
    %c1_35 = arith.constant 1 : index
    %c0_36 = arith.constant 0 : index
    %40 = vector.load %arg9[%c0_34, %c1_35, %c0_36] : memref<12x16x384xbf16, #tpu.memory_space<vmem>>, vector<10x15x128xbf16>
    tpu.vector_store %arg9[%c0_34, %c1_35, %c0_36], %39 {strides = array<i32>} : memref<12x16x384xbf16, #tpu.memory_space<vmem>>, vector<10x15x128xbf16>,
    %c0_37 = arith.constant 0 : index
    %c0_38 = arith.constant 0 : index
    %c0_39 = arith.constant 0 : index
    %41 = vector.load %arg9[%c0_37, %c0_38, %c0_39] : memref<12x16x384xbf16, #tpu.memory_space<vmem>>, vector<10x1x128xbf16>
    tpu.vector_store %arg9[%c0_37, %c0_38, %c0_39], %38 {strides = array<i32>} : memref<12x16x384xbf16, #tpu.memory_space<vmem>>, vector<10x1x128xbf16>,
    %c0_40 = arith.constant 0 : index
    %c0_41 = arith.constant 0 : index
    %c128_42 = arith.constant 128 : index
    %42 = vector.load %arg9[%c0_40, %c0_41, %c128_42] : memref<12x16x384xbf16, #tpu.memory_space<vmem>>, vector<10x16x128xbf16>
    tpu.vector_store %arg9[%c0_40, %c0_41, %c128_42], %37 {strides = array<i32>} : memref<12x16x384xbf16, #tpu.memory_space<vmem>>, vector<10x16x128xbf16>,
    %43 = vector.extract_strided_slice %37 {offsets = [0, 1, 0], sizes = [10, 15, 128], strides = [1, 1, 1]} : vector<10x16x128xbf16> to vector<10x15x128xbf16>
    %c0_43 = arith.constant 0 : index
    %c0_44 = arith.constant 0 : index
    %c256_45 = arith.constant 256 : index
    %44 = vector.load %arg9[%c0_43, %c0_44, %c256_45] : memref<12x16x384xbf16, #tpu.memory_space<vmem>>, vector<10x15x128xbf16>
    tpu.vector_store %arg9[%c0_43, %c0_44, %c256_45], %43 {strides = array<i32>} : memref<12x16x384xbf16, #tpu.memory_space<vmem>>, vector<10x15x128xbf16>,
    %c0_46 = arith.constant 0 : index
    %c15_47 = arith.constant 15 : index
    %c256_48 = arith.constant 256 : index
    %45 = vector.load %arg9[%c0_46, %c15_47, %c256_48] : memref<12x16x384xbf16, #tpu.memory_space<vmem>>, vector<10x1x128xbf16>
    tpu.vector_store %arg9[%c0_46, %c15_47, %c256_48], %38 {strides = array<i32>} : memref<12x16x384xbf16, #tpu.memory_space<vmem>>, vector<10x1x128xbf16>,
    %c0_i32_49 = arith.constant 0 : i32
    %46 = arith.cmpi eq, %arg1, %c0_i32_49 : i32
    %47 = arith.extui %46 : i1 to i32
    %c0_i32_50 = arith.constant 0 : i32
    %48 = arith.cmpi ne, %47, %c0_i32_50 : i32
    scf.if %48 {
      %cst_79 = arith.constant 0.000000e+00 : bf16
      %77 = vector.broadcast %cst_79 : bf16 to vector<1x16x384xbf16>
      %c0_80 = arith.constant 0 : index
      %c0_81 = arith.constant 0 : index
      %c0_82 = arith.constant 0 : index
      %78 = vector.load %arg9[%c0_80, %c0_81, %c0_82] : memref<12x16x384xbf16, #tpu.memory_space<vmem>>, vector<1x16x384xbf16>
      tpu.vector_store %arg9[%c0_80, %c0_81, %c0_82], %77 {strides = array<i32>} : memref<12x16x384xbf16, #tpu.memory_space<vmem>>, vector<1x16x384xbf16>,
    } else {
    }
    %c1_i32 = arith.constant 1 : i32
    %49 = arith.cmpi eq, %arg1, %c1_i32 : i32
    %50 = arith.extui %49 : i1 to i32
    %c0_i32_51 = arith.constant 0 : i32
    %51 = arith.cmpi ne, %50, %c0_i32_51 : i32
    scf.if %51 {
      %cst_79 = arith.constant 0.000000e+00 : bf16
      %77 = vector.broadcast %cst_79 : bf16 to vector<1x16x384xbf16>
      %c9 = arith.constant 9 : index
      %c0_80 = arith.constant 0 : index
      %c0_81 = arith.constant 0 : index
      %78 = vector.load %arg9[%c9, %c0_80, %c0_81] : memref<12x16x384xbf16, #tpu.memory_space<vmem>>, vector<1x16x384xbf16>
      tpu.vector_store %arg9[%c9, %c0_80, %c0_81], %77 {strides = array<i32>} : memref<12x16x384xbf16, #tpu.memory_space<vmem>>, vector<1x16x384xbf16>,
    } else {
    }
    %c0_52 = arith.constant 0 : index
    %c0_53 = arith.constant 0 : index
    %52 = vector.load %arg6[%c0_52, %c0_53] : memref<1x256xf32, #tpu.memory_space<vmem>>, vector<1x256xf32>
    %c0_54 = arith.constant 0 : index
    %c0_55 = arith.constant 0 : index
    %c0_56 = arith.constant 0 : index
    %53 = vector.load %arg9[%c0_54, %c0_55, %c0_56] : memref<12x16x384xbf16, #tpu.memory_space<vmem>>, vector<8x16x384xbf16>
    %54 = vector.shape_cast %53 : vector<8x16x384xbf16> to vector<128x384xbf16>
    %c0_57 = arith.constant 0 : index
    %c0_58 = arith.constant 0 : index
    %55 = vector.load %arg5[%c0_57, %c0_58] : memref<1152x256xbf16, #tpu.memory_space<vmem>>, vector<384x256xbf16>
    %cst_59 = arith.constant dense<0.000000e+00> : vector<128x256xf32>
    %56 = tpu.matmul %54, %55, %cst_59 {dimension_numbers = #tpu.dot_dimension_numbers<[1], [0], [0], [1], [0, 0, 1, 1], [], []>} : vector<128x384xbf16>, vector<384x256xbf16>, vector<128x256xf32> -> vector<128x256xf32>
    %57 = vector.broadcast %52 : vector<1x256xf32> to vector<128x256xf32>
    %58 = arith.addf %57, %56 : vector<128x256xf32>
    %c1_60 = arith.constant 1 : index
    %c0_61 = arith.constant 0 : index
    %c0_62 = arith.constant 0 : index
    %59 = vector.load %arg9[%c1_60, %c0_61, %c0_62] : memref<12x16x384xbf16, #tpu.memory_space<vmem>>, vector<8x16x384xbf16>
    %60 = vector.shape_cast %59 : vector<8x16x384xbf16> to vector<128x384xbf16>
    %c384_63 = arith.constant 384 : index
    %c0_64 = arith.constant 0 : index
    %61 = vector.load %arg5[%c384_63, %c0_64] : memref<1152x256xbf16, #tpu.memory_space<vmem>>, vector<384x256xbf16>
    %cst_65 = arith.constant dense<0.000000e+00> : vector<128x256xf32>
    %62 = tpu.matmul %60, %61, %cst_65 {dimension_numbers = #tpu.dot_dimension_numbers<[1], [0], [0], [1], [0, 0, 1, 1], [], []>} : vector<128x384xbf16>, vector<384x256xbf16>, vector<128x256xf32> -> vector<128x256xf32>
    %63 = arith.addf %58, %62 : vector<128x256xf32>
    %c2_66 = arith.constant 2 : index
    %c0_67 = arith.constant 0 : index
    %c0_68 = arith.constant 0 : index
    %64 = vector.load %arg9[%c2_66, %c0_67, %c0_68] : memref<12x16x384xbf16, #tpu.memory_space<vmem>>, vector<8x16x384xbf16>
    %65 = vector.shape_cast %64 : vector<8x16x384xbf16> to vector<128x384xbf16>
    %c768_69 = arith.constant 768 : index
    %c0_70 = arith.constant 0 : index
    %66 = vector.load %arg5[%c768_69, %c0_70] : memref<1152x256xbf16, #tpu.memory_space<vmem>>, vector<384x256xbf16>
    %cst_71 = arith.constant dense<0.000000e+00> : vector<128x256xf32>
    %67 = tpu.matmul %65, %66, %cst_71 {dimension_numbers = #tpu.dot_dimension_numbers<[1], [0], [0], [1], [0, 0, 1, 1], [], []>} : vector<128x384xbf16>, vector<384x256xbf16>, vector<128x256xf32> -> vector<128x256xf32>
    %68 = arith.addf %63, %67 : vector<128x256xf32>
    %69 = vector.extract_strided_slice %68 {offsets = [0, 0], sizes = [128, 128], strides = [1, 1]} : vector<128x256xf32> to vector<128x128xf32>
    %70 = vector.extract_strided_slice %68 {offsets = [0, 128], sizes = [128, 128], strides = [1, 1]} : vector<128x256xf32> to vector<128x128xf32>
    %71 = arith.maximumf %69, %70 : vector<128x128xf32>
    %72 = vector.shape_cast %71 : vector<128x128xf32> to vector<8x16x128xf32>
    %c2_72 = arith.constant 2 : index
    %c0_73 = arith.constant 0 : index
    %c0_74 = arith.constant 0 : index
    %73 = vector.load %arg8[%c2_72, %c0_73, %c0_74] : memref<12x16x128xf32, #tpu.memory_space<vmem>>, vector<8x16x128xf32>
    %74 = arith.addf %72, %73 : vector<8x16x128xf32>
    %75 = vector.shape_cast %74 : vector<8x16x128xf32> to vector<1x8x16x128xf32>
    %c0_75 = arith.constant 0 : index
    %c0_76 = arith.constant 0 : index
    %c0_77 = arith.constant 0 : index
    %c0_78 = arith.constant 0 : index
    %76 = vector.load %arg7[%c0_75, %c0_76, %c0_77, %c0_78] : memref<1x8x16x128xf32, #tpu.memory_space<vmem>>, vector<1x8x16x128xf32>
    tpu.vector_store %arg7[%c0_75, %c0_76, %c0_77, %c0_78], %75 {strides = array<i32>} : memref<1x8x16x128xf32, #tpu.memory_space<vmem>>, vector<1x8x16x128xf32>,
    return
  }
  func.func @transform_1(%arg0: i32, %arg1: i32) -> (i32, i32) {
    %c0_i32 = arith.constant 0 : i32
    %c0_i32_0 = arith.constant 0 : i32
    %c0_i32_1 = arith.constant 0 : i32
    return %c0_i32, %c0_i32_0 : i32, i32
  }
  func.func @transform_2(%arg0: i32, %arg1: i32) -> (i32, i32) {
    %c0_i32 = arith.constant 0 : i32
    %c0_i32_0 = arith.constant 0 : i32
    %c0_i32_1 = arith.constant 0 : i32
    return %c0_i32, %c0_i32_0 : i32, i32
  }
  func.func @transform_3(%arg0: i32, %arg1: i32) -> (i32, i32) {
    %c0_i32 = arith.constant 0 : i32
    %c0_i32_0 = arith.constant 0 : i32
    %c0_i32_1 = arith.constant 0 : i32
    return %c0_i32, %c0_i32_0 : i32, i32
  }
  func.func @transform_4(%arg0: i32, %arg1: i32) -> (i32, i32) {
    %c0_i32 = arith.constant 0 : i32
    %c0_i32_0 = arith.constant 0 : i32
    %c0_i32_1 = arith.constant 0 : i32
    return %c0_i32, %c0_i32_0 : i32, i32
  }
  func.func @transform_5(%arg0: i32, %arg1: i32) -> (i32, i32, i32, i32) {
    %c0_i32 = arith.constant 0 : i32
    %c0_i32_0 = arith.constant 0 : i32
    %c0_i32_1 = arith.constant 0 : i32
    return %arg0, %arg1, %c0_i32, %c0_i32_0 : i32, i32, i32, i32
  }
}

</mosaic_0001>

<bundles_post_ra>
// kernel: tpu_custom_call.1
= control target key start
LH: loop header
LB: loop body
LE: loop exit
PB: predicated region body
PF: predicated region fallthrough
CT: control target
= control target key end

     0   :  { %10 = vsyncpa [#allocation6], 0  ;;  %s7299_s0 = inlined_call_operand.hbm [shape: f32[2,20,16,128], index: 0, kind: input, shape index: {}]   ;;  %s7300_s1 = inlined_call_operand.hbm [shape: bf16[1152,256], index: 1, kind: input, shape index: {}]   ;;  %s7301_s2 = inlined_call_operand.vmem [shape: f32[1,256], index: 2, kind: input, shape index: {}]   ;;  %s7302_s3 = inlined_call_operand.hbm [shape: bf16[1152,256], index: 3, kind: input, shape index: {}]   ;;  %s7303_s4 = inlined_call_operand.vmem [shape: f32[1,256], index: 4, kind: input, shape index: {}]   ;;  %s7304_s5 = inlined_call_operand.hbm [shape: f32[2,16,16,128], index: 5, kind: output, shape index: {}]  }
   0x1   :  { %11 = vsyncpa [#allocation9], 0 }
   0x2   :  { %12 = vsyncpa [#allocation7], 0 }
   0x3   :  { %14 = vsyncpa [#allocation7 + $0x1], 0  ;;  %s6176_s18 = smov 0   ;;  %s6178_s19 = smov 0  }
   0x4   :  { %s6180_s20 = smov 0   ;;  %s6182_s21 = smov 0  }
   0x5   :  { %s6184_s22 = smov 0   ;;  %s6186_s23 = smov 0  }
   0x6   :  { %s6188_s24 = smov 0   ;;  %s6190_s25 = smov 0  }
   0x7 LB: > { %7321 = sst [smem:[#allocation19_spill]] %s6125_s23  ;;  %s4651_s26 = sadd.s32 4294967295, %s6133_s25   ;;  %s6133_s25 = sphi %s6190_s25, %s20_s25   ;;  %s6129_s24 = sphi %s6188_s24, %s7360_s24   ;;  %s6125_s23 = sphi %s6186_s23, %s7359_s23   ;;  %s6121_s22 = sphi %s6184_s22, %s7358_s22   ;;  %s6117_s21 = sphi %s6182_s21, %s7357_s21   ;;  %s6113_s20 = sphi %s6180_s20, %s7363_s20   ;;  %s6109_s19 = sphi %s6178_s19, %s7362_s19   ;;  %s6105_s18 = sphi %s6176_s18, %s7361_s18  }
   0x8   : > { %7322 = sst [smem:[#allocation20_spill]] %s6129_s24  ;;  %s4652_s27 = sadd.s32 4294967294, %s6133_s25  }
   0x9   : > { %s29_s28 = sadd.s32 1, %s6125_s23  ;;  %s32_s29 = sadd.s32 1, %s6129_s24 }
   0xa   : > { %p30_p0 = scmp.ge.s32.totalorder %s29_s28, 2  ;;  %s125_s30 = sadd.s32 1, %s6113_s20 }
   0xb   : > { %p135_p1 = scmp.ne.s32.totalorder %s6113_s20, %s6109_s19  ;;  %p136_p2 = scmp.eq.s32.totalorder %s4651_s26, 3 }
   0xc   : > { %s7365_s28 = smov (%p30_p0, %s29_s28), 0  ;;  %s7367_s29 = smov (!%p30_p0, %s32_s29), %s6129_s24 }
   0xd   : > { %7323 = sst [smem:[#allocation21_spill]] %s7365_s28  ;;  %s121_s6 = ssub.s32 %s6125_s23, %s7365_s28 }
   0xe   : > { %p6228_p3 = por %p136_p2, %p135_p1  ;;  %p34_p4 = scmp.ge.s32.totalorder %s7367_s29, 2 }
   0xf   : > { %p141_p5 = scmp.ne.s32.totalorder %s6109_s19, %s6105_s18  ;;  %p142_p6 = scmp.eq.s32.totalorder %s4652_s27, 3 }
  0x10   : > { %s7324_s7 = scalar_select %p6228_p3, 1, 0 }
  0x11   : > { %p4653_p7 = scmp.ge.s32.totalorder %s6133_s25, 1  ;;  %s7369_s29 = smov (%p34_p4, %s7367_s29), 0 }
  0x12   : > { %7325 = sst [smem:[#allocation22_spill]] %s7369_s29  ;;  %p6237_p8 = por %p142_p6, %p141_p5 }
  0x13   : > { %p149_p9 = scmp.lt.s32.totalorder %s6133_s25, 5  ;;  %s120_s9 = ssub.s32 %s6129_s24, %s7369_s29 }
  0x14   : > { %s7326_s8 = scalar_select %p6237_p8, 1, 0 }
  0x15   : > { %s122_s10 = sor.u32 %s121_s6, %s120_s9  ;;  %p6244_p10 = pnand %p4653_p7, %p149_p9 }
  0x16   : > { %p123_p11 = scmp.eq.s32.totalorder %s122_s10, 0  ;;  %p6248_p12 = scmp.eq.s32.totalorder %s4651_s26, 0 }
  0x17   : > { %s7327_s11 = scalar_select %p6244_p10, 1, 0 }
  0x18   : > { %s7328_s12 = scalar_select %p6248_p12, 1, 0 }
  0x19   : > { %p5421_p13 = pneg %p6244_p10  ;;  %s6135_s14 = smov [#allocation5]  }
  0x1a   : > { %s6255_s13 = scalar_select %p123_p11, %s6113_s20, %s125_s30  }
  0x1b   : > { %s161_s15 = sshll.u32 %s6135_s14, 4  ;;  %p6259_p0 = pnand %p6248_p12, %p5421_p13  ;;  %s162_s15 = int_to_ptr.vmem [resolvable:$true] %s161_s15 }
  0x1c   : > { %7329 = sst [smem:[#allocation23_spill]] %s6255_s13  ;;  %s5949_s27 = scalar_lea.hbm %s7300_s1, 18432 }
  0x1d   : > { %p5950_p1 = scmp.ne.s32.totalorder %s7300_s1, %s5949_s27  ;;  %p5951_p2 = pneg %p6259_p0 }
  0x1e   : > { %p5956_p6 = scmp.lt.u32.totalorder %s5949_s27, %s7300_s1 }
  0x1f   : > { %p5952_p4 = pnand %p5951_p2, %p5950_p1 }
  0x21   : > { %p5953_p5 = pneg %p5952_p4 }
  0x23   : > { %p5958_p7 = pnand %p5956_p6, %p5953_p5 }
  0x25   : > { %5961 = shalt.err (!%p5958_p7)
}
  0x26   : > { %s5962_s14 = scalar_lea.vmem %s162_s15, 18432  ;;  %p5970_p8 = scmp.lt.s32.totalorder %s162_s15, %s162_s15 }
  0x27   : > { %p5963_p9 = scmp.ne.s32.totalorder %s162_s15, %s5962_s14  ;;  %p5971_p3 = scmp.lt.s32.totalorder %s5962_s14, %s5962_s14 }
  0x29   : > { %p5965_p11 = pnand %p5963_p9, %p5951_p2  ;;  %p5972_p12 = por %p5971_p3, %p5970_p8 }
  0x2b   : > { %p5966_p13 = pneg %p5965_p11 }
  0x2d   : > { %p5973_p10 = pnand %p5972_p12, %p5966_p13 }
  0x2f   : > { %5976 = shalt.err (!%p5973_p10)
}
  0x30   : > { %s6136_s17 = smov 128   ;;  %s6137_s26 = smov 8  }
  0x31   : > { %5424 = dma.hbm_to_vmem [thread:$0]  (!%p6259_p0), %s7300_s1, 18432, %s162_s15, [#allocation6], %s6136_s17, %s6136_s17, %s6137_s26  }
  0x32   : > { %s6138_s9 = smov [#allocation8]   ;;  %s5977_s28 = scalar_lea.hbm %s7302_s3, 18432 }
  0x33   : > { %s177_s30 = sshll.u32 %s6138_s9, 4  ;;  %p5978_p3 = scmp.ne.s32.totalorder %s7302_s3, %s5977_s28  ;;  %s178_s30 = int_to_ptr.vmem [resolvable:$true] %s177_s30 }
  0x34   : > { %p5984_p12 = scmp.lt.u32.totalorder %s5977_s28, %s7302_s3 }
  0x35   : > { %p5980_p8 = pnand %p5978_p3, %p5951_p2 }
  0x37   : > { %p5981_p10 = pneg %p5980_p8 }
  0x39   : > { %p5986_p1 = pnand %p5984_p12, %p5981_p10 }
  0x3b   : > { %5989 = shalt.err (!%p5986_p1)
}
  0x3c   : > { %s5990_s15 = scalar_lea.vmem %s178_s30, 18432  ;;  %p5998_p7 = scmp.lt.s32.totalorder %s178_s30, %s178_s30 }
  0x3d   : > { %p5991_p4 = scmp.ne.s32.totalorder %s178_s30, %s5990_s15  ;;  %p5999_p9 = scmp.lt.s32.totalorder %s5990_s15, %s5990_s15 }
  0x3f   : > { %p5993_p5 = pnand %p5991_p4, %p5951_p2  ;;  %p6000_p11 = por %p5999_p9, %p5998_p7 }
  0x41   : > { %p5994_p6 = pneg %p5993_p5 }
  0x43   : > { %p6001_p13 = pnand %p6000_p11, %p5994_p6 }
  0x45   : > { %6004 = shalt.err (!%p6001_p13)
}
  0x46   : > { %5427 = dma.hbm_to_vmem [thread:$0]  (!%p6259_p0), %s7302_s3, 18432, %s178_s30, [#allocation9], %s6136_s17, %s6136_s17, %s6137_s26  }
  0x47   : > { %p7331_p3 = scmp.ne.s32.totalorder %s7327_s11, 0 }
  0x49   : > { %196 = sbr.rel (%p7331_p3) target bundleno = 1511 (0x5e7), region = 36 }
  0x50   : > { %p7332_p8 = scmp.ne.s32.totalorder %s7328_s12, 0 }
  0x52   : > { %6090 = dma.done.wait (%p7332_p8), [#allocation6], 18432  }
  0x53   : > { %6092 = vsyncadd (%p7332_p8), [#allocation6], 4294948864 }
  0x54   : > { %6094 = dma.done.wait (%p7332_p8), [#allocation9], 18432  }
  0x55   : > { %6096 = vsyncadd (%p7332_p8), [#allocation9], 4294948864  ;;  %s218_s23 = sand.u32 1, %s6109_s19   ;;  %s4961_s28 = sshll.u32 %s6117_s21, 7 }
  0x56   : > { %s4659_s11 = sshll.u32 %s218_s23, 7  ;;  %s225_s13 = smul.u32 320, %s6121_s22 }
  0x57   : > { %s6139_s17 = smov [#allocation2]   ;;  %s6007_s15 = scalar_lea.hbm %s7299_s0, 10240 }
  0x58   : > { %s226_s16 = sadd.s32 %s4961_s28, %s225_s13  ;;  %s236_s26 = sshll.u32 %s6139_s17, 4  ;;  %s237_s26 = int_to_ptr.vmem [resolvable:$true] %s236_s26 }
  0x59   : > { %s4662_s27 = sshll.u32 %s226_s16, 4 }
  0x5a   : > { %s228_s30 = scalar_lea.hbm %s7299_s0, %s4662_s27 }
  0x5b   : > { %s6005_s12 = scalar_lea.hbm %s228_s30, 3072  ;;  %p6008_p2 = scmp.lt.u32.totalorder %s228_s30, %s7299_s0 }
  0x5c   : > { %p6006_p0 = scmp.ne.s32.totalorder %s228_s30, %s6005_s12  ;;  %p6009_p10 = scmp.lt.u32.totalorder %s6007_s15, %s6005_s12 }
  0x5d   : > { %p6011_p1 = scmp.lt.u32.totalorder %s6005_s12, %s228_s30 }
  0x5e   : > { %p6010_p12 = por %p6009_p10, %p6008_p2 }
  0x60   : > { %p6012_p4 = por %p6011_p1, %p6010_p12 }
  0x62   : > { %p6013_p5 = pnand %p6012_p4, %p6006_p0 }
  0x64   : > { %6016 = shalt.err (!%p6013_p5)  }
  0x65   : > { %s6017_s28 = scalar_lea.vmem %s237_s26, 3072  ;;  %p6022_p7 = scmp.lt.s32.totalorder %s237_s26, %s237_s26 }
  0x66   : > { %p6018_p6 = scmp.ne.s32.totalorder %s237_s26, %s6017_s28  ;;  %p6023_p9 = scmp.lt.s32.totalorder %s6017_s28, %s6017_s28 }
  0x68   : > { %p6024_p11 = por %p6023_p9, %p6022_p7 }
  0x6a   : > { %p6025_p13 = pnand %p6024_p11, %p6018_p6 }
  0x6c   : > { %6028 = shalt.err (!%p6025_p13)  }
  0x6d   : > { %239 = dma.hbm_to_vmem [thread:$0]  %s228_s30, 3072, %s237_s26, [#allocation4] }
  0x6e   : > { %s6329_s13 = scalar_lea.vmem [#allocation10], %s4659_s11 }
  0x6f   : > { %6097 = dma.done.wait [#allocation4], 3072 }
  0x70   : > { %6098 = vsyncadd [#allocation4], 4294964224  ;;  %v5511_v0 = vld [vmem:[#allocation5 + $0x4] ss:$8 sps:$4 sm:$0xff]   ;;  %v5513_v1 = vld [vmem:[#allocation5] ss:$8 sps:$4 sm:$0xff]  }
  0x71   : > { %898 = vmatprep.subr.bf16.mxu0 %v5511_v0  ;;  %v5514_v2 = vld [vmem:[#allocation5 + $0x14] ss:$8 sps:$4 sm:$0xff]   ;;  %v5516_v3 = vld [vmem:[#allocation5 + $0x10] ss:$8 sps:$4 sm:$0xff]   ;;  %v5517_v4 = vld [vmem:[#allocation5 + $0x24] ss:$8 sps:$4 sm:$0xff]  }
  0x72   : > { %899 = vmatpush1.bf16.msra.mxu0 %v5513_v1  ;;  %v5519_v5 = vld [vmem:[#allocation5 + $0x20] ss:$8 sps:$4 sm:$0xff]   ;;  %v5520_v6 = vld [vmem:[#allocation5 + $0x34] ss:$8 sps:$4 sm:$0xff]   ;;  %v5522_v7 = vld [vmem:[#allocation5 + $0x30] ss:$8 sps:$4 sm:$0xff]  }
  0x73   : > { %900 = vmatprep.subr.bf16.mxu0 %v5514_v2  ;;  %v7314_v8 = vmov 0   ;;  %v5523_v9 = vld [vmem:[#allocation5 + $0x44] ss:$8 sps:$4 sm:$0xff]   ;;  %v5525_v10 = vld [vmem:[#allocation5 + $0x40] ss:$8 sps:$4 sm:$0xff]   ;;  %vm376_vm0 = vcmask 1047552  }
  0x74   : > { %2344 = vmatprep.mubr.bf16.mxu1 %v7314_v8  ;;  %v5526_v11 = vld [vmem:[#allocation5 + $0x54] ss:$8 sps:$4 sm:$0xff]   ;;  %v5528_v12 = vld [vmem:[#allocation5 + $0x50] ss:$8 sps:$4 sm:$0xff]   ;;  %v5529_v13 = vld [vmem:[#allocation5 + $0x64] ss:$8 sps:$4 sm:$0xff]  }
  0x75   : > { %v244_v14 = vld [vmem:[#allocation2] sm:$0xff]  ;;  %v245_v15 = vld [vmem:[#allocation2 + $0x8] sm:$0xff]  ;;  %vm377_vm1 = vsmask.f32 7938  ;;  %v246_v18 = vld [vmem:[#allocation2 + $0x10] sm:$0xff]  ;;  %vm415_vm3 = vcmask 1040384  }
  0x76   : > { %901 = vmatpush1.bf16.msra.mxu0 %v5516_v3  ;;  %v6332_v16 = vpack.c.bf16 %v245_v15, %v244_v14  ;;  %v5531_v17 = vld [vmem:[#allocation5 + $0x60] ss:$8 sps:$4 sm:$0xff]   ;;  %v5532_v19 = vld [vmem:[#allocation5 + $0x74] ss:$8 sps:$4 sm:$0xff]   ;;  %vm6338_vm2 = vmand %vm376_vm0, %vm377_vm1  ;;  %vm416_vm4 = vsmask.f32 256 }
  0x77   : > { %902 = vmatprep.subr.bf16.mxu0 %v5517_v4  ;;  %v247_v22 = vld [vmem:[#allocation2 + $0x18] sm:$0xff]  ;;  %v248_v27 = vld [vmem:[#allocation2 + $0x20] sm:$0xff]  ;;  %v249_v28 = vld [vmem:[#allocation2 + $0x28] sm:$0xff]  ;;  %vm502_vm5 = vsmask.f32 7424  ;;  %vm540_vm9 = vcmask 1047559  }
  0x78   : > { %v281_v20 = vshrl.u32 %v6332_v16, 16  ;;  %v284_v21 = vshll.u32 %v6332_v16, 16  ;;  %930 = vmatprep.mubr.bf16.mxu0 %v6332_v16  ;;  %v6342_v24 = vpack.c.bf16 %v247_v22, %v246_v18  ;;  %v5534_v25 = vld [vmem:[#allocation5 + $0x70] ss:$8 sps:$4 sm:$0xff]   ;;  %v379_v29 = vld [vmem:[#allocation3] sm:$0xff]  ;;  %v6348_v32 = vpack.c.bf16 %v249_v28, %v248_v27  ;;  %v253_v50 = vld [vmem:[#allocation2 + $0x48] sm:$0xff] }
  0x79   : > { %v5535_v33 = vld [vmem:[#allocation5 + $0x84] ss:$8 sps:$4 sm:$0xff]   ;;  %v250_v35 = vld [vmem:[#allocation2 + $0x30] sm:$0xff]  ;;  %v251_v36 = vld [vmem:[#allocation2 + $0x38] sm:$0xff]  ;;  %vm541_vm8 = vsmask.f32 7966 }
  0x7a   : > { %903 = vmatpush1.bf16.msra.mxu0 %v5519_v5  ;;  %v283_v26 = vrot.slane %v281_v20, 7  ;;  %v288_v30 = vshrl.u32 %v6342_v24, 16  ;;  %v291_v31 = vshll.u32 %v6342_v24, 16  ;;  %v5537_v37 = vld [vmem:[#allocation5 + $0x80] ss:$8 sps:$4 sm:$0xff]   ;;  %v295_v39 = vshrl.u32 %v6348_v32, 16  ;;  %vm6372_vm6 = vmand %vm415_vm3, %vm416_vm4 }
  0x7b   : > { %904 = vmatprep.subr.bf16.mxu0 %v5520_v6  ;;  %456 = vst [vmem:[#allocation3 + $0x38] sm:$0xff] %v6348_v32  ;;  %v298_v40 = vshll.u32 %v6348_v32, 16  ;;  %v6357_v41 = vpack.c.bf16 %v251_v36, %v250_v35  ;;  %v5538_v42 = vld [vmem:[#allocation5 + $0x94] ss:$8 sps:$4 sm:$0xff]   ;;  %v252_v45 = vld [vmem:[#allocation2 + $0x40] sm:$0xff]  ;;  %v388_v60 = vld [vmem:[#allocation3 + $0x48] sm:$0xff] }
  0x7c   : > { %v286_v34 = vor.u32 %v284_v21, %v283_v26  ;;  %v290_v38 = vrot.slane %v288_v30, 7  ;;  %v382_v44 = vld [vmem:[#allocation3 + $0x18] sm:$0xff]  ;;  %v297_v47 = vrot.slane %v295_v39, 7  ;;  %v254_v51 = vld [vmem:[#allocation2 + $0x50] sm:$0xff]  ;;  %v6368_v53 = vpack.c.bf16 %v253_v50, %v252_v45  ;;  %v256_v63 = vld [vmem:[#allocation2 + $0x60] sm:$0xff]  ;;  %p4807_p3 = scmp.ne.s32.totalorder %s6117_s21, 0 }
  0x7d   : > { %v302_v48 = vshrl.u32 %v6357_v41, 16  ;;  %457 = vst [vmem:[#allocation3 + $0x50] sm:$0xff] %v6357_v41  ;;  %v305_v49 = vshll.u32 %v6357_v41, 16  ;;  %v385_v52 = vld [vmem:[#allocation3 + $0x30] sm:$0xff]  ;;  %v255_v54 = vld [vmem:[#allocation2 + $0x58] sm:$0xff]  ;;  %v257_v0 = vld [vmem:[#allocation2 + $0x68] sm:$0xff] }
  0x7e   : > { %905 = vmatpush1.bf16.msra.mxu0 %v5522_v7  ;;  %v380_v43 = vsel %vm6338_vm2, %v286_v34, %v379_v29  ;;  %v293_v46 = vor.u32 %v291_v31, %v290_v38  ;;  %v300_v57 = vor.u32 %v298_v40, %v297_v47  ;;  %v6382_v59 = vpack.c.bf16 %v255_v54, %v254_v51  ;;  %v5540_v1 = vld [vmem:[#allocation5 + $0x90] ss:$8 sps:$4 sm:$0xff]   ;;  %v5541_v6 = vld [vmem:[#allocation5 + $0xa4] ss:$8 sps:$4 sm:$0xff]   ;;  %v5543_v27 = vld [vmem:[#allocation5 + $0xa0] ss:$8 sps:$4 sm:$0xff]  }
  0x7f   : > { %906 = vmatprep.subr.bf16.mxu0 %v5523_v9  ;;  %381 = vst [vmem:[#allocation3] sm:$0xff] %v380_v43  ;;  %v304_v58 = vrot.slane %v302_v48, 7  ;;  %v309_v61 = vshrl.u32 %v6368_v53, 16  ;;  %458 = vst [vmem:[#allocation3 + $0x68] sm:$0xff] %v6368_v53  ;;  %v312_v62 = vshll.u32 %v6368_v53, 16  ;;  %v466_v7 = vrot.slane %v284_v21, 1 }
  0x80   : > { %v383_v56 = vsel %vm6338_vm2, %v293_v46, %v382_v44  ;;  %v386_v2 = vsel %vm6338_vm2, %v300_v57, %v385_v52  ;;  %v316_v4 = vshrl.u32 %v6382_v59, 16  ;;  %459 = vst [vmem:[#allocation3 + $0x80] sm:$0xff] %v6382_v59  ;;  %v319_v5 = vshll.u32 %v6382_v59, 16  ;;  %v391_v14 = vld [vmem:[#allocation3 + $0x60] sm:$0xff]  ;;  %v394_v21 = vld [vmem:[#allocation3 + $0x78] sm:$0xff]  ;;  %vm6417_vm7 = vmand %vm376_vm0, %vm502_vm5 }
  0x81   : > { %384 = vst [vmem:[#allocation3 + $0x18] sm:$0xff] %v383_v56  ;;  %v307_v3 = vor.u32 %v305_v49, %v304_v58  ;;  %387 = vst [vmem:[#allocation3 + $0x30] sm:$0xff] %v386_v2  ;;  %v311_v9 = vrot.slane %v309_v61, 7  ;;  %v468_v26 = vrot.slane %v291_v31, 1  ;;  %v260_v35 = vld [vmem:[#allocation2 + $0x80] sm:$0xff]  ;;  %v261_v43 = vld [vmem:[#allocation2 + $0x88] sm:$0xff] }
  0x82   : > { %907 = vmatpush1.bf16.msra.mxu0 %v5525_v10  ;;  %v6398_v10 = vpack.c.bf16 %v257_v0, %v256_v63  ;;  %v318_v15 = vrot.slane %v316_v4, 7  ;;  %v5544_v36 = vld [vmem:[#allocation5 + $0xb4] ss:$8 sps:$4 sm:$0xff]   ;;  %v5546_v44 = vld [vmem:[#allocation5 + $0xb0] ss:$8 sps:$4 sm:$0xff]   ;;  %v6436_v16 = vpack.c.bf16 %v261_v43, %v260_v35  ;;  %v400_v52 = vld [vmem:[#allocation3 + $0xa8] sm:$0xff] }
  0x83   : > { %908 = vmatprep.subr.bf16.mxu0 %v5526_v11  ;;  %v258_v11 = vld [vmem:[#allocation2 + $0x70] sm:$0xff]  ;;  %v263_v56 = vld [vmem:[#allocation2 + $0x98] sm:$0xff]  ;;  %v469_v57 = vor.u32 %v468_v26, %v288_v30  ;;  %vm6488_vm10 = vmand %vm540_vm9, %vm541_vm8  ;;  %v6141_v23 = vmov (!%p4807_p3), 0  }
  0x84   : > { %v323_v22 = vshrl.u32 %v6398_v10, 16  ;;  %460 = vst [vmem:[#allocation3 + $0x98] sm:$0xff] %v6398_v10  ;;  %v397_v47 = vld [vmem:[#allocation3 + $0x90] sm:$0xff]  ;;  %v337_v63 = vshrl.u32 %v6436_v16, 16  ;;  %462 = vst [vmem:[#allocation3 + $0xc8] sm:$0xff] %v6436_v16  ;;  %v340_v0 = vshll.u32 %v6436_v16, 16 }
  0x85   : > { %v262_v54 = vld [vmem:[#allocation2 + $0x90] sm:$0xff] }
  0x86   : > { %909 = vmatpush1.bf16.msra.mxu0 %v5528_v12  ;;  %v259_v12 = vld [vmem:[#allocation2 + $0x78] sm:$0xff]  ;;  %v418_v18 = vld [vmem:[#allocation3] sm:$0x1]  ;;  %v504_v2 = vld [vmem:[#allocation3 + $0x10] sm:$0xff] }
  0x87   : > { %910 = vmatprep.subr.bf16.mxu0 %v5529_v13  ;;  %v389_v13 = vsel %vm6338_vm2, %v307_v3, %v388_v60  ;;  %v419_v28 = vsel %vm6372_vm6, 0, %v418_v18  ;;  %v5547_v3 = vld [vmem:[#allocation5 + $0xc4] ss:$8 sps:$4 sm:$0xff]   ;;  %v5549_v18 = vld [vmem:[#allocation5 + $0xc0] ss:$8 sps:$4 sm:$0xff]  }
  0x88   : > { %390 = vst [vmem:[#allocation3 + $0x48] sm:$0xff] %v389_v13  ;;  %420 = vst [vmem:[#allocation3] sm:$0x1] %v419_v28  ;;  %v421_v45 = vld [vmem:[#allocation3 + $0x18] sm:$0x1]  ;;  %v339_v13 = vrot.slane %v337_v63, 7 }
  0x89   : > { %v424_v58 = vld [vmem:[#allocation3 + $0x30] sm:$0x1]  ;;  %v406_v28 = vld [vmem:[#allocation3 + $0xd8] sm:$0xff] }
  0x8a   : > { %911 = vmatpush1.bf16.msra.mxu0 %v5531_v17  ;;  %v6404_v17 = vpack.c.bf16 %v259_v12, %v258_v11  ;;  %v425_v30 = vsel %vm6372_vm6, 0, %v424_v58  ;;  %v342_v26 = vor.u32 %v340_v0, %v339_v13 }
  0x8b   : > { %912 = vmatprep.subr.bf16.mxu0 %v5532_v19  ;;  %v314_v19 = vor.u32 %v312_v62, %v311_v9  ;;  %v470_v9 = vrot.slane %v298_v40, 1  ;;  %426 = vst [vmem:[#allocation3 + $0x30] sm:$0x1] %v425_v30 }
  0x8c   : > { %v330_v34 = vshrl.u32 %v6404_v17, 16  ;;  %461 = vst [vmem:[#allocation3 + $0xb0] sm:$0xff] %v6404_v17  ;;  %v333_v31 = vshll.u32 %v6404_v17, 16 }
  0x8d   : > { %v392_v38 = vsel %vm6338_vm2, %v314_v19, %v391_v14  ;;  %v403_v19 = vld [vmem:[#allocation3 + $0xc0] sm:$0xff] }
  0x8e   : > { %913 = vmatpush1.bf16.msra.mxu0 %v5534_v25  ;;  %v326_v25 = vshll.u32 %v6398_v10, 16  ;;  %393 = vst [vmem:[#allocation3 + $0x60] sm:$0xff] %v392_v38  ;;  %v332_v50 = vrot.slane %v330_v34, 7  ;;  %v472_v38 = vrot.slane %v305_v49, 1  ;;  %v5552_v49 = vld [vmem:[#allocation5 + $0xd0] ss:$8 sps:$4 sm:$0xff]  }
  0x8f   : > { %914 = vmatprep.subr.bf16.mxu0 %v5535_v33  ;;  %v321_v33 = vor.u32 %v319_v5, %v318_v15  ;;  %v427_v11 = vld [vmem:[#allocation3 + $0x48] sm:$0x1] }
  0x90   : > { %v335_v60 = vor.u32 %v333_v31, %v332_v50  ;;  %v428_v40 = vsel %vm6372_vm6, 0, %v427_v11 }
  0x91   : > { %v395_v46 = vsel %vm6338_vm2, %v321_v33, %v394_v21  ;;  %v5550_v21 = vld [vmem:[#allocation5 + $0xd4] ss:$8 sps:$4 sm:$0xff]   ;;  %429 = vst [vmem:[#allocation3 + $0x48] sm:$0x1] %v428_v40  ;;  %v507_v33 = vld [vmem:[#allocation3 + $0x28] sm:$0xff] }
  0x92   : > { %915 = vmatpush1.bf16.msra.mxu0 %v5537_v37  ;;  %v467_v37 = vor.u32 %v466_v7, %v281_v20  ;;  %v422_v20 = vsel %vm6372_vm6, 0, %v421_v45  ;;  %396 = vst [vmem:[#allocation3 + $0x78] sm:$0xff] %v395_v46  ;;  %v401_v12 = vsel %vm6338_vm2, %v335_v60, %v400_v52 }
  0x93   : > { %916 = vmatprep.subr.bf16.mxu0 %v5538_v42  ;;  %v325_v42 = vrot.slane %v323_v22, 7  ;;  %423 = vst [vmem:[#allocation3 + $0x18] sm:$0x1] %v422_v20  ;;  %402 = vst [vmem:[#allocation3 + $0xa8] sm:$0xff] %v401_v12  ;;  %v510_v20 = vld [vmem:[#allocation3 + $0x40] sm:$0xff] }
  0x94   : > { %v505_v7 = vsel %vm6417_vm7, %v467_v37, %v504_v2  ;;  %v471_v37 = vor.u32 %v470_v9, %v295_v39 }
  0x95   : > { %v328_v51 = vor.u32 %v326_v25, %v325_v42  ;;  %506 = vst [vmem:[#allocation3 + $0x10] sm:$0xff] %v505_v7  ;;  %v430_v35 = vld [vmem:[#allocation3 + $0x60] sm:$0x1] }
  0x96   : > { %917 = vmatpush1.bf16.msra.mxu0 %v5540_v1  ;;  %v6449_v1 = vpack.c.bf16 %v263_v56, %v262_v54  ;;  %v431_v42 = vsel %vm6372_vm6, 0, %v430_v35  ;;  %v511_v54 = vsel %vm6417_vm7, %v471_v37, %v510_v20  ;;  %v473_v56 = vor.u32 %v472_v38, %v302_v48  ;;  %v513_v48 = vld [vmem:[#allocation3 + $0x58] sm:$0xff]  ;;  %v519_v37 = vld [vmem:[#allocation3 + $0x88] sm:$0xff] }
  0x97   : > { %918 = vmatprep.subr.bf16.mxu0 %v5541_v6  ;;  %v398_v6 = vsel %vm6338_vm2, %v328_v51, %v397_v47  ;;  %432 = vst [vmem:[#allocation3 + $0x60] sm:$0x1] %v431_v42  ;;  %v5553_v47 = vld [vmem:[#allocation5 + $0xe4] ss:$8 sps:$4 sm:$0xff]   ;;  %512 = vst [vmem:[#allocation3 + $0x40] sm:$0xff] %v511_v54  ;;  %v480_v42 = vrot.slane %v333_v31, 1 }
  0x98   : > { %399 = vst [vmem:[#allocation3 + $0x90] sm:$0xff] %v398_v6  ;;  %v344_v14 = vshrl.u32 %v6449_v1, 16  ;;  %463 = vst [vmem:[#allocation3 + $0xe0] sm:$0xff] %v6449_v1  ;;  %v347_v15 = vshll.u32 %v6449_v1, 16  ;;  %v5556_v6 = vld [vmem:[#allocation5 + $0xf4] ss:$8 sps:$4 sm:$0xff]   ;;  %v514_v9 = vsel %vm6417_vm7, %v473_v56, %v513_v48 }
  0x99   : > { %v433_v43 = vld [vmem:[#allocation3 + $0x78] sm:$0x1]  ;;  %515 = vst [vmem:[#allocation3 + $0x58] sm:$0xff] %v514_v9  ;;  %v5573_v48 = vld [vmem:[#allocation5 + $0x144] ss:$8 sps:$4 sm:$0xff]   ;;  %v6563_v9 = vld [vmem:[#allocation3 + $0x30] sm:$0xff] }
  0x9a   : > { %919 = vmatpush1.bf16.msra.mxu0 %v5543_v27  ;;  %v346_v27 = vrot.slane %v344_v14, 7  ;;  %v434_v46 = vsel %vm6372_vm6, 0, %v433_v43  ;;  %v439_v60 = vld [vmem:[#allocation3 + $0xa8] sm:$0x1]  ;;  %v5564_v43 = vld [vmem:[#allocation5 + $0x114] ss:$8 sps:$4 sm:$0xff]  }
  0x9b   : > { %920 = vmatprep.subr.bf16.mxu0 %v5544_v36  ;;  %v508_v36 = vsel %vm6417_vm7, %v469_v57, %v507_v33  ;;  %435 = vst [vmem:[#allocation3 + $0x78] sm:$0x1] %v434_v46  ;;  %v474_v57 = vrot.slane %v312_v62, 1  ;;  %v440_v30 = vsel %vm6372_vm6, 0, %v439_v60  ;;  %v476_v62 = vrot.slane %v319_v5, 1  ;;  %v6547_v56 = vld [vmem:[#allocation3 + $0x18] sm:$0xff] }
  0x9c   : > { %v349_v45 = vor.u32 %v347_v15, %v346_v27  ;;  %509 = vst [vmem:[#allocation3 + $0x28] sm:$0xff] %v508_v36  ;;  %v543_v52 = vld [vmem:[#allocation3 + $0x10] sm:$0x80]  ;;  %441 = vst [vmem:[#allocation3 + $0xa8] sm:$0x1] %v440_v30  ;;  %v482_v46 = vrot.slane %v340_v0, 1 }
  0x9d   : > { %v544_v2 = vsel %vm6488_vm10, 0, %v543_v52  ;;  %v475_v11 = vor.u32 %v474_v57, %v309_v61  ;;  %v5561_v5 = vld [vmem:[#allocation5 + $0x104] ss:$8 sps:$4 sm:$0xff]   ;;  %v478_v61 = vrot.slane %v326_v25, 1  ;;  %v5559_v36 = vld [vmem:[#allocation5 + $0x100] ss:$8 sps:$4 sm:$0xff]  }
  0x9e   : > { %921 = vmatpush1.bf16.msra.mxu0 %v5546_v44  ;;  %v404_v44 = vsel %vm6338_vm2, %v342_v26, %v403_v19  ;;  %v407_v50 = vsel %vm6338_vm2, %v349_v45, %v406_v28  ;;  %545 = vst [vmem:[#allocation3 + $0x10] sm:$0x80] %v544_v2  ;;  %v477_v26 = vor.u32 %v476_v62, %v316_v4  ;;  %v549_v28 = vld [vmem:[#allocation3 + $0x40] sm:$0x80]  ;;  %v484_v0 = vrot.slane %v347_v15, 1  ;;  %v531_v62 = vld [vmem:[#allocation3 + $0xe8] sm:$0xff] }
  0x9f   : > { %922 = vmatprep.subr.bf16.mxu0 %v5547_v3  ;;  %405 = vst [vmem:[#allocation3 + $0xc0] sm:$0xff] %v404_v44  ;;  %v436_v51 = vld [vmem:[#allocation3 + $0x90] sm:$0x1]  ;;  %408 = vst [vmem:[#allocation3 + $0xd8] sm:$0xff] %v407_v50  ;;  %v5555_v3 = vld [vmem:[#allocation5 + $0xe0] ss:$8 sps:$4 sm:$0xff]   ;;  %v479_v38 = vor.u32 %v478_v61, %v323_v22  ;;  %v483_v54 = vor.u32 %v482_v46, %v337_v63 }
  0xa0   : > { %v437_v58 = vsel %vm6372_vm6, 0, %v436_v51  ;;  %v550_v35 = vsel %vm6488_vm10, 0, %v549_v28  ;;  %v580_v4 = vld [vmem:[#allocation3] sm:$0xff]  ;;  %v520_v25 = vsel %vm6417_vm7, %v477_v26, %v519_v37  ;;  %v552_v44 = vld [vmem:[#allocation3 + $0x58] sm:$0x80]  ;;  %v485_v15 = vor.u32 %v484_v0, %v344_v14  ;;  %v6573_v61 = vld [vmem:[#allocation3 + $0x48] sm:$0xff] }
  0xa1   : > { %438 = vst [vmem:[#allocation3 + $0x90] sm:$0x1] %v437_v58  ;;  %551 = vst [vmem:[#allocation3 + $0x40] sm:$0x80] %v550_v35  ;;  %v553_v45 = vsel %vm6488_vm10, 0, %v552_v44  ;;  %v525_v58 = vld [vmem:[#allocation3 + $0xb8] sm:$0xff] }
  0xa2   : > { %923 = vmatpush1.bf16.msra.mxu0 %v5549_v18  ;;  %v5558_v18 = vld [vmem:[#allocation5 + $0xf0] ss:$8 sps:$4 sm:$0xff]   ;;  %521 = vst [vmem:[#allocation3 + $0x88] sm:$0xff] %v520_v25  ;;  %554 = vst [vmem:[#allocation3 + $0x58] sm:$0x80] %v553_v45  ;;  %v6577_v35 = vld [vmem:[#allocation3 + $0x60] sm:$0xff] }
  0xa3   : > { %924 = vmatprep.subr.bf16.mxu0 %v5550_v21  ;;  %v546_v7 = vld [vmem:[#allocation3 + $0x28] sm:$0x80]  ;;  %v516_v21 = vld [vmem:[#allocation3 + $0x70] sm:$0xff]  ;;  %v5565_v51 = vld [vmem:[#allocation5 + $0x120] ss:$8 sps:$4 sm:$0xff]  }
  0xa4   : > { %v547_v13 = vsel %vm6488_vm10, 0, %v546_v7  ;;  %v517_v33 = vsel %vm6417_vm7, %v475_v11, %v516_v21  ;;  %v5562_v22 = vld [vmem:[#allocation5 + $0x110] ss:$8 sps:$4 sm:$0xff]   ;;  %v5567_v50 = vld [vmem:[#allocation5 + $0x124] ss:$8 sps:$4 sm:$0xff]  }
  0xa5   : > { %548 = vst [vmem:[#allocation3 + $0x28] sm:$0x80] %v547_v13  ;;  %518 = vst [vmem:[#allocation3 + $0x70] sm:$0xff] %v517_v33  ;;  %v5570_v57 = vld [vmem:[#allocation5 + $0x134] ss:$8 sps:$4 sm:$0xff]   ;;  %v264_v25 = vld [vmem:[#allocation2 + $0xa0] sm:$0xff] }
  0xa6   : > { %925 = vmatpush1.bf16.msra.mxu0 %v5552_v49  ;;  %v442_v12 = vld [vmem:[#allocation3 + $0xc0] sm:$0x1]  ;;  %v445_v19 = vld [vmem:[#allocation3 + $0xd8] sm:$0x1]  ;;  %v5576_v13 = vld [vmem:[#allocation5 + $0x154] ss:$8 sps:$4 sm:$0xff]  }
  0xa7   : > { %926 = vmatprep.subr.bf16.mxu0 %v5553_v47  ;;  %v443_v40 = vsel %vm6372_vm6, 0, %v442_v12  ;;  %v446_v27 = vsel %vm6372_vm6, 0, %v445_v19  ;;  %v522_v49 = vld [vmem:[#allocation3 + $0xa0] sm:$0xff]  ;;  %v481_v47 = vor.u32 %v480_v42, %v330_v34  ;;  %v5568_v30 = vld [vmem:[#allocation5 + $0x130] ss:$8 sps:$4 sm:$0xff]  }
  0xa8   : > { %444 = vst [vmem:[#allocation3 + $0xc0] sm:$0x1] %v443_v40  ;;  %447 = vst [vmem:[#allocation3 + $0xd8] sm:$0x1] %v446_v27  ;;  %v523_v31 = vsel %vm6417_vm7, %v479_v38, %v522_v49  ;;  %v5571_v11 = vld [vmem:[#allocation5 + $0x140] ss:$8 sps:$4 sm:$0xff]  }
  0xa9   : > { %524 = vst [vmem:[#allocation3 + $0xa0] sm:$0xff] %v523_v31  ;;  %v558_v34 = vld [vmem:[#allocation3 + $0x88] sm:$0x80]  ;;  %v526_v60 = vsel %vm6417_vm7, %v481_v47, %v525_v58  ;;  %v5577_v27 = vld [vmem:[#allocation5 + $0x160] ss:$8 sps:$4 sm:$0xff]   ;;  %v6585_v37 = vld [vmem:[#allocation3 + $0x90] sm:$0xff] }
  0xaa   : > { %927 = vmatpush1.bf16.msra.mxu0 %v5555_v3  ;;  %v559_v2 = vsel %vm6488_vm10, 0, %v558_v34  ;;  %527 = vst [vmem:[#allocation3 + $0xb8] sm:$0xff] %v526_v60  ;;  %v528_v3 = vld [vmem:[#allocation3 + $0xd0] sm:$0xff]  ;;  %v5579_v21 = vld [vmem:[#allocation5 + $0x164] ss:$8 sps:$4 sm:$0xff]  }
  0xab   : > { %928 = vmatprep.subr.bf16.mxu0 %v5556_v6  ;;  %560 = vst [vmem:[#allocation3 + $0x88] sm:$0x80] %v559_v2  ;;  %v529_v63 = vsel %vm6417_vm7, %v483_v54, %v528_v3  ;;  %v532_v6 = vsel %vm6417_vm7, %v485_v15, %v531_v62  ;;  %v5582_v28 = vld [vmem:[#allocation5 + $0x174] ss:$8 sps:$4 sm:$0xff]   ;;  %v5580_v33 = vld [vmem:[#allocation5 + $0x170] ss:$8 sps:$4 sm:$0xff]  }
  0xac   : > { %v555_v20 = vld [vmem:[#allocation3 + $0x70] sm:$0x80]  ;;  %530 = vst [vmem:[#allocation3 + $0xd0] sm:$0xff] %v529_v63  ;;  %533 = vst [vmem:[#allocation3 + $0xe8] sm:$0xff] %v532_v6  ;;  %v265_v38 = vld [vmem:[#allocation2 + $0xa8] sm:$0xff] }
  0xad   : > { %v556_v52 = vsel %vm6488_vm10, 0, %v555_v20  ;;  %v5588_v42 = vld [vmem:[#allocation5 + $0x194] ss:$8 sps:$4 sm:$0xff]   ;;  %v5586_v45 = vld [vmem:[#allocation5 + $0x190] ss:$8 sps:$4 sm:$0xff]   ;;  %v6610_v47 = vld [vmem:[#allocation3 + $0x28] sm:$0xff] }
  0xae   : > { %929 = vmatpush1.bf16.msra.mxu0 %v5558_v18  ;;  %557 = vst [vmem:[#allocation3 + $0x70] sm:$0x80] %v556_v52  ;;  %v5591_v46 = vld [vmem:[#allocation5 + $0x1a4] ss:$8 sps:$4 sm:$0xff]   ;;  %v409_v20 = vld [vmem:[#allocation3 + $0xf0] sm:$0xff]  ;;  %v6622_v63 = vld [vmem:[#allocation3 + $0x58] sm:$0xff] }
  0xaf   : > { %1031 = vmatprep.subr.bf16.mxu0 %v5561_v5  ;;  %v5574_v5 = vld [vmem:[#allocation5 + $0x150] ss:$8 sps:$4 sm:$0xff]   ;;  %v5594_v0 = vld [vmem:[#allocation5 + $0x1b4] ss:$8 sps:$4 sm:$0xff]   ;;  %v5597_v54 = vld [vmem:[#allocation5 + $0x1c4] ss:$8 sps:$4 sm:$0xff]  }
  0xb0   : > { %v561_v14 = vld [vmem:[#allocation3 + $0xa0] sm:$0x80]  ;;  %v5592_v52 = vld [vmem:[#allocation5 + $0x1b0] ss:$8 sps:$4 sm:$0xff]   ;;  %v5595_v58 = vld [vmem:[#allocation5 + $0x1c0] ss:$8 sps:$4 sm:$0xff]  }
  0xb1   : > { %931 = vmatmul.mubr.bf16.vlgmr.msra.gmra.mrb[0].mxu0 %v580_v4  ;;  %v562_v7 = vsel %vm6488_vm10, 0, %v561_v14  ;;  %v564_v12 = vld [vmem:[#allocation3 + $0xb8] sm:$0x80]  ;;  %v6593_v4 = vld [vmem:[#allocation3 + $0xc0] sm:$0xff]  ;;  %v5598_v2 = vld [vmem:[#allocation5 + $0x1d0] ss:$8 sps:$4 sm:$0xff]  }
  0xb2   : > { %1032 = vmatpush1.bf16.msra.mxu0 %v5559_v36  ;;  %940 = vmatprep.mubr.bf16.mxu0 %v6342_v24  ;;  %563 = vst [vmem:[#allocation3 + $0xa0] sm:$0x80] %v562_v7  ;;  %v6581_v36 = vld [vmem:[#allocation3 + $0x78] sm:$0xff]  ;;  %v5603_v3 = vld [vmem:[#allocation5 + $0x1e4] ss:$8 sps:$4 sm:$0xff]  }
  0xb3   : > { %1033 = vmatprep.subr.bf16.mxu0 %v5564_v43  ;;  %v567_v18 = vld [vmem:[#allocation3 + $0xd0] sm:$0x80]  ;;  %v570_v19 = vld [vmem:[#allocation3 + $0xe8] sm:$0x80]  ;;  %v6601_v43 = vpack.c.bf16 %v265_v38, %v264_v25  ;;  %v5604_v62 = vld [vmem:[#allocation5 + $0x1f0] ss:$8 sps:$4 sm:$0xff]  }
  0xb4   : > { %v568_v40 = vsel %vm6488_vm10, 0, %v567_v18  ;;  %v571_v26 = vsel %vm6488_vm10, 0, %v570_v19  ;;  %v5600_v34 = vld [vmem:[#allocation5 + $0x1d4] ss:$8 sps:$4 sm:$0xff]   ;;  %v5609_v14 = vld [vmem:[#allocation5 + $0x204] ss:$8 sps:$4 sm:$0xff]  }
  0xb5   : > { %569 = vst [vmem:[#allocation3 + $0xd0] sm:$0x80] %v568_v40  ;;  %572 = vst [vmem:[#allocation3 + $0xe8] sm:$0x80] %v571_v26  ;;  %v351_v44 = vshrl.u32 %v6601_v43, 16  ;;  %v6626_v6 = vld [vmem:[#allocation3 + $0x70] sm:$0xff] }
  0xb6   : > { %1034 = vmatpush1.bf16.msra.mxu0 %v5562_v22  ;;  %v354_v22 = vshll.u32 %v6601_v43, 16  ;;  %v5607_v7 = vld [vmem:[#allocation5 + $0x200] ss:$8 sps:$4 sm:$0xff]   ;;  %v5618_v40 = vld [vmem:[#allocation5 + $0x234] ss:$8 sps:$4 sm:$0xff]  }
  0xb7   : > { %1035 = vmatprep.subr.bf16.mxu0 %v5567_v50  ;;  %v353_v49 = vrot.slane %v351_v44, 7  ;;  %v5589_v50 = vld [vmem:[#allocation5 + $0x1a0] ss:$8 sps:$4 sm:$0xff]   ;;  %v5621_v19 = vld [vmem:[#allocation5 + $0x244] ss:$8 sps:$4 sm:$0xff]  }
  0xb8   : > { %v5613_v18 = vld [vmem:[#allocation5 + $0x220] ss:$8 sps:$4 sm:$0xff]   ;;  %v5628_v25 = vld [vmem:[#allocation5 + $0x270] ss:$8 sps:$4 sm:$0xff]   ;;  %v5633_v38 = vld [vmem:[#allocation5 + $0x284] ss:$8 sps:$4 sm:$0xff]  }
  0xb9   : > { %941 = vmatmul.mubr.bf16.gmra.mrb[4].mxu0 %v6547_v56  ;;  %v356_v31 = vor.u32 %v354_v22, %v353_v49  ;;  %v5619_v26 = vld [vmem:[#allocation5 + $0x240] ss:$8 sps:$4 sm:$0xff]   ;;  %v5636_v49 = vld [vmem:[#allocation5 + $0x294] ss:$8 sps:$4 sm:$0xff]  }
  0xba   : > { %950 = vmatprep.mubr.bf16.mxu0 %v6348_v32  ;;  %1036 = vmatpush1.bf16.msra.mxu0 %v5565_v51  ;;  %v565_v32 = vsel %vm6488_vm10, 0, %v564_v12  ;;  %v5610_v12 = vld [vmem:[#allocation5 + $0x210] ss:$8 sps:$4 sm:$0xff]  }
  0xbb   : > { %1037 = vmatprep.subr.bf16.mxu0 %v5570_v57  ;;  %566 = vst [vmem:[#allocation3 + $0xb8] sm:$0x80] %v565_v32  ;;  %v410_v51 = vsel %vm6338_vm2, %v356_v31, %v409_v20  ;;  %v6616_v57 = vld [vmem:[#allocation3 + $0x40] sm:$0xff]  ;;  %v6630_v32 = vld [vmem:[#allocation3 + $0x88] sm:$0xff]  ;;  %v5727_v31 = vld [vmem:[#allocation3 + $0x38] sm:$0xff] }
  0xbc   : > { %411 = vst [vmem:[#allocation3 + $0xf0] sm:$0xff] %v410_v51  ;;  %v5639_v20 = vld [vmem:[#allocation5 + $0x2a4] ss:$8 sps:$4 sm:$0xff]  }
  0xbe   : > { %1038 = vmatpush1.bf16.msra.mxu0 %v5568_v30  ;;  %v5601_v30 = vld [vmem:[#allocation5 + $0x1e0] ss:$8 sps:$4 sm:$0xff]  }
  0xbf   : > { %1039 = vmatprep.subr.bf16.mxu0 %v5573_v48  ;;  %v5606_v48 = vld [vmem:[#allocation5 + $0x1f4] ss:$8 sps:$4 sm:$0xff]  }
  0xc1   : > { %951 = vmatmul.mubr.bf16.gmra.mrb[8].mxu0 %v6563_v9 }
  0xc2   : > { %960 = vmatprep.mubr.bf16.mxu0 %v6357_v41  ;;  %1040 = vmatpush1.bf16.msra.mxu0 %v5571_v11  ;;  %v5585_v41 = vld [vmem:[#allocation5 + $0x184] ss:$8 sps:$4 sm:$0xff]   ;;  %v5612_v11 = vld [vmem:[#allocation5 + $0x214] ss:$8 sps:$4 sm:$0xff]  }
  0xc3   : > { %1041 = vmatprep.subr.bf16.mxu0 %v5576_v13  ;;  %v448_v60 = vld [vmem:[#allocation3 + $0xf0] sm:$0x1]  ;;  %v5615_v13 = vld [vmem:[#allocation5 + $0x224] ss:$8 sps:$4 sm:$0xff]  }
  0xc4   : > { %v449_v15 = vsel %vm6372_vm6, 0, %v448_v60  ;;  %v5643_v60 = vld [vmem:[#allocation5 + $0x2c0] ss:$8 sps:$4 sm:$0xff]  }
  0xc5   : > { %450 = vst [vmem:[#allocation3 + $0xf0] sm:$0x1] %v449_v15 }
  0xc6   : > { %1042 = vmatpush1.bf16.msra.mxu0 %v5574_v5  ;;  %v5616_v5 = vld [vmem:[#allocation5 + $0x230] ss:$8 sps:$4 sm:$0xff]  }
  0xc7   : > { %1043 = vmatprep.subr.bf16.mxu0 %v5579_v21  ;;  %v6634_v21 = vld [vmem:[#allocation3 + $0xa0] sm:$0xff] }
  0xc9   : > { %961 = vmatmul.mubr.bf16.gmra.mrb[12].mxu0 %v6573_v61 }
  0xca   : > { %970 = vmatprep.mubr.bf16.mxu0 %v6368_v53  ;;  %1044 = vmatpush1.bf16.msra.mxu0 %v5577_v27  ;;  %v6589_v53 = vld [vmem:[#allocation3 + $0xa8] sm:$0xff]  ;;  %v5624_v27 = vld [vmem:[#allocation5 + $0x254] ss:$8 sps:$4 sm:$0xff]  }
  0xcb   : > { %1045 = vmatprep.subr.bf16.mxu0 %v5582_v28  ;;  %v5622_v28 = vld [vmem:[#allocation5 + $0x250] ss:$8 sps:$4 sm:$0xff]  }
  0xce   : > { %1046 = vmatpush1.bf16.msra.mxu0 %v5580_v33  ;;  %v5627_v33 = vld [vmem:[#allocation5 + $0x264] ss:$8 sps:$4 sm:$0xff]  }
  0xcf   : > { %1534 = vmatprep.subr.bf16.mxu0 %v5585_v41  ;;  %v6638_v41 = vld [vmem:[#allocation3 + $0xb8] sm:$0xff] }
  0xd1   : > { %971 = vmatmul.mubr.bf16.gmra.mrb[16].mxu0 %v6577_v35 }
  0xd2   : > { %980 = vmatprep.mubr.bf16.mxu0 %v6382_v59  ;;  %v6597_v59 = vld [vmem:[#allocation3 + $0xd8] sm:$0xff] }
  0xd9   : > { %981 = vmatmul.mubr.bf16.gmra.mrb[20].mxu0 %v6581_v36 }
  0xda   : > { %990 = vmatprep.mubr.bf16.mxu0 %v6398_v10  ;;  %v5583_v10 = vld [vmem:[#allocation5 + $0x180] ss:$8 sps:$4 sm:$0xff]  }
  0xe1   : > { %991 = vmatmul.mubr.bf16.gmra.mrb[24].mxu0 %v6585_v37 }
  0xe2   : > { %1000 = vmatprep.mubr.bf16.mxu0 %v6404_v17  ;;  %v582_v17 = vld [vmem:[#allocation3 + $0x10] sm:$0xff] }
  0xe9   : > { %1001 = vmatmul.mubr.bf16.gmra.mrb[28].mxu0 %v6589_v53 }
  0xea   : > { %1010 = vmatprep.mubr.bf16.mxu0 %v6436_v16 }
  0xf1   : > { %1011 = vmatmul.mubr.bf16.gmra.mrb[32].mxu0 %v6593_v4 }
  0xf2   : > { %1020 = vmatprep.mubr.bf16.mxu0 %v6449_v1 }
  0xf9   : > { %1021 = vmatmul.mubr.bf16.gmra.mrb[36].mxu0 %v6597_v59 }
  0xfa   : > { %1063 = vmatprep.mubr.bf16.mxu0 %v7314_v8 }
 0x101   : > { %1064 = vmatmul.mubr.bf16.vlgmr.msra.gmra.mrb[0].mxu0 %v582_v17  ;;  %v5630_v17 = vld [vmem:[#allocation5 + $0x274] ss:$8 sps:$4 sm:$0xff]  }
 0x102   : > { %1535 = vmatpush1.bf16.msra.mxu0 %v5583_v10  ;;  %1073 = vmatprep.mubr.bf16.mxu0 %v7314_v8  ;;  %v5625_v10 = vld [vmem:[#allocation5 + $0x260] ss:$8 sps:$4 sm:$0xff]  }
 0x103   : > { %1536 = vmatprep.subr.bf16.mxu0 %v5588_v42  ;;  %v6642_v42 = vld [vmem:[#allocation3 + $0xd0] sm:$0xff] }
 0x106   : > { %1537 = vmatpush1.bf16.msra.mxu0 %v5586_v45  ;;  %v6646_v45 = vld [vmem:[#allocation3 + $0xe8] sm:$0xff] }
 0x107   : > { %1538 = vmatprep.subr.bf16.mxu0 %v5591_v46  ;;  %v5631_v46 = vld [vmem:[#allocation5 + $0x280] ss:$8 sps:$4 sm:$0xff]  }
 0x109   : > { %1074 = vmatmul.mubr.bf16.gmra.mrb[4].mxu0 %v6610_v47 }
 0x10a   : > { %1539 = vmatpush1.bf16.msra.mxu0 %v5589_v50  ;;  %1083 = vmatprep.mubr.bf16.mxu0 %v7314_v8  ;;  %v5634_v50 = vld [vmem:[#allocation5 + $0x290] ss:$8 sps:$4 sm:$0xff]  }
 0x10b   : > { %1540 = vmatprep.subr.bf16.mxu0 %v5594_v0  ;;  %v486_v0 = vrot.slane %v354_v22, 1  ;;  %v5645_v22 = vld [vmem:[#allocation5 + $0x2c4] ss:$8 sps:$4 sm:$0xff]  }
 0x10d   : > { %v487_v51 = vor.u32 %v486_v0, %v351_v44  ;;  %v5648_v44 = vld [vmem:[#allocation5 + $0x2d4] ss:$8 sps:$4 sm:$0xff]  }
 0x10e   : > { %1541 = vmatpush1.bf16.msra.mxu0 %v5592_v52  ;;  %v5637_v52 = vld [vmem:[#allocation5 + $0x2a0] ss:$8 sps:$4 sm:$0xff]  }
 0x10f   : > { %1542 = vmatprep.subr.bf16.mxu0 %v5597_v54  ;;  %v534_v54 = vld [vmem:[#allocation3 + $0x100] sm:$0xff] }
 0x111   : > { %1084 = vmatmul.mubr.bf16.gmra.mrb[8].mxu0 %v6616_v57 }
 0x112   : > { %1543 = vmatpush1.bf16.msra.mxu0 %v5595_v58  ;;  %1093 = vmatprep.mubr.bf16.mxu0 %v7314_v8  ;;  %v5728_v58 = vld [vmem:[#allocation3 + $0x50] sm:$0xff] }
 0x113   : > { %1544 = vmatprep.subr.bf16.mxu0 %v5600_v34  ;;  %v5640_v34 = vld [vmem:[#allocation5 + $0x2b0] ss:$8 sps:$4 sm:$0xff]  }
 0x116   : > { %1545 = vmatpush1.bf16.msra.mxu0 %v5598_v2 }
 0x117   : > { %1546 = vmatprep.subr.bf16.mxu0 %v5603_v3  ;;  %v6661_v3 = vld [vmem:[#allocation5 + $0x404] ss:$8 sps:$4 sm:$0xff]  }
 0x118   : > { %4963 = vmatprep.subr.bf16.mxu1 %v6661_v3 }
 0x119   : > { %1094 = vmatmul.mubr.bf16.gmra.mrb[12].mxu0 %v6622_v63 }
 0x11a   : > { %1103 = vmatprep.mubr.bf16.mxu0 %v7314_v8  ;;  %1547 = vmatpush1.bf16.msra.mxu0 %v5601_v30  ;;  %v5646_v30 = vld [vmem:[#allocation5 + $0x2d0] ss:$8 sps:$4 sm:$0xff]  }
 0x11b   : > { %1548 = vmatprep.subr.bf16.mxu0 %v5606_v48  ;;  %v6663_v48 = vld [vmem:[#allocation5 + $0x400] ss:$8 sps:$4 sm:$0xff]  }
 0x11c   : > { %4971 = vmatpush1.bf16.msra.mxu1 %v6663_v48 }
 0x11e   : > { %1549 = vmatpush1.bf16.msra.mxu0 %v5604_v62  ;;  %v5651_v62 = vld [vmem:[#allocation5 + $0x2e4] ss:$8 sps:$4 sm:$0xff]  }
 0x11f   : > { %1550 = vmatprep.subr.bf16.mxu0 %v5609_v14  ;;  %v6666_v14 = vld [vmem:[#allocation5 + $0x414] ss:$8 sps:$4 sm:$0xff]  }
 0x120   : > { %4964 = vmatprep.subr.bf16.mxu1 %v6666_v14 }
 0x121   : > { %1104 = vmatmul.mubr.bf16.gmra.mrb[16].mxu0 %v6626_v6 }
 0x122   : > { %1113 = vmatprep.mubr.bf16.mxu0 %v7314_v8  ;;  %1551 = vmatpush1.bf16.msra.mxu0 %v5607_v7  ;;  %v6669_v7 = vld [vmem:[#allocation5 + $0x410] ss:$8 sps:$4 sm:$0xff]  }
 0x123   : > { %1552 = vmatprep.subr.bf16.mxu0 %v5612_v11  ;;  %v5654_v11 = vld [vmem:[#allocation5 + $0x2f4] ss:$8 sps:$4 sm:$0xff]   ;;  %4972 = vmatpush1.bf16.msra.mxu1 %v6669_v7 }
 0x126   : > { %1553 = vmatpush1.bf16.msra.mxu0 %v5610_v12  ;;  %v6674_v12 = vld [vmem:[#allocation5 + $0x424] ss:$8 sps:$4 sm:$0xff]  }
 0x127   : > { %1554 = vmatprep.subr.bf16.mxu0 %v5615_v13  ;;  %v5730_v13 = vld [vmem:[#allocation3 + $0x80] sm:$0xff]  ;;  %4965 = vmatprep.subr.bf16.mxu1 %v6674_v12 }
 0x129   : > { %1114 = vmatmul.mubr.bf16.gmra.mrb[20].mxu0 %v6630_v32 }
 0x12a   : > { %1123 = vmatprep.mubr.bf16.mxu0 %v7314_v8  ;;  %1555 = vmatpush1.bf16.msra.mxu0 %v5613_v18  ;;  %v5652_v18 = vld [vmem:[#allocation5 + $0x2f0] ss:$8 sps:$4 sm:$0xff]  }
 0x12b   : > { %1556 = vmatprep.subr.bf16.mxu0 %v5618_v40  ;;  %v6676_v40 = vld [vmem:[#allocation5 + $0x420] ss:$8 sps:$4 sm:$0xff]  }
 0x12c   : > { %4973 = vmatpush1.bf16.msra.mxu1 %v6676_v40 }
 0x12e   : > { %1557 = vmatpush1.bf16.msra.mxu0 %v5616_v5  ;;  %v6678_v5 = vld [vmem:[#allocation5 + $0x434] ss:$8 sps:$4 sm:$0xff]  }
 0x12f   : > { %1558 = vmatprep.subr.bf16.mxu0 %v5621_v19  ;;  %v5657_v19 = vld [vmem:[#allocation5 + $0x304] ss:$8 sps:$4 sm:$0xff]   ;;  %4966 = vmatprep.subr.bf16.mxu1 %v6678_v5 }
 0x131   : > { %1124 = vmatmul.mubr.bf16.gmra.mrb[24].mxu0 %v6634_v21 }
 0x132   : > { %1133 = vmatprep.mubr.bf16.mxu0 %v7314_v8  ;;  %1559 = vmatpush1.bf16.msra.mxu0 %v5619_v26  ;;  %v6682_v26 = vld [vmem:[#allocation5 + $0x430] ss:$8 sps:$4 sm:$0xff]  }
 0x133   : > { %1560 = vmatprep.subr.bf16.mxu0 %v5624_v27  ;;  %4974 = vmatpush1.bf16.msra.mxu1 %v6682_v26  ;;  %v5731_v27 = vld [vmem:[#allocation3 + $0x98] sm:$0xff] }
 0x136   : > { %1561 = vmatpush1.bf16.msra.mxu0 %v5622_v28  ;;  %v6689_v28 = vld [vmem:[#allocation5 + $0x440] ss:$8 sps:$4 sm:$0xff]  }
 0x137   : > { %1562 = vmatprep.subr.bf16.mxu0 %v5627_v33  ;;  %v6691_v33 = vld [vmem:[#allocation5 + $0x454] ss:$8 sps:$4 sm:$0xff]  }
 0x139   : > { %1134 = vmatmul.mubr.bf16.gmra.mrb[28].mxu0 %v6638_v41 }
 0x13a   : > { %1143 = vmatprep.mubr.bf16.mxu0 %v7314_v8  ;;  %1563 = vmatpush1.bf16.msra.mxu0 %v5625_v10  ;;  %v6695_v10 = vld [vmem:[#allocation5 + $0x450] ss:$8 sps:$4 sm:$0xff]  }
 0x13b   : > { %1564 = vmatprep.subr.bf16.mxu0 %v5630_v17  ;;  %v6702_v17 = vld [vmem:[#allocation5 + $0x460] ss:$8 sps:$4 sm:$0xff]  }
 0x13e   : > { %1565 = vmatpush1.bf16.msra.mxu0 %v5628_v25  ;;  %v6704_v25 = vld [vmem:[#allocation5 + $0x474] ss:$8 sps:$4 sm:$0xff]  }
 0x13f   : > { %1667 = vmatprep.subr.bf16.mxu0 %v5633_v38  ;;  %v5732_v38 = vld [vmem:[#allocation3 + $0xb0] sm:$0xff] }
 0x141   : > { %1144 = vmatmul.mubr.bf16.gmra.mrb[32].mxu0 %v6642_v42 }
 0x142   : > { %1153 = vmatprep.mubr.bf16.mxu0 %v7314_v8 }
 0x149   : > { %1154 = vmatmul.mubr.bf16.gmra.mrb[36].mxu0 %v6646_v45 }
 0x14a   : > { %1566 = vmatprep.mubr.bf16.mxu0 %v6342_v24  ;;  %v5642_v24 = vld [vmem:[#allocation5 + $0x2b4] ss:$8 sps:$4 sm:$0xff]  }
 0x151   : > { %1567 = vmatmul.mubr.bf16.vlgmr.msra.gmra.mrb[0].mxu0 %v6547_v56  ;;  %v535_v56 = vsel %vm6417_vm7, %v487_v51, %v534_v54  ;;  %v5661_v54 = vld [vmem:[#allocation5 + $0x320] ss:$8 sps:$4 sm:$0xff]  }
 0x152   : > { %1668 = vmatpush1.bf16.msra.mxu0 %v5631_v46  ;;  %1576 = vmatprep.mubr.bf16.mxu0 %v5727_v31  ;;  %536 = vst [vmem:[#allocation3 + $0x100] sm:$0xff] %v535_v56  ;;  %v6708_v46 = vld [vmem:[#allocation5 + $0x470] ss:$8 sps:$4 sm:$0xff]  }
 0x153   : > { %1669 = vmatprep.subr.bf16.mxu0 %v5636_v49  ;;  %v5658_v31 = vld [vmem:[#allocation5 + $0x310] ss:$8 sps:$4 sm:$0xff]  }
 0x156   : > { %1670 = vmatpush1.bf16.msra.mxu0 %v5634_v50  ;;  %v5663_v50 = vld [vmem:[#allocation5 + $0x324] ss:$8 sps:$4 sm:$0xff]  }
 0x157   : > { %1671 = vmatprep.subr.bf16.mxu0 %v5639_v20 }
 0x159   : > { %1577 = vmatmul.mubr.bf16.gmra.mrb[4].mxu0 %v6563_v9  ;;  %v573_v15 = vld [vmem:[#allocation3 + $0x100] sm:$0x80]  ;;  %v5729_v9 = vld [vmem:[#allocation3 + $0x68] sm:$0xff] }
 0x15a   : > { %1586 = vmatprep.mubr.bf16.mxu0 %v5728_v58  ;;  %1672 = vmatpush1.bf16.msra.mxu0 %v5637_v52  ;;  %v574_v2 = vsel %vm6488_vm10, 0, %v573_v15  ;;  %v5667_v15 = vld [vmem:[#allocation5 + $0x340] ss:$8 sps:$4 sm:$0xff]  }
 0x15b   : > { %1673 = vmatprep.subr.bf16.mxu0 %v5642_v24  ;;  %575 = vst [vmem:[#allocation3 + $0x100] sm:$0x80] %v574_v2  ;;  %v5666_v24 = vld [vmem:[#allocation5 + $0x334] ss:$8 sps:$4 sm:$0xff]  }
 0x15c   : > { %v5672_v2 = vld [vmem:[#allocation5 + $0x354] ss:$8 sps:$4 sm:$0xff]  }
 0x15e   : > { %1674 = vmatpush1.bf16.msra.mxu0 %v5640_v34  ;;  %v537_v34 = vld [vmem:[#allocation3 + $0x118] sm:$0xff] }
 0x15f   : > { %1675 = vmatprep.subr.bf16.mxu0 %v5645_v22 }
 0x161   : > { %1587 = vmatmul.mubr.bf16.gmra.mrb[8].mxu0 %v6573_v61  ;;  %v5649_v61 = vld [vmem:[#allocation5 + $0x2e0] ss:$8 sps:$4 sm:$0xff]  }
 0x162   : > { %1596 = vmatprep.mubr.bf16.mxu0 %v5729_v9  ;;  %1676 = vmatpush1.bf16.msra.mxu0 %v5643_v60  ;;  %v5664_v60 = vld [vmem:[#allocation5 + $0x330] ss:$8 sps:$4 sm:$0xff]  }
 0x163   : > { %1677 = vmatprep.subr.bf16.mxu0 %v5648_v44  ;;  %v5669_v44 = vld [vmem:[#allocation5 + $0x344] ss:$8 sps:$4 sm:$0xff]  }
 0x166   : > { %1678 = vmatpush1.bf16.msra.mxu0 %v5646_v30 }
 0x167   : > { %1679 = vmatprep.subr.bf16.mxu0 %v5651_v62  ;;  %v5670_v62 = vld [vmem:[#allocation5 + $0x350] ss:$8 sps:$4 sm:$0xff]  }
 0x169   : > { %1597 = vmatmul.mubr.bf16.gmra.mrb[12].mxu0 %v6577_v35  ;;  %v6687_v35 = vld [vmem:[#allocation5 + $0x444] ss:$8 sps:$4 sm:$0xff]  }
 0x16a   : > { %1606 = vmatprep.mubr.bf16.mxu0 %v5730_v13  ;;  %1680 = vmatpush1.bf16.msra.mxu0 %v5649_v61  ;;  %v1245_v61 = vld [vmem:[#allocation3 + $0x100] sm:$0xff] }
 0x16b   : > { %1681 = vmatprep.subr.bf16.mxu0 %v5654_v11  ;;  %4967 = vmatprep.subr.bf16.mxu1 %v6687_v35  ;;  %v5675_v13 = vld [vmem:[#allocation5 + $0x364] ss:$8 sps:$4 sm:$0xff]  }
 0x16c   : > { %4975 = vmatpush1.bf16.msra.mxu1 %v6689_v28 }
 0x16d   : > { %4968 = vmatprep.subr.bf16.mxu1 %v6691_v33 }
 0x16e   : > { %1682 = vmatpush1.bf16.msra.mxu0 %v5652_v18  ;;  %v5673_v18 = vld [vmem:[#allocation5 + $0x360] ss:$8 sps:$4 sm:$0xff]  }
 0x16f   : > { %2159 = vmatprep.subr.bf16.mxu0 %v5657_v19  ;;  %v5676_v19 = vld [vmem:[#allocation5 + $0x370] ss:$8 sps:$4 sm:$0xff]  }
 0x170   : > { %4976 = vmatpush1.bf16.msra.mxu1 %v6695_v10 }
 0x171   : > { %1607 = vmatmul.mubr.bf16.gmra.mrb[16].mxu0 %v6581_v36  ;;  %v6700_v36 = vld [vmem:[#allocation5 + $0x464] ss:$8 sps:$4 sm:$0xff]  }
 0x172   : > { %1616 = vmatprep.mubr.bf16.mxu0 %v5731_v27  ;;  %4969 = vmatprep.subr.bf16.mxu1 %v6700_v36 }
 0x174   : > { %4977 = vmatpush1.bf16.msra.mxu1 %v6702_v17 }
 0x175   : > { %4970 = vmatprep.subr.bf16.mxu1 %v6704_v25 }
 0x178   : > { %4978 = vmatpush1.bf16.msra.mxu1 %v6708_v46 }
 0x179   : > { %1617 = vmatmul.mubr.bf16.gmra.mrb[20].mxu0 %v6585_v37  ;;  %v266_v37 = vld [vmem:[#allocation2 + $0xb0] sm:$0xff] }
 0x17a   : > { %1626 = vmatprep.mubr.bf16.mxu0 %v5732_v38  ;;  %v5681_v38 = vld [vmem:[#allocation5 + $0x384] ss:$8 sps:$4 sm:$0xff]  }
 0x17b   : > { %2345 = vmatmul.mubr.bf16.vlgmr.msra.gmra.mrb[0].mxu1 %v6626_v6 }
 0x17c   : > { %2354 = vmatprep.mubr.bf16.mxu1 %v7314_v8 }
 0x181   : > { %1627 = vmatmul.mubr.bf16.gmra.mrb[24].mxu0 %v6589_v53  ;;  %v267_v53 = vld [vmem:[#allocation2 + $0xb8] sm:$0xff] }
 0x182   : > { %1636 = vmatprep.mubr.bf16.mxu0 %v6436_v16  ;;  %v6724_v16 = vld [vmem:[#allocation3 + $0xf0] sm:$0xff] }
 0x183   : > { %2355 = vmatmul.mubr.bf16.gmra.mrb[4].mxu1 %v6630_v32 }
 0x184   : > { %2364 = vmatprep.mubr.bf16.mxu1 %v7314_v8 }
 0x189   : > { %1637 = vmatmul.mubr.bf16.gmra.mrb[28].mxu0 %v6593_v4  ;;  %v5660_v4 = vld [vmem:[#allocation5 + $0x314] ss:$8 sps:$4 sm:$0xff]  }
 0x18a   : > { %1646 = vmatprep.mubr.bf16.mxu0 %v6449_v1  ;;  %v5655_v1 = vld [vmem:[#allocation5 + $0x300] ss:$8 sps:$4 sm:$0xff]  }
 0x18b   : > { %2365 = vmatmul.mubr.bf16.gmra.mrb[8].mxu1 %v6634_v21 }
 0x18c   : > { %2374 = vmatprep.mubr.bf16.mxu1 %v7314_v8 }
 0x191   : > { %1647 = vmatmul.mubr.bf16.gmra.mrb[32].mxu0 %v6597_v59  ;;  %v6730_v59 = vpack.c.bf16 %v267_v53, %v266_v37  ;;  %v5684_v37 = vld [vmem:[#allocation5 + $0x394] ss:$8 sps:$4 sm:$0xff]   ;;  %v5682_v53 = vld [vmem:[#allocation5 + $0x390] ss:$8 sps:$4 sm:$0xff]  }
 0x192   : > { %1656 = vmatprep.mubr.bf16.mxu0 %v6601_v43 }
 0x193   : > { %2375 = vmatmul.mubr.bf16.gmra.mrb[12].mxu1 %v6638_v41  ;;  %v358_v49 = vshrl.u32 %v6730_v59, 16  ;;  %v361_v0 = vshll.u32 %v6730_v59, 16 }
 0x194   : > { %2384 = vmatprep.mubr.bf16.mxu1 %v7314_v8 }
 0x195   : > { %v360_v20 = vrot.slane %v358_v49, 7  ;;  %v488_v52 = vrot.slane %v361_v0, 1 }
 0x197   : > { %v363_v51 = vor.u32 %v361_v0, %v360_v20  ;;  %v489_v58 = vor.u32 %v488_v52, %v358_v49  ;;  %v5690_v49 = vld [vmem:[#allocation5 + $0x3b4] ss:$8 sps:$4 sm:$0xff]   ;;  %v5694_v0 = vld [vmem:[#allocation5 + $0x3d0] ss:$8 sps:$4 sm:$0xff]  }
 0x198   : > { %v5696_v20 = vld [vmem:[#allocation5 + $0x3d4] ss:$8 sps:$4 sm:$0xff]  }
 0x199   : > { %1657 = vmatmul.mubr.bf16.gmra.mrb[36].mxu0 %v6724_v16  ;;  %v538_v22 = vsel %vm6417_vm7, %v489_v58, %v537_v34  ;;  %v5710_v52 = vld [vmem:[#allocation5 + $0x3f4] ss:$8 sps:$4 sm:$0xff]  }
 0x19a   : > { %1699 = vmatprep.mubr.bf16.mxu0 %v7314_v8  ;;  %539 = vst [vmem:[#allocation3 + $0x118] sm:$0xff] %v538_v22 }
 0x19b   : > { %2385 = vmatmul.mubr.bf16.gmra.mrb[16].mxu1 %v6642_v42 }
 0x19c   : > { %2394 = vmatprep.mubr.bf16.mxu1 %v7314_v8 }
 0x1a1   : > { %1700 = vmatmul.mubr.bf16.vlgmr.msra.gmra.mrb[0].mxu0 %v6610_v47  ;;  %v412_v47 = vld [vmem:[#allocation3 + $0x108] sm:$0xff]  ;;  %v576_v30 = vld [vmem:[#allocation3 + $0x118] sm:$0x80] }
 0x1a2   : > { %2160 = vmatpush1.bf16.msra.mxu0 %v5655_v1  ;;  %1709 = vmatprep.mubr.bf16.mxu0 %v7314_v8  ;;  %v413_v56 = vsel %vm6338_vm2, %v363_v51, %v412_v47  ;;  %v577_v11 = vsel %vm6488_vm10, 0, %v576_v30  ;;  %v5679_v1 = vld [vmem:[#allocation5 + $0x380] ss:$8 sps:$4 sm:$0xff]   ;;  %v5702_v51 = vld [vmem:[#allocation5 + $0x3e4] ss:$8 sps:$4 sm:$0xff]   ;;  %v6766_v47 = vld [vmem:[#allocation3 + $0x30] sm:$0xff] }
 0x1a3   : > { %2161 = vmatprep.subr.bf16.mxu0 %v5660_v4  ;;  %414 = vst [vmem:[#allocation3 + $0x108] sm:$0xff] %v413_v56  ;;  %2395 = vmatmul.mubr.bf16.gmra.mrb[20].mxu1 %v6646_v45  ;;  %578 = vst [vmem:[#allocation3 + $0x118] sm:$0x80] %v577_v11  ;;  %v5685_v4 = vld [vmem:[#allocation5 + $0x3a0] ss:$8 sps:$4 sm:$0xff]  }
 0x1a4   : > { %2404 = vmatprep.mubr.bf16.mxu1 %v7314_v8 }
 0x1a6   : > { %2162 = vmatpush1.bf16.msra.mxu0 %v5658_v31  ;;  %v5688_v31 = vld [vmem:[#allocation5 + $0x3b0] ss:$8 sps:$4 sm:$0xff]  }
 0x1a7   : > { %2163 = vmatprep.subr.bf16.mxu0 %v5663_v50  ;;  %v5693_v50 = vld [vmem:[#allocation5 + $0x3c4] ss:$8 sps:$4 sm:$0xff]  }
 0x1a9   : > { %1710 = vmatmul.mubr.bf16.gmra.mrb[4].mxu0 %v6616_v57 }
 0x1aa   : > { %2164 = vmatpush1.bf16.msra.mxu0 %v5661_v54  ;;  %1719 = vmatprep.mubr.bf16.mxu0 %v7314_v8  ;;  %v451_v9 = vld [vmem:[#allocation3 + $0x108] sm:$0x1]  ;;  %v1870_v27 = vld [vmem:[#allocation3 + $0x118] sm:$0xff] }
 0x1ab   : > { %2165 = vmatprep.subr.bf16.mxu0 %v5666_v24  ;;  %v452_v57 = vsel %vm6372_vm6, 0, %v451_v9  ;;  %2405 = vmatmul.mubr.bf16.gmra.mrb[24].mxu1 %v1245_v61  ;;  %v5708_v54 = vld [vmem:[#allocation5 + $0x3f0] ss:$8 sps:$4 sm:$0xff]  }
 0x1ac   : > { %453 = vst [vmem:[#allocation3 + $0x108] sm:$0x1] %v452_v57  ;;  %2414 = vmatprep.mubr.bf16.mxu1 %v7314_v8  ;;  %v1845_v24 = vld [vmem:[#allocation3 + $0x50] sm:$0xff] }
 0x1ae   : > { %2166 = vmatpush1.bf16.msra.mxu0 %v5664_v60 }
 0x1af   : > { %2167 = vmatprep.subr.bf16.mxu0 %v5669_v44 }
 0x1b1   : > { %1720 = vmatmul.mubr.bf16.gmra.mrb[8].mxu0 %v6622_v63  ;;  %v5678_v63 = vld [vmem:[#allocation5 + $0x374] ss:$8 sps:$4 sm:$0xff]  }
 0x1b2   : > { %2168 = vmatpush1.bf16.msra.mxu0 %v5667_v15  ;;  %1729 = vmatprep.mubr.bf16.mxu0 %v7314_v8 }
 0x1b3   : > { %2169 = vmatprep.subr.bf16.mxu0 %v5672_v2  ;;  %2415 = vmatmul.mubr.bf16.gmra.mrb[28].mxu1 %v1870_v27 }
 0x1b6   : > { %2170 = vmatpush1.bf16.msra.mxu0 %v5670_v62 }
 0x1b7   : > { %2171 = vmatprep.subr.bf16.mxu0 %v5675_v13 }
 0x1b9   : > { %1730 = vmatmul.mubr.bf16.gmra.mrb[12].mxu0 %v6626_v6  ;;  %v5687_v6 = vld [vmem:[#allocation5 + $0x3a4] ss:$8 sps:$4 sm:$0xff]  }
 0x1ba   : > { %1739 = vmatprep.mubr.bf16.mxu0 %v7314_v8  ;;  %2172 = vmatpush1.bf16.msra.mxu0 %v5673_v18 }
 0x1bb   : > { %2173 = vmatprep.subr.bf16.mxu0 %v5678_v63 }
 0x1be   : > { %2174 = vmatpush1.bf16.msra.mxu0 %v5676_v19 }
 0x1bf   : > { %2175 = vmatprep.subr.bf16.mxu0 %v5681_v38 }
 0x1c1   : > { %1740 = vmatmul.mubr.bf16.gmra.mrb[16].mxu0 %v6630_v32  ;;  %v5691_v32 = vld [vmem:[#allocation5 + $0x3c0] ss:$8 sps:$4 sm:$0xff]  }
 0x1c2   : > { %1749 = vmatprep.mubr.bf16.mxu0 %v7314_v8  ;;  %2176 = vmatpush1.bf16.msra.mxu0 %v5679_v1 }
 0x1c3   : > { %2177 = vmatprep.subr.bf16.mxu0 %v5684_v37 }
 0x1c6   : > { %2178 = vmatpush1.bf16.msra.mxu0 %v5682_v53 }
 0x1c7   : > { %2179 = vmatprep.subr.bf16.mxu0 %v5687_v6 }
 0x1c9   : > { %1750 = vmatmul.mubr.bf16.gmra.mrb[20].mxu0 %v6634_v21  ;;  %v5700_v21 = vld [vmem:[#allocation5 + $0x3e0] ss:$8 sps:$4 sm:$0xff]  }
 0x1ca   : > { %1759 = vmatprep.mubr.bf16.mxu0 %v7314_v8  ;;  %2180 = vmatpush1.bf16.msra.mxu0 %v5685_v4 }
 0x1cb   : > { %2181 = vmatprep.subr.bf16.mxu0 %v5690_v49 }
 0x1ce   : > { %2182 = vmatpush1.bf16.msra.mxu0 %v5688_v31 }
 0x1cf   : > { %2183 = vmatprep.subr.bf16.mxu0 %v5693_v50  ;;  %v1165_v50 = vlaneseq }
 0x1d1   : > { %1760 = vmatmul.mubr.bf16.gmra.mrb[24].mxu0 %v6638_v41  ;;  %v1842_v41 = vld [vmem:[#allocation3 + $0x38] sm:$0xff] }
 0x1d2   : > { %1769 = vmatprep.mubr.bf16.mxu0 %v7314_v8  ;;  %2184 = vmatpush1.bf16.msra.mxu0 %v5691_v32  ;;  %v6866_v32 = vshrl.u32 %v1165_v50, 7 }
 0x1d3   : > { %2185 = vmatprep.subr.bf16.mxu0 %v5696_v20 }
 0x1d4   : > { %7345 = vst [vmem:[#allocation28_spill] sm:$0xff] %v6866_v32  ;;  %v7313_v20 = vsub.s32 0, %v6866_v32 }
 0x1d6   : > { %2186 = vmatpush1.bf16.msra.mxu0 %v5694_v0  ;;  %v579_v0 = vld [vmem:[%s7301_s2] sm:$0x3] }
 0x1d7   : > { %2187 = vmatprep.subr.bf16.mxu0 %v5702_v51  ;;  %v7318_v51 = vsub.s32 1, %v6866_v32 }
 0x1d9   : > { %1770 = vmatmul.mubr.bf16.gmra.mrb[28].mxu0 %v6642_v42  ;;  %v6771_v42 = vld [vmem:[#allocation3 + $0x48] sm:$0xff] }
 0x1da   : > { %1779 = vmatprep.mubr.bf16.mxu0 %v7314_v8  ;;  %2188 = vmatpush1.bf16.msra.mxu0 %v5700_v21  ;;  %v6875_v21 = vrot.slane %v579_v0, %v7313_v20 }
 0x1db   : > { %2189 = vmatprep.subr.bf16.mxu0 %v5710_v52  ;;  %v6879_v52 = vrot.slane %v579_v0, %v7318_v51 }
 0x1de   : > { %2190 = vmatpush1.bf16.msra.mxu0 %v5708_v54 }
 0x1df   : > { %2292 = vmatprep.subr.bf16.mxu0 %v6661_v3  ;;  %v6778_v3 = vld [vmem:[#allocation3 + $0x60] sm:$0xff] }
 0x1e1   : > { %1780 = vmatmul.mubr.bf16.gmra.mrb[32].mxu0 %v6646_v45  ;;  %v1848_v45 = vld [vmem:[#allocation3 + $0x68] sm:$0xff] }
 0x1e2   : > { %1789 = vmatprep.mubr.bf16.mxu0 %v7314_v8 }
 0x1e9   : > { %1790 = vmatmul.mubr.bf16.gmra.mrb[36].mxu0 %v1245_v61 }
 0x1ea   : > { %2191 = vmatprep.mubr.bf16.mxu0 %v1842_v41 }
 0x1f1   : > { %2192 = vmatmul.mubr.bf16.vlgmr.msra.gmra.mrb[0].mxu0 %v6766_v47 }
 0x1f2   : > { %2293 = vmatpush1.bf16.msra.mxu0 %v6663_v48  ;;  %2201 = vmatprep.mubr.bf16.mxu0 %v1845_v24  ;;  %v1851_v48 = vld [vmem:[#allocation3 + $0x80] sm:$0xff] }
 0x1f3   : > { %2294 = vmatprep.subr.bf16.mxu0 %v6666_v14  ;;  %v6785_v14 = vld [vmem:[#allocation3 + $0x78] sm:$0xff] }
 0x1f6   : > { %2295 = vmatpush1.bf16.msra.mxu0 %v6669_v7  ;;  %v1854_v7 = vld [vmem:[#allocation3 + $0x98] sm:$0xff] }
 0x1f7   : > { %2296 = vmatprep.subr.bf16.mxu0 %v6674_v12  ;;  %v6792_v12 = vld [vmem:[#allocation3 + $0x90] sm:$0xff] }
 0x1f9   : > { %2202 = vmatmul.mubr.bf16.gmra.mrb[4].mxu0 %v6771_v42 }
 0x1fa   : > { %2211 = vmatprep.mubr.bf16.mxu0 %v1848_v45  ;;  %2297 = vmatpush1.bf16.msra.mxu0 %v6676_v40  ;;  %v1857_v40 = vld [vmem:[#allocation3 + $0xb0] sm:$0xff] }
 0x1fb   : > { %2298 = vmatprep.subr.bf16.mxu0 %v6678_v5  ;;  %v6796_v5 = vld [vmem:[#allocation3 + $0xa8] sm:$0xff] }
 0x1fe   : > { %2299 = vmatpush1.bf16.msra.mxu0 %v6682_v26  ;;  %v1860_v26 = vld [vmem:[#allocation3 + $0xc8] sm:$0xff] }
 0x1ff   : > { %2300 = vmatprep.subr.bf16.mxu0 %v6687_v35  ;;  %v6799_v35 = vld [vmem:[#allocation3 + $0xc0] sm:$0xff] }
 0x200   : > { %7341 = vst [vmem:[#allocation24_spill] sm:$0xff] %v6799_v35 }
 0x201   : > { %2212 = vmatmul.mubr.bf16.gmra.mrb[8].mxu0 %v6778_v3 }
 0x202   : > { %2221 = vmatprep.mubr.bf16.mxu0 %v1851_v48  ;;  %2301 = vmatpush1.bf16.msra.mxu0 %v6689_v28  ;;  %v1863_v28 = vld [vmem:[#allocation3 + $0xe0] sm:$0xff] }
 0x203   : > { %2302 = vmatprep.subr.bf16.mxu0 %v6691_v33  ;;  %v6802_v33 = vld [vmem:[#allocation3 + $0xd8] sm:$0xff] }
 0x204   : > { %7342 = vst [vmem:[#allocation25_spill] sm:$0xff] %v6802_v33 }
 0x206   : > { %2303 = vmatpush1.bf16.msra.mxu0 %v6695_v10  ;;  %v1868_v10 = vld [vmem:[#allocation3 + $0x108] sm:$0xff] }
 0x207   : > { %2304 = vmatprep.subr.bf16.mxu0 %v6700_v36  ;;  %v6809_v36 = vld [vmem:[#allocation3 + $0x40] sm:$0xff] }
 0x209   : > { %2222 = vmatmul.mubr.bf16.gmra.mrb[12].mxu0 %v6785_v14 }
 0x20a   : > { %2231 = vmatprep.mubr.bf16.mxu0 %v1854_v7  ;;  %2305 = vmatpush1.bf16.msra.mxu0 %v6702_v17  ;;  %v6813_v17 = vld [vmem:[#allocation3 + $0x58] sm:$0xff] }
 0x20b   : > { %2306 = vmatprep.subr.bf16.mxu0 %v6704_v25 }
 0x20e   : > { %2307 = vmatpush1.bf16.msra.mxu0 %v6708_v46 }
 0x211   : > { %2232 = vmatmul.mubr.bf16.gmra.mrb[16].mxu0 %v6792_v12 }
 0x212   : > { %2241 = vmatprep.mubr.bf16.mxu0 %v1857_v40 }
 0x219   : > { %2242 = vmatmul.mubr.bf16.gmra.mrb[20].mxu0 %v6796_v5 }
 0x21a   : > { %2251 = vmatprep.mubr.bf16.mxu0 %v1860_v26 }
 0x221   : > { %2252 = vmatmul.mubr.bf16.gmra.mrb[24].mxu0 %v6799_v35 }
 0x222   : > { %2261 = vmatprep.mubr.bf16.mxu0 %v1863_v28 }
 0x229   : > { %2262 = vmatmul.mubr.bf16.gmra.mrb[28].mxu0 %v6802_v33 }
 0x22a   : > { %2271 = vmatprep.mubr.bf16.mxu0 %v6601_v43 }
 0x231   : > { %2272 = vmatmul.mubr.bf16.gmra.mrb[32].mxu0 %v6724_v16 }
 0x232   : > { %2281 = vmatprep.mubr.bf16.mxu0 %v6730_v59 }
 0x239   : > { %2282 = vmatmul.mubr.bf16.gmra.mrb[36].mxu0 %v1868_v10 }
 0x23a   : > { %2324 = vmatprep.mubr.bf16.mxu0 %v7314_v8 }
 0x241   : > { %2325 = vmatmul.mubr.bf16.vlgmr.msra.gmra.mrb[0].mxu0 %v6809_v36 }
 0x242   : > { %2334 = vmatprep.mubr.bf16.mxu0 %v7314_v8 }
 0x249   : > { %2335 = vmatmul.mubr.bf16.gmra.mrb[4].mxu0 %v6813_v17 }
 0x24e   : > { %v2346_v25 = vpop.f32.mrb[0].mxu1 }
 0x24f   : > { %v2348_v43 = vpop.f32.mrb[1].mxu1 }
 0x250   : > { %v2350_v46 = vpop.f32.mrb[2].mxu1 }
 0x251   : > { %v2352_v16 = vpop.f32.mrb[3].mxu1 }
 0x256   : > { %v2356_v56 = vpop.f32.mrb[4].mxu1 }
 0x257   : > { %v2358_v59 = vpop.f32.mrb[5].mxu1 }
 0x258   : > { %v2360_v58 = vpop.f32.mrb[6].mxu1 }
 0x259   : > { %v6816_v34 = vpop.f32.mrb[7].mxu1 }
 0x25e   : > { %v6818_v22 = vpop.f32.mrb[8].mxu1 }
 0x25f   : > { %v6820_v60 = vpop.f32.mrb[9].mxu1 }
 0x260   : > { %v6822_v44 = vpop.f32.mrb[10].mxu1 }
 0x261   : > { %v6824_v15 = vpop.f32.mrb[11].mxu1 }
 0x266   : > { %v6826_v2 = vpop.f32.mrb[12].mxu1 }
 0x267   : > { %v6828_v9 = vpop.f32.mrb[13].mxu1 }
 0x268   : > { %v6830_v57 = vpop.f32.mrb[14].mxu1 }
 0x269   : > { %v6832_v30 = vpop.f32.mrb[15].mxu1 }
 0x26e   : > { %v6834_v62 = vpop.f32.mrb[16].mxu1 }
 0x26f   : > { %v6836_v61 = vpop.f32.mrb[17].mxu1 }
 0x270   : > { %v6838_v11 = vpop.f32.mrb[18].mxu1 }
 0x271   : > { %v6840_v13 = vpop.f32.mrb[19].mxu1 }
 0x276   : > { %v6842_v18 = vpop.f32.mrb[20].mxu1 }
 0x277   : > { %v6844_v63 = vpop.f32.mrb[21].mxu1 }
 0x278   : > { %v6846_v19 = vpop.f32.mrb[22].mxu1 }
 0x279   : > { %v6848_v27 = vpop.f32.mrb[23].mxu1 }
 0x27e   : > { %v6850_v38 = vpop.f32.mrb[24].mxu1 }
 0x27f   : > { %v6852_v1 = vpop.f32.mrb[25].mxu1 }
 0x280   : > { %v6854_v37 = vpop.f32.mrb[26].mxu1 }
 0x281   : > { %v6856_v53 = vpop.f32.mrb[27].mxu1 }
 0x286   : > { %v6858_v6 = vpop.f32.mrb[28].mxu1 }
 0x287   : > { %v6860_v4 = vpop.f32.mrb[29].mxu1 }
 0x288   : > { %v6862_v49 = vpop.f32.mrb[30].mxu1 }
 0x289   : > { %7343 = vst [vmem:[#allocation26_spill] sm:$0xff] %v6862_v49  ;;  %v6864_v31 = vpop.f32.mrb[31].mxu1 }
 0x28a   : > { %7344 = vst [vmem:[#allocation27_spill] sm:$0xff] %v6864_v31 }
 0x2d4   : > { %v2213_v54 = vpop.f32.mrb[8].mxu0 }
 0x2d5   : > { %v4987_v41 = vadd.f32 %v2213_v54, %v6875_v21  ;;  %v2215_v24 = vpop.f32.mrb[9].mxu0 }
 0x2d6   : > { %v4989_v45 = vadd.f32 %v2215_v24, %v6879_v52  ;;  %v2217_v48 = vpop.f32.mrb[10].mxu0 }
 0x2d7   : > { %v4991_v7 = vadd.f32 %v2217_v48, %v6875_v21  ;;  %v4988_v40 = vadd.f32 %v4987_v41, %v2346_v25  ;;  %v2219_v26 = vpop.f32.mrb[11].mxu0 }
 0x2d8   : > { %v4993_v28 = vadd.f32 %v2219_v26, %v6879_v52  ;;  %v4990_v10 = vadd.f32 %v4989_v45, %v2348_v43 }
 0x2d9   : > { %v4992_v50 = vadd.f32 %v4991_v7, %v2350_v46 }
 0x2da   : > { %v2469_v20 = vmax.f32 %v4988_v40, %v4990_v10  ;;  %v4994_v8 = vadd.f32 %v4993_v28, %v2352_v16 }
 0x2dc   : > { %v2470_v32 = vmax.f32 %v4992_v50, %v4994_v8  ;;  %v2223_v0 = vpop.f32.mrb[12].mxu0 }
 0x2dd   : > { %v4995_v51 = vadd.f32 %v2223_v0, %v6875_v21  ;;  %v2225_v33 = vpop.f32.mrb[13].mxu0 }
 0x2de   : > { %v2487_v54 = vpack.c.bf16 %v2470_v32, %v2469_v20  ;;  %v4997_v35 = vadd.f32 %v2225_v33, %v6879_v52  ;;  %v2227_v24 = vpop.f32.mrb[14].mxu0 }
 0x2df   : > { %v4999_v31 = vadd.f32 %v2227_v24, %v6875_v21  ;;  %v4996_v48 = vadd.f32 %v4995_v51, %v2356_v56  ;;  %v2229_v25 = vpop.f32.mrb[15].mxu0 }
 0x2e0   : > { %v2510_v41 = vshrl.u32 %v2487_v54, 16  ;;  %v2513_v49 = vshll.u32 %v2487_v54, 16  ;;  %2637 = vst [vmem:[#allocation3 + $0x38] sm:$0xff] %v2487_v54  ;;  %v5001_v43 = vadd.f32 %v2229_v25, %v6879_v52  ;;  %v4998_v46 = vadd.f32 %v4997_v35, %v2358_v59 }
 0x2e1   : > { %v5000_v16 = vadd.f32 %v4999_v31, %v2360_v58 }
 0x2e2   : > { %v2512_v8 = vrot.slane %v2510_v41, 7  ;;  %v2649_v45 = vrot.slane %v2513_v49, 1  ;;  %v2471_v7 = vmax.f32 %v4996_v48, %v4998_v46  ;;  %v5002_v40 = vadd.f32 %v5001_v43, %v6816_v34 }
 0x2e4   : > { %v2515_v32 = vor.u32 %v2513_v49, %v2512_v8  ;;  %v2650_v20 = vor.u32 %v2649_v45, %v2510_v41  ;;  %v2472_v33 = vmax.f32 %v5000_v16, %v5002_v40  ;;  %v2233_v26 = vpop.f32.mrb[16].mxu0 }
 0x2e5   : > { %v5003_v28 = vadd.f32 %v2233_v26, %v6875_v21  ;;  %v2235_v56 = vpop.f32.mrb[17].mxu0 }
 0x2e6   : > { %v2582_v51 = vsel %vm6338_vm2, %v2515_v32, %v6766_v47  ;;  %v2682_v35 = vsel %vm6417_vm7, %v2650_v20, %v6809_v36  ;;  %v2488_v59 = vpack.c.bf16 %v2472_v33, %v2471_v7  ;;  %v5005_v58 = vadd.f32 %v2235_v56, %v6879_v52  ;;  %v2237_v31 = vpop.f32.mrb[18].mxu0 }
 0x2e7   : > { %2583 = vst [vmem:[#allocation3 + $0x30] sm:$0xff] %v2582_v51  ;;  %2683 = vst [vmem:[#allocation3 + $0x40] sm:$0xff] %v2682_v35  ;;  %v5007_v34 = vadd.f32 %v2237_v31, %v6875_v21  ;;  %v5004_v49 = vadd.f32 %v5003_v28, %v6818_v22  ;;  %v2239_v10 = vpop.f32.mrb[19].mxu0 }
 0x2e8   : > { %v2517_v50 = vshrl.u32 %v2488_v59, 16  ;;  %v2520_v0 = vshll.u32 %v2488_v59, 16  ;;  %2638 = vst [vmem:[#allocation3 + $0x50] sm:$0xff] %v2488_v59  ;;  %v5009_v47 = vadd.f32 %v2239_v10, %v6879_v52  ;;  %v5006_v54 = vadd.f32 %v5005_v58, %v6820_v60 }
 0x2e9   : > { %v5008_v36 = vadd.f32 %v5007_v34, %v6822_v44 }
 0x2ea   : > { %v2519_v24 = vrot.slane %v2517_v50, 7  ;;  %v2651_v48 = vrot.slane %v2520_v0, 1  ;;  %v2473_v25 = vmax.f32 %v5004_v49, %v5006_v54  ;;  %v5010_v41 = vadd.f32 %v5009_v47, %v6824_v15 }
 0x2ec   : > { %v2522_v43 = vor.u32 %v2520_v0, %v2519_v24  ;;  %v2652_v46 = vor.u32 %v2651_v48, %v2517_v50  ;;  %v2474_v16 = vmax.f32 %v5008_v36, %v5010_v41  ;;  %v2243_v8 = vpop.f32.mrb[20].mxu0  ;;  %v2687_v50 = vld [vmem:[#allocation3 + $0x70] sm:$0xff] }
 0x2ed   : > { %v5011_v22 = vadd.f32 %v2243_v8, %v6875_v21  ;;  %v2245_v45 = vpop.f32.mrb[21].mxu0 }
 0x2ee   : > { %v2611_v7 = vld [vmem:[#allocation3 + $0x30] sm:$0x1]  ;;  %v2711_v40 = vld [vmem:[#allocation3 + $0x40] sm:$0x80]  ;;  %v2585_v60 = vsel %vm6338_vm2, %v2522_v43, %v6771_v42  ;;  %v2685_v44 = vsel %vm6417_vm7, %v2652_v46, %v6813_v17  ;;  %v2489_v32 = vpack.c.bf16 %v2474_v16, %v2473_v25  ;;  %v5013_v15 = vadd.f32 %v2245_v45, %v6879_v52  ;;  %v2247_v20 = vpop.f32.mrb[22].mxu0 }
 0x2ef   : > { %v2612_v33 = vsel %vm6372_vm6, 0, %v2611_v7  ;;  %v2712_v26 = vsel %vm6488_vm10, 0, %v2711_v40  ;;  %2586 = vst [vmem:[#allocation3 + $0x48] sm:$0xff] %v2585_v60  ;;  %2686 = vst [vmem:[#allocation3 + $0x58] sm:$0xff] %v2685_v44  ;;  %v5015_v28 = vadd.f32 %v2247_v20, %v6875_v21  ;;  %v5012_v42 = vadd.f32 %v5011_v22, %v6826_v2  ;;  %v2249_v56 = vpop.f32.mrb[23].mxu0 }
 0x2f0   : > { %2613 = vst [vmem:[#allocation3 + $0x30] sm:$0x1] %v2612_v33  ;;  %2713 = vst [vmem:[#allocation3 + $0x40] sm:$0x80] %v2712_v26  ;;  %v2524_v17 = vshrl.u32 %v2489_v32, 16  ;;  %v2527_v51 = vshll.u32 %v2489_v32, 16  ;;  %v5017_v35 = vadd.f32 %v2249_v56, %v6879_v52  ;;  %v5014_v59 = vadd.f32 %v5013_v15, %v6828_v9 }
 0x2f1   : > { %2639 = vst [vmem:[#allocation3 + $0x68] sm:$0xff] %v2489_v32  ;;  %v5016_v58 = vadd.f32 %v5015_v28, %v6830_v57  ;;  %v2690_v26 = vld [vmem:[#allocation3 + $0x88] sm:$0xff] }
 0x2f2   : > { %v2526_v31 = vrot.slane %v2524_v17, 7  ;;  %v2653_v34 = vrot.slane %v2527_v51, 1  ;;  %v2475_v49 = vmax.f32 %v5012_v42, %v5014_v59  ;;  %v5018_v10 = vadd.f32 %v5017_v35, %v6832_v30 }
 0x2f4   : > { %v2529_v0 = vor.u32 %v2527_v51, %v2526_v31  ;;  %v2654_v2 = vor.u32 %v2653_v34, %v2524_v17  ;;  %v2476_v47 = vmax.f32 %v5016_v58, %v5018_v10  ;;  %v2253_v54 = vpop.f32.mrb[24].mxu0 }
 0x2f5   : > { %v5019_v36 = vadd.f32 %v2253_v54, %v6875_v21  ;;  %v2255_v24 = vpop.f32.mrb[25].mxu0 }
 0x2f6   : > { %v2614_v48 = vld [vmem:[#allocation3 + $0x48] sm:$0x1]  ;;  %v2714_v25 = vld [vmem:[#allocation3 + $0x58] sm:$0x80]  ;;  %v2588_v9 = vsel %vm6338_vm2, %v2529_v0, %v6778_v3  ;;  %v2688_v57 = vsel %vm6417_vm7, %v2654_v2, %v2687_v50  ;;  %v2490_v41 = vpack.c.bf16 %v2476_v47, %v2475_v49  ;;  %v5021_v30 = vadd.f32 %v2255_v24, %v6879_v52  ;;  %v2257_v43 = vpop.f32.mrb[26].mxu0 }
 0x2f7   : > { %v2615_v46 = vsel %vm6372_vm6, 0, %v2614_v48  ;;  %v2715_v16 = vsel %vm6488_vm10, 0, %v2714_v25  ;;  %2589 = vst [vmem:[#allocation3 + $0x60] sm:$0xff] %v2588_v9  ;;  %2689 = vst [vmem:[#allocation3 + $0x70] sm:$0xff] %v2688_v57  ;;  %v5023_v8 = vadd.f32 %v2257_v43, %v6875_v21  ;;  %v5020_v22 = vadd.f32 %v5019_v36, %v6834_v62  ;;  %v2259_v3 = vpop.f32.mrb[27].mxu0  ;;  %v2693_v57 = vld [vmem:[#allocation3 + $0xa0] sm:$0xff] }
 0x2f8   : > { %2616 = vst [vmem:[#allocation3 + $0x48] sm:$0x1] %v2615_v46  ;;  %2716 = vst [vmem:[#allocation3 + $0x58] sm:$0x80] %v2715_v16  ;;  %v2531_v45 = vshrl.u32 %v2490_v41, 16  ;;  %v2534_v7 = vshll.u32 %v2490_v41, 16  ;;  %v5025_v40 = vadd.f32 %v2259_v3, %v6879_v52  ;;  %v5022_v60 = vadd.f32 %v5021_v30, %v6836_v61 }
 0x2f9   : > { %2640 = vst [vmem:[#allocation3 + $0x80] sm:$0xff] %v2490_v41  ;;  %v5024_v44 = vadd.f32 %v5023_v8, %v6838_v11 }
 0x2fa   : > { %v2533_v32 = vrot.slane %v2531_v45, 7  ;;  %v2655_v15 = vrot.slane %v2534_v7, 1  ;;  %v2477_v20 = vmax.f32 %v5020_v22, %v5022_v60  ;;  %v5026_v33 = vadd.f32 %v5025_v40, %v6840_v13 }
 0x2fc   : > { %v2536_v28 = vor.u32 %v2534_v7, %v2533_v32  ;;  %v2656_v62 = vor.u32 %v2655_v15, %v2531_v45  ;;  %v2478_v42 = vmax.f32 %v5024_v44, %v5026_v33  ;;  %v2263_v56 = vpop.f32.mrb[28].mxu0 }
 0x2fd   : > { %v5027_v17 = vadd.f32 %v2263_v56, %v6875_v21  ;;  %v2265_v51 = vpop.f32.mrb[29].mxu0 }
 0x2fe   : > { %v2617_v35 = vld [vmem:[#allocation3 + $0x60] sm:$0x1]  ;;  %v2717_v59 = vld [vmem:[#allocation3 + $0x70] sm:$0x80]  ;;  %v2591_v61 = vsel %vm6338_vm2, %v2536_v28, %v6785_v14  ;;  %v2691_v11 = vsel %vm6417_vm7, %v2656_v62, %v2690_v26  ;;  %v2491_v58 = vpack.c.bf16 %v2478_v42, %v2477_v20  ;;  %v5029_v13 = vadd.f32 %v2265_v51, %v6879_v52  ;;  %v2267_v31 = vpop.f32.mrb[30].mxu0 }
 0x2ff   : > { %v2618_v34 = vsel %vm6372_vm6, 0, %v2617_v35  ;;  %v2718_v49 = vsel %vm6488_vm10, 0, %v2717_v59  ;;  %2592 = vst [vmem:[#allocation3 + $0x78] sm:$0xff] %v2591_v61  ;;  %2692 = vst [vmem:[#allocation3 + $0x88] sm:$0xff] %v2691_v11  ;;  %v5031_v10 = vadd.f32 %v2267_v31, %v6875_v21  ;;  %v5028_v50 = vadd.f32 %v5027_v17, %v6842_v18  ;;  %v2269_v14 = vpop.f32.mrb[31].mxu0  ;;  %v2696_v17 = vld [vmem:[#allocation3 + $0xb8] sm:$0xff] }
 0x300   : > { %2619 = vst [vmem:[#allocation3 + $0x60] sm:$0x1] %v2618_v34  ;;  %2719 = vst [vmem:[#allocation3 + $0x70] sm:$0x80] %v2718_v49  ;;  %v2538_v0 = vshrl.u32 %v2491_v58, 16  ;;  %v2541_v2 = vshll.u32 %v2491_v58, 16  ;;  %v5033_v47 = vadd.f32 %v2269_v14, %v6879_v52  ;;  %v5030_v54 = vadd.f32 %v5029_v13, %v6844_v63 }
 0x301   : > { %2641 = vst [vmem:[#allocation3 + $0x98] sm:$0xff] %v2491_v58  ;;  %v5032_v36 = vadd.f32 %v5031_v10, %v6846_v19 }
 0x302   : > { %v2540_v24 = vrot.slane %v2538_v0, 7  ;;  %v2657_v48 = vrot.slane %v2541_v2, 1  ;;  %v2479_v25 = vmax.f32 %v5028_v50, %v5030_v54  ;;  %v5034_v9 = vadd.f32 %v5033_v47, %v6848_v27 }
 0x304   : > { %v2543_v41 = vor.u32 %v2541_v2, %v2540_v24  ;;  %v2658_v18 = vor.u32 %v2657_v48, %v2538_v0  ;;  %v2480_v30 = vmax.f32 %v5032_v36, %v5034_v9  ;;  %v2273_v43 = vpop.f32.mrb[32].mxu0  ;;  %v7346_v36 = vld [vmem:[#allocation26_spill] sm:$0xff] }
 0x305   : > { %v5035_v46 = vadd.f32 %v2273_v43, %v6875_v21  ;;  %v2275_v16 = vpop.f32.mrb[33].mxu0 }
 0x306   : > { %v2620_v8 = vld [vmem:[#allocation3 + $0x78] sm:$0x1]  ;;  %v2720_v22 = vld [vmem:[#allocation3 + $0x88] sm:$0x80]  ;;  %v2594_v63 = vsel %vm6338_vm2, %v2543_v41, %v6792_v12  ;;  %v2694_v19 = vsel %vm6417_vm7, %v2658_v18, %v2693_v57  ;;  %v2492_v3 = vpack.c.bf16 %v2480_v30, %v2479_v25  ;;  %v5037_v27 = vadd.f32 %v2275_v16, %v6879_v52  ;;  %v2277_v45 = vpop.f32.mrb[34].mxu0  ;;  %v2699_v18 = vld [vmem:[#allocation3 + $0xd0] sm:$0xff] }
 0x307   : > { %v2621_v7 = vsel %vm6372_vm6, 0, %v2620_v8  ;;  %v2721_v40 = vsel %vm6488_vm10, 0, %v2720_v22  ;;  %2595 = vst [vmem:[#allocation3 + $0x90] sm:$0xff] %v2594_v63  ;;  %2695 = vst [vmem:[#allocation3 + $0xa0] sm:$0xff] %v2694_v19  ;;  %v5039_v60 = vadd.f32 %v2277_v45, %v6875_v21  ;;  %v5036_v44 = vadd.f32 %v5035_v46, %v6850_v38  ;;  %v2279_v12 = vpop.f32.mrb[35].mxu0  ;;  %v7347_v57 = vld [vmem:[#allocation27_spill] sm:$0xff] }
 0x308   : > { %2622 = vst [vmem:[#allocation3 + $0x78] sm:$0x1] %v2621_v7  ;;  %2722 = vst [vmem:[#allocation3 + $0x88] sm:$0x80] %v2721_v40  ;;  %v2545_v32 = vshrl.u32 %v2492_v3, 16  ;;  %v2548_v15 = vshll.u32 %v2492_v3, 16  ;;  %v5041_v20 = vadd.f32 %v2279_v12, %v6879_v52  ;;  %v5038_v33 = vadd.f32 %v5037_v27, %v6852_v1 }
 0x309   : > { %2642 = vst [vmem:[#allocation3 + $0xb0] sm:$0xff] %v2492_v3  ;;  %v5040_v26 = vadd.f32 %v5039_v60, %v6854_v37  ;;  %v7348_v19 = vld [vmem:[#allocation24_spill] sm:$0xff] }
 0x30a   : > { %v2547_v28 = vrot.slane %v2545_v32, 7  ;;  %v2659_v62 = vrot.slane %v2548_v15, 1  ;;  %v2481_v42 = vmax.f32 %v5036_v44, %v5038_v33  ;;  %v5042_v56 = vadd.f32 %v5041_v20, %v6856_v53 }
 0x30c   : > { %v2550_v51 = vor.u32 %v2548_v15, %v2547_v28  ;;  %v2660_v38 = vor.u32 %v2659_v62, %v2545_v32  ;;  %v2482_v35 = vmax.f32 %v5040_v26, %v5042_v56  ;;  %v2283_v59 = vpop.f32.mrb[36].mxu0 }
 0x30d   : > { %v5043_v61 = vadd.f32 %v2283_v59, %v6875_v21  ;;  %v2285_v11 = vpop.f32.mrb[37].mxu0 }
 0x30e   : > { %v2623_v58 = vld [vmem:[#allocation3 + $0x90] sm:$0x1]  ;;  %v2723_v13 = vld [vmem:[#allocation3 + $0xa0] sm:$0x80]  ;;  %v2597_v1 = vsel %vm6338_vm2, %v2550_v51, %v6796_v5  ;;  %v2697_v37 = vsel %vm6417_vm7, %v2660_v38, %v2696_v17  ;;  %v2493_v31 = vpack.c.bf16 %v2482_v35, %v2481_v42  ;;  %v5045_v53 = vadd.f32 %v2285_v11, %v6879_v52  ;;  %v2287_v34 = vpop.f32.mrb[38].mxu0  ;;  %v2702_v42 = vld [vmem:[#allocation3 + $0xe8] sm:$0xff] }
 0x30f   : > { %v2624_v49 = vsel %vm6372_vm6, 0, %v2623_v58  ;;  %v2724_v10 = vsel %vm6488_vm10, 0, %v2723_v13  ;;  %2598 = vst [vmem:[#allocation3 + $0xa8] sm:$0xff] %v2597_v1  ;;  %2698 = vst [vmem:[#allocation3 + $0xb8] sm:$0xff] %v2697_v37  ;;  %v5047_v50 = vadd.f32 %v2287_v34, %v6875_v21  ;;  %v5044_v14 = vadd.f32 %v5043_v61, %v6858_v6  ;;  %v2289_v5 = vpop.f32.mrb[39].mxu0  ;;  %v7349_v58 = vld [vmem:[#allocation25_spill] sm:$0xff] }
 0x310   : > { %2625 = vst [vmem:[#allocation3 + $0x90] sm:$0x1] %v2624_v49  ;;  %2725 = vst [vmem:[#allocation3 + $0xa0] sm:$0x80] %v2724_v10  ;;  %v2552_v0 = vshrl.u32 %v2493_v31, 16  ;;  %v2555_v2 = vshll.u32 %v2493_v31, 16  ;;  %v5049_v47 = vadd.f32 %v2289_v5, %v6879_v52  ;;  %v5046_v54 = vadd.f32 %v5045_v53, %v6860_v4 }
 0x311   : > { %2643 = vst [vmem:[#allocation3 + $0xc8] sm:$0xff] %v2493_v31  ;;  %v5048_v24 = vadd.f32 %v5047_v50, %v7346_v36 }
 0x312   : > { %v2554_v48 = vrot.slane %v2552_v0, 7  ;;  %v2661_v25 = vrot.slane %v2555_v2, 1  ;;  %v2483_v9 = vmax.f32 %v5044_v14, %v5046_v54  ;;  %v5050_v41 = vadd.f32 %v5049_v47, %v7347_v57  ;;  %v2675_v47 = vld [vmem:[#allocation3 + $0x10] sm:$0xff] }
 0x314   : > { %v2557_v30 = vor.u32 %v2555_v2, %v2554_v48  ;;  %v2662_v6 = vor.u32 %v2661_v25, %v2552_v0  ;;  %v2484_v43 = vmax.f32 %v5048_v24, %v5050_v41  ;;  %v2326_v46 = vpop.f32.mrb[0].mxu0  ;;  %v2575_v2 = vld [vmem:[#allocation3] sm:$0xff] }
 0x315   : > { %v4979_v16 = vadd.f32 %v2326_v46, %v6875_v21  ;;  %v2328_v8 = vpop.f32.mrb[1].mxu0 }
 0x316   : > { %v2626_v22 = vld [vmem:[#allocation3 + $0xa8] sm:$0x1]  ;;  %v2726_v63 = vld [vmem:[#allocation3 + $0xb8] sm:$0x80]  ;;  %v2600_v4 = vsel %vm6338_vm2, %v2557_v30, %v7348_v19  ;;  %v2700_v3 = vsel %vm6417_vm7, %v2662_v6, %v2699_v18  ;;  %v2494_v27 = vpack.c.bf16 %v2484_v43, %v2483_v9  ;;  %v4980_v45 = vadd.f32 %v2328_v8, %v6879_v52  ;;  %v2330_v7 = vpop.f32.mrb[2].mxu0 }
 0x317   : > { %v2627_v40 = vsel %vm6372_vm6, 0, %v2626_v22  ;;  %v2727_v60 = vsel %vm6488_vm10, 0, %v2726_v63  ;;  %2601 = vst [vmem:[#allocation3 + $0xc0] sm:$0xff] %v2600_v4  ;;  %2701 = vst [vmem:[#allocation3 + $0xd0] sm:$0xff] %v2700_v3  ;;  %v4981_v44 = vadd.f32 %v2330_v7, %v6875_v21  ;;  %v2332_v12 = vpop.f32.mrb[3].mxu0  ;;  %v2578_v8 = vld [vmem:[#allocation3 + $0x18] sm:$0xff] }
 0x318   : > { %2628 = vst [vmem:[#allocation3 + $0xa8] sm:$0x1] %v2627_v40  ;;  %2728 = vst [vmem:[#allocation3 + $0xb8] sm:$0x80] %v2727_v60  ;;  %v2559_v32 = vshrl.u32 %v2494_v27, 16  ;;  %v2562_v15 = vshll.u32 %v2494_v27, 16  ;;  %v2465_v20 = vmax.f32 %v4979_v16, %v4980_v45  ;;  %v4982_v33 = vadd.f32 %v2332_v12, %v6879_v52 }
 0x319   : > { %2644 = vst [vmem:[#allocation3 + $0xe0] sm:$0xff] %v2494_v27  ;;  %v2678_v22 = vld [vmem:[#allocation3 + $0x28] sm:$0xff] }
 0x31a   : > { %v2561_v26 = vrot.slane %v2559_v32, 7  ;;  %v2663_v28 = vrot.slane %v2562_v15, 1  ;;  %v2466_v62 = vmax.f32 %v4981_v44, %v4982_v33 }
 0x31c   : > { %v2564_v56 = vor.u32 %v2562_v15, %v2561_v26  ;;  %v2664_v17 = vor.u32 %v2663_v28, %v2559_v32  ;;  %v2485_v51 = vpack.c.bf16 %v2466_v62, %v2465_v20  ;;  %v2336_v38 = vpop.f32.mrb[4].mxu0 }
 0x31d   : > { %v4983_v35 = vadd.f32 %v2336_v38, %v6875_v21  ;;  %v2338_v59 = vpop.f32.mrb[5].mxu0 }
 0x31e   : > { %v2629_v61 = vld [vmem:[#allocation3 + $0xc0] sm:$0x1]  ;;  %v2729_v11 = vld [vmem:[#allocation3 + $0xd0] sm:$0x80]  ;;  %v2603_v13 = vsel %vm6338_vm2, %v2564_v56, %v7349_v58  ;;  %v2703_v1 = vsel %vm6417_vm7, %v2664_v17, %v2702_v42  ;;  %v2496_v37 = vshrl.u32 %v2485_v51, 16  ;;  %v2499_v31 = vshll.u32 %v2485_v51, 16 }
 0x31f   : > { %2635 = vst [vmem:[#allocation3 + $0x8] sm:$0xff] %v2485_v51  ;;  %v2630_v53 = vsel %vm6372_vm6, 0, %v2629_v61  ;;  %v2730_v34 = vsel %vm6488_vm10, 0, %v2729_v11  ;;  %2604 = vst [vmem:[#allocation3 + $0xd8] sm:$0xff] %v2603_v13  ;;  %v4984_v49 = vadd.f32 %v2338_v59, %v6879_v52  ;;  %v2340_v10 = vpop.f32.mrb[6].mxu0 }
 0x320   : > { %2704 = vst [vmem:[#allocation3 + $0xe8] sm:$0xff] %v2703_v1  ;;  %2631 = vst [vmem:[#allocation3 + $0xc0] sm:$0x1] %v2630_v53  ;;  %v2498_v50 = vrot.slane %v2496_v37, 7  ;;  %v2645_v14 = vrot.slane %v2499_v31, 1  ;;  %v4985_v5 = vadd.f32 %v2340_v10, %v6875_v21  ;;  %v2342_v0 = vpop.f32.mrb[7].mxu0 }
 0x321   : > { %2731 = vst [vmem:[#allocation3 + $0xd0] sm:$0x80] %v2730_v34  ;;  %v2467_v54 = vmax.f32 %v4983_v35, %v4984_v49  ;;  %v4986_v36 = vadd.f32 %v2342_v0, %v6879_v52  ;;  %2740 = vst [vmem:[#allocation3 + $0x8] sm:$0xff] (!%p4807_p3), %v6141_v23 }
 0x322   : > { %v2501_v24 = vor.u32 %v2499_v31, %v2498_v50  ;;  %v2646_v48 = vor.u32 %v2645_v14, %v2496_v37 }
 0x323   : > { %v2468_v25 = vmax.f32 %v4985_v5, %v4986_v36 }
 0x324   : > { %v2576_v9 = vsel %vm6338_vm2, %v2501_v24, %v2575_v2  ;;  %v2676_v57 = vsel %vm6417_vm7, %v2646_v48, %v2675_v47 }
 0x325   : > { %2577 = vst [vmem:[#allocation3] sm:$0xff] %v2576_v9  ;;  %2677 = vst [vmem:[#allocation3 + $0x10] sm:$0xff] %v2676_v57  ;;  %v2486_v41 = vpack.c.bf16 %v2468_v25, %v2467_v54 }
 0x326   : > { %v2632_v18 = vld [vmem:[#allocation3 + $0xd8] sm:$0x1] }
 0x327   : > { %v2732_v21 = vld [vmem:[#allocation3 + $0xe8] sm:$0x80]  ;;  %v2633_v30 = vsel %vm6372_vm6, 0, %v2632_v18  ;;  %v2503_v6 = vshrl.u32 %v2486_v41, 16  ;;  %v2506_v43 = vshll.u32 %v2486_v41, 16  ;;  %2636 = vst [vmem:[#allocation3 + $0x20] sm:$0xff] %v2486_v41 }
 0x328   : > { %v2733_v52 = vsel %vm6488_vm10, 0, %v2732_v21  ;;  %2634 = vst [vmem:[#allocation3 + $0xd8] sm:$0x1] %v2633_v30 }
 0x329   : > { %2734 = vst [vmem:[#allocation3 + $0xe8] sm:$0x80] %v2733_v52  ;;  %v2505_v46 = vrot.slane %v2503_v6, 7  ;;  %v2647_v16 = vrot.slane %v2506_v43, 1 }
 0x32b   : > { %v2508_v63 = vor.u32 %v2506_v43, %v2505_v46  ;;  %v2648_v19 = vor.u32 %v2647_v16, %v2503_v6 }
 0x32c   : > { %v2605_v4 = vld [vmem:[#allocation3] sm:$0x1]  ;;  %v2705_v3 = vld [vmem:[#allocation3 + $0x10] sm:$0x80] }
 0x32d   : > { %v2606_v27 = vsel %vm6372_vm6, 0, %v2605_v4  ;;  %v2706_v45 = vsel %vm6488_vm10, 0, %v2705_v3  ;;  %v2579_v7 = vsel %vm6338_vm2, %v2508_v63, %v2578_v8  ;;  %v2679_v40 = vsel %vm6417_vm7, %v2648_v19, %v2678_v22 }
 0x32e   : > { %2607 = vst [vmem:[#allocation3] sm:$0x1] %v2606_v27  ;;  %2707 = vst [vmem:[#allocation3 + $0x10] sm:$0x80] %v2706_v45 }
 0x32f   : > { %2580 = vst [vmem:[#allocation3 + $0x18] sm:$0xff] %v2579_v7  ;;  %2680 = vst [vmem:[#allocation3 + $0x28] sm:$0xff] %v2679_v40 }
 0x330   : > { %2739 = vst [vmem:[#allocation3] sm:$0xff] (!%p4807_p3), %v6141_v23  ;;  %2741 = vst [vmem:[#allocation3 + $0x10] sm:$0xff] (!%p4807_p3), %v6141_v23 }
 0x332   : > { %2738 = sbr.rel (%p4807_p3) target bundleno = 825 (0x339), region = 52 }
 0x336   : > { %v2608_v60 = vld [vmem:[#allocation3 + $0x18] sm:$0x1]  ;;  %v2708_v44 = vld [vmem:[#allocation3 + $0x28] sm:$0x80] }
 0x337   : > { %v2609_v12 = vsel %vm6372_vm6, 0, %v2608_v60  ;;  %v2709_v32 = vsel %vm6488_vm10, 0, %v2708_v44 }
 0x338   : > { %2610 = vst [vmem:[#allocation3 + $0x18] sm:$0x1] %v2609_v12  ;;  %2710 = vst [vmem:[#allocation3 + $0x28] sm:$0x80] %v2709_v32 }
 0x339 PF: > { %p4808_p8 = scmp.ne.s32.totalorder %s6117_s21, 1 }
 0x33a   : > { %v6142_v29 = vmov (!%p4808_p8), 0  }
 0x33b   : > { %2745 = sbr.rel (%p4808_p8) target bundleno = 834 (0x342), region = 56  ;;  %2747 = vst [vmem:[#allocation3 + $0xd8] sm:$0xff] (!%p4808_p8), %v6142_v29  ;;  %2748 = vst [vmem:[#allocation3 + $0xe0] sm:$0xff] (!%p4808_p8), %v6142_v29 }
 0x33c   : > { %2749 = vst [vmem:[#allocation3 + $0xe8] sm:$0xff] (!%p4808_p8), %v6142_v29 }
 0x342 PF: > { %v5733_v55 = vld [vmem:[#allocation8 + $0x4] ss:$8 sps:$4 sm:$0xff]   ;;  %v5735_v39 = vld [vmem:[#allocation8] ss:$8 sps:$4 sm:$0xff]   ;;  %v5736_v15 = vld [vmem:[#allocation8 + $0x14] ss:$8 sps:$4 sm:$0xff]  }
 0x343   : > { %3063 = vmatprep.subr.bf16.mxu1 %v5733_v55  ;;  %v5738_v20 = vld [vmem:[#allocation8 + $0x10] ss:$8 sps:$4 sm:$0xff]   ;;  %v5739_v33 = vld [vmem:[#allocation8 + $0x24] ss:$8 sps:$4 sm:$0xff]   ;;  %v5741_v26 = vld [vmem:[#allocation8 + $0x20] ss:$8 sps:$4 sm:$0xff]  }
 0x344   : > { %3064 = vmatpush1.bf16.msra.mxu1 %v5735_v39  ;;  %v5742_v28 = vld [vmem:[#allocation8 + $0x34] ss:$8 sps:$4 sm:$0xff]   ;;  %v5744_v62 = vld [vmem:[#allocation8 + $0x30] ss:$8 sps:$4 sm:$0xff]   ;;  %v5745_v42 = vld [vmem:[#allocation8 + $0x44] ss:$8 sps:$4 sm:$0xff]  }
 0x345   : > { %3065 = vmatprep.subr.bf16.mxu1 %v5736_v15  ;;  %v5747_v56 = vld [vmem:[#allocation8 + $0x40] ss:$8 sps:$4 sm:$0xff]   ;;  %v5748_v17 = vld [vmem:[#allocation8 + $0x54] ss:$8 sps:$4 sm:$0xff]   ;;  %v5750_v51 = vld [vmem:[#allocation8 + $0x50] ss:$8 sps:$4 sm:$0xff]  }
 0x346   : > { %v5751_v38 = vld [vmem:[#allocation8 + $0x64] ss:$8 sps:$4 sm:$0xff]   ;;  %v5753_v59 = vld [vmem:[#allocation8 + $0x60] ss:$8 sps:$4 sm:$0xff]   ;;  %v5754_v61 = vld [vmem:[#allocation8 + $0x74] ss:$8 sps:$4 sm:$0xff]  }
 0x347   : > { %v2752_v35 = vld [vmem:[#allocation3 + $0x8] sm:$0xff]  ;;  %v5756_v11 = vld [vmem:[#allocation8 + $0x70] ss:$8 sps:$4 sm:$0xff]   ;;  %v5760_v1 = vld [vmem:[#allocation8 + $0x94] ss:$8 sps:$4 sm:$0xff]   ;;  %v7350_v39 = vmov 0  }
 0x348   : > { %3066 = vmatpush1.bf16.msra.mxu1 %v5738_v20  ;;  %3095 = vmatprep.mubr.bf16.mxu1 %v2752_v35  ;;  %v5757_v58 = vld [vmem:[#allocation8 + $0x84] ss:$8 sps:$4 sm:$0xff]   ;;  %v5759_v13 = vld [vmem:[#allocation8 + $0x80] ss:$8 sps:$4 sm:$0xff]   ;;  %v5762_v37 = vld [vmem:[#allocation8 + $0x90] ss:$8 sps:$4 sm:$0xff]  }
 0x349   : > { %3067 = vmatprep.subr.bf16.mxu1 %v5739_v33  ;;  %v5763_v31 = vld [vmem:[#allocation8 + $0xa4] ss:$8 sps:$4 sm:$0xff]   ;;  %v5765_v53 = vld [vmem:[#allocation8 + $0xa0] ss:$8 sps:$4 sm:$0xff]   ;;  %v5766_v34 = vld [vmem:[#allocation8 + $0xb4] ss:$8 sps:$4 sm:$0xff]  }
 0x34a   : > { %v5768_v49 = vld [vmem:[#allocation8 + $0xb0] ss:$8 sps:$4 sm:$0xff]   ;;  %v5769_v10 = vld [vmem:[#allocation8 + $0xc4] ss:$8 sps:$4 sm:$0xff]   ;;  %v5771_v50 = vld [vmem:[#allocation8 + $0xc0] ss:$8 sps:$4 sm:$0xff]  }
 0x34b   : > { %v5772_v14 = vld [vmem:[#allocation8 + $0xd4] ss:$8 sps:$4 sm:$0xff]   ;;  %v5774_v5 = vld [vmem:[#allocation8 + $0xd0] ss:$8 sps:$4 sm:$0xff]   ;;  %v5775_v0 = vld [vmem:[#allocation8 + $0xe4] ss:$8 sps:$4 sm:$0xff]  }
 0x34c   : > { %3068 = vmatpush1.bf16.msra.mxu1 %v5741_v26  ;;  %v5777_v2 = vld [vmem:[#allocation8 + $0xe0] ss:$8 sps:$4 sm:$0xff]   ;;  %v5778_v47 = vld [vmem:[#allocation8 + $0xf4] ss:$8 sps:$4 sm:$0xff]   ;;  %v5780_v54 = vld [vmem:[#allocation8 + $0xf0] ss:$8 sps:$4 sm:$0xff]  }
 0x34d   : > { %3069 = vmatprep.subr.bf16.mxu1 %v5742_v28  ;;  %v5783_v36 = vld [vmem:[#allocation8 + $0x104] ss:$8 sps:$4 sm:$0xff]   ;;  %v5781_v48 = vld [vmem:[#allocation8 + $0x100] ss:$8 sps:$4 sm:$0xff]   ;;  %v5786_v9 = vld [vmem:[#allocation8 + $0x114] ss:$8 sps:$4 sm:$0xff]  }
 0x34e   : > { %v2751_v24 = vld [vmem:[#allocation3] sm:$0xff]  ;;  %v5784_v57 = vld [vmem:[#allocation8 + $0x110] ss:$8 sps:$4 sm:$0xff]   ;;  %v5792_v52 = vld [vmem:[#allocation8 + $0x134] ss:$8 sps:$4 sm:$0xff]   ;;  %s4962_s27 = sshll.u32 %s6117_s21, 4 }
 0x34f   : > { %v7038_v25 = vld [vmem:[#allocation3 + $0x20] sm:$0xff]  ;;  %v7041_v18 = vld [vmem:[#allocation3 + $0x18] sm:$0xff]  ;;  %v7047_v46 = vld [vmem:[#allocation3 + $0x30] sm:$0xff]  ;;  %s4956_s6 = sshll.u32 %s6121_s22, 5  ;;  %s4554_s22 = sshll.u32 %s6329_s13, 4  ;;  %s7241_s22 = int_to_ptr.vmem [resolvable:$true] %s4554_s22 }
 0x350   : > { %3070 = vmatpush1.bf16.msra.mxu1 %v5744_v62  ;;  %v5789_v41 = vld [vmem:[#allocation8 + $0x124] ss:$8 sps:$4 sm:$0xff]   ;;  %v5787_v21 = vld [vmem:[#allocation8 + $0x120] ss:$8 sps:$4 sm:$0xff]   ;;  %v7043_v30 = vld [vmem:[#allocation3 + $0x38] sm:$0xff]  ;;  %s4551_s9 = sadd.s32 %s4962_s27, %s4956_s6  ;;  %s7247_s14 = scalar_lea.sflag [#allocation7], %s218_s23 }
 0x351   : > { %3071 = vmatprep.subr.bf16.mxu1 %v5745_v42  ;;  %v5790_v6 = vld [vmem:[#allocation8 + $0x130] ss:$8 sps:$4 sm:$0xff]   ;;  %v5795_v43 = vld [vmem:[#allocation8 + $0x144] ss:$8 sps:$4 sm:$0xff]   ;;  %v5793_v16 = vld [vmem:[#allocation8 + $0x140] ss:$8 sps:$4 sm:$0xff]  }
 0x352   : > { %v7049_v8 = vld [vmem:[#allocation3 + $0x50] sm:$0xff]  ;;  %v5801_v19 = vld [vmem:[#allocation8 + $0x164] ss:$8 sps:$4 sm:$0xff]   ;;  %v5799_v3 = vld [vmem:[#allocation8 + $0x160] ss:$8 sps:$4 sm:$0xff]   ;;  %s4957_s21 = sshll.u32 %s4551_s9, 7 }
 0x353   : > { %v5798_v22 = vld [vmem:[#allocation8 + $0x154] ss:$8 sps:$4 sm:$0xff]   ;;  %v5796_v63 = vld [vmem:[#allocation8 + $0x150] ss:$8 sps:$4 sm:$0xff]   ;;  %v7053_v4 = vld [vmem:[#allocation3 + $0x48] sm:$0xff]  ;;  %s7239_s10 = scalar_lea.hbm %s7304_s5, %s4957_s21  ;;  %s6029_s15 = scalar_lea.vmem %s7241_s22, 2048 }
 0x354   : > { %3072 = vmatpush1.bf16.msra.mxu1 %v5747_v56  ;;  %v7055_v27 = vld [vmem:[#allocation3 + $0x68] sm:$0xff]  ;;  %v5804_v45 = vld [vmem:[#allocation8 + $0x174] ss:$8 sps:$4 sm:$0xff]   ;;  %v5802_v7 = vld [vmem:[#allocation8 + $0x170] ss:$8 sps:$4 sm:$0xff]   ;;  %p6030_p0 = scmp.ne.s32.totalorder %s7241_s22, %s6029_s15  ;;  %p7354_p2 = scmp.ne.s32.totalorder %s7324_s7, 0 }
 0x355   : > { %3073 = vmatprep.subr.bf16.mxu1 %v5748_v17  ;;  %v5807_v40 = vld [vmem:[#allocation8 + $0x184] ss:$8 sps:$4 sm:$0xff]   ;;  %v7065_v12 = vld [vmem:[#allocation3 + $0x78] sm:$0xff]  ;;  %v7071_v23 = vld [vmem:[#allocation3 + $0x90] sm:$0xff]  ;;  %s6143_s24 = smov [#allocation10]  }
 0x356   : > { %v7059_v60 = vld [vmem:[#allocation3 + $0x60] sm:$0xff]  ;;  %v7067_v32 = vld [vmem:[#allocation3 + $0x98] sm:$0xff]  ;;  %v7073_v29 = vld [vmem:[#allocation3 + $0xb0] sm:$0xff]  ;;  %p6031_p10 = pnand %p6030_p0, %p7354_p2  ;;  %s6033_s29 = sshll.u32 %s6143_s24, 4  ;;  %s6034_s29 = int_to_ptr.vmem [resolvable:$false] %s6033_s29 }
 0x357   : > { %v7061_v44 = vld [vmem:[#allocation3 + $0x80] sm:$0xff]  ;;  %v7077_v55 = vld [vmem:[#allocation3 + $0xa8] sm:$0xff]  ;;  %v2753_v15 = vld [vmem:[#allocation3 + $0x10] sm:$0xff]  ;;  %s6035_s28 = scalar_lea.vmem %s6034_s29, 4096  ;;  %p6036_p1 = scmp.lt.s32.totalorder %s7241_s22, %s6034_s29 }
 0x358   : > { %3074 = vmatpush1.bf16.msra.mxu1 %v5750_v51  ;;  %v5805_v20 = vld [vmem:[#allocation8 + $0x180] ss:$8 sps:$4 sm:$0xff]   ;;  %v5810_v33 = vld [vmem:[#allocation8 + $0x194] ss:$8 sps:$4 sm:$0xff]   ;;  %v5808_v26 = vld [vmem:[#allocation8 + $0x190] ss:$8 sps:$4 sm:$0xff]   ;;  %p6032_p12 = pneg %p6031_p10  ;;  %p6037_p4 = scmp.lt.s32.totalorder %s6035_s28, %s6029_s15 }
 0x359   : > { %3075 = vmatprep.subr.bf16.mxu1 %v5751_v38  ;;  %v5813_v28 = vld [vmem:[#allocation8 + $0x1a4] ss:$8 sps:$4 sm:$0xff]   ;;  %v5811_v42 = vld [vmem:[#allocation8 + $0x1a0] ss:$8 sps:$4 sm:$0xff]   ;;  %v5816_v56 = vld [vmem:[#allocation8 + $0x1b4] ss:$8 sps:$4 sm:$0xff]  }
 0x35a   : > { %v7082_v62 = vld [vmem:[#allocation3 + $0x28] sm:$0xff]  ;;  %v5814_v17 = vld [vmem:[#allocation8 + $0x1b0] ss:$8 sps:$4 sm:$0xff]   ;;  %v7086_v38 = vld [vmem:[#allocation3 + $0x40] sm:$0xff]  ;;  %p6038_p5 = por %p6037_p4, %p6036_p1 }
 0x35b   : > { %v5819_v51 = vld [vmem:[#allocation8 + $0x1c4] ss:$8 sps:$4 sm:$0xff]   ;;  %v5817_v35 = vld [vmem:[#allocation8 + $0x1c0] ss:$8 sps:$4 sm:$0xff]  }
 0x35c   : > { %3076 = vmatpush1.bf16.msra.mxu1 %v5753_v59  ;;  %v5822_v59 = vld [vmem:[#allocation8 + $0x1d4] ss:$8 sps:$4 sm:$0xff]   ;;  %p6039_p6 = pnand %p6038_p5, %p6032_p12 }
 0x35d   : > { %3077 = vmatprep.subr.bf16.mxu1 %v5754_v61  ;;  %v5820_v61 = vld [vmem:[#allocation8 + $0x1d0] ss:$8 sps:$4 sm:$0xff]  }
 0x360   : > { %3078 = vmatpush1.bf16.msra.mxu1 %v5756_v11  ;;  %v5825_v11 = vld [vmem:[#allocation8 + $0x1e4] ss:$8 sps:$4 sm:$0xff]  }
 0x361   : > { %3079 = vmatprep.subr.bf16.mxu1 %v5757_v58  ;;  %v7090_v58 = vld [vmem:[#allocation3 + $0x58] sm:$0xff] }
 0x364   : > { %3080 = vmatpush1.bf16.msra.mxu1 %v5759_v13  ;;  %v5823_v13 = vld [vmem:[#allocation8 + $0x1e0] ss:$8 sps:$4 sm:$0xff]  }
 0x365   : > { %3081 = vmatprep.subr.bf16.mxu1 %v5760_v1  ;;  %v5828_v1 = vld [vmem:[#allocation8 + $0x1f4] ss:$8 sps:$4 sm:$0xff]  }
 0x368   : > { %3082 = vmatpush1.bf16.msra.mxu1 %v5762_v37  ;;  %v5826_v37 = vld [vmem:[#allocation8 + $0x1f0] ss:$8 sps:$4 sm:$0xff]  }
 0x369   : > { %3083 = vmatprep.subr.bf16.mxu1 %v5763_v31  ;;  %v5831_v31 = vld [vmem:[#allocation8 + $0x204] ss:$8 sps:$4 sm:$0xff]  }
 0x36c   : > { %3084 = vmatpush1.bf16.msra.mxu1 %v5765_v53  ;;  %v7094_v53 = vld [vmem:[#allocation3 + $0x70] sm:$0xff] }
 0x36d   : > { %3085 = vmatprep.subr.bf16.mxu1 %v5766_v34  ;;  %v5829_v34 = vld [vmem:[#allocation8 + $0x200] ss:$8 sps:$4 sm:$0xff]  }
 0x370   : > { %3086 = vmatpush1.bf16.msra.mxu1 %v5768_v49  ;;  %v5834_v49 = vld [vmem:[#allocation8 + $0x214] ss:$8 sps:$4 sm:$0xff]  }
 0x371   : > { %3087 = vmatprep.subr.bf16.mxu1 %v5769_v10  ;;  %v5832_v10 = vld [vmem:[#allocation8 + $0x210] ss:$8 sps:$4 sm:$0xff]  }
 0x374   : > { %3088 = vmatpush1.bf16.msra.mxu1 %v5771_v50  ;;  %v5837_v50 = vld [vmem:[#allocation8 + $0x224] ss:$8 sps:$4 sm:$0xff]  }
 0x375   : > { %3089 = vmatprep.subr.bf16.mxu1 %v5772_v14  ;;  %v7098_v14 = vld [vmem:[#allocation3 + $0x88] sm:$0xff] }
 0x378   : > { %3090 = vmatpush1.bf16.msra.mxu1 %v5774_v5  ;;  %v5835_v5 = vld [vmem:[#allocation8 + $0x220] ss:$8 sps:$4 sm:$0xff]  }
 0x379   : > { %3091 = vmatprep.subr.bf16.mxu1 %v5775_v0  ;;  %v5840_v0 = vld [vmem:[#allocation8 + $0x234] ss:$8 sps:$4 sm:$0xff]  }
 0x37c   : > { %3092 = vmatpush1.bf16.msra.mxu1 %v5777_v2  ;;  %v5838_v2 = vld [vmem:[#allocation8 + $0x230] ss:$8 sps:$4 sm:$0xff]  }
 0x37d   : > { %3093 = vmatprep.subr.bf16.mxu1 %v5778_v47  ;;  %v5843_v47 = vld [vmem:[#allocation8 + $0x244] ss:$8 sps:$4 sm:$0xff]  }
 0x380   : > { %3094 = vmatpush1.bf16.msra.mxu1 %v5780_v54  ;;  %v7102_v54 = vld [vmem:[#allocation3 + $0xa0] sm:$0xff] }
 0x381   : > { %3176 = vmatprep.subr.bf16.mxu1 %v5783_v36  ;;  %v5841_v36 = vld [vmem:[#allocation8 + $0x240] ss:$8 sps:$4 sm:$0xff]  }
 0x383   : > { %3096 = vmatmul.mubr.bf16.vlgmr.msra.gmra.mrb[32].mxu1 %v2751_v24  ;;  %v5846_v24 = vld [vmem:[#allocation8 + $0x254] ss:$8 sps:$4 sm:$0xff]  }
 0x384   : > { %3177 = vmatpush1.bf16.msra.mxu1 %v5781_v48  ;;  %3105 = vmatprep.mubr.bf16.mxu1 %v7038_v25  ;;  %v5844_v48 = vld [vmem:[#allocation8 + $0x250] ss:$8 sps:$4 sm:$0xff]  }
 0x385   : > { %3178 = vmatprep.subr.bf16.mxu1 %v5786_v9  ;;  %v5849_v9 = vld [vmem:[#allocation8 + $0x264] ss:$8 sps:$4 sm:$0xff]  }
 0x388   : > { %3179 = vmatpush1.bf16.msra.mxu1 %v5784_v57  ;;  %v7106_v57 = vld [vmem:[#allocation3 + $0xb8] sm:$0xff] }
 0x389   : > { %3180 = vmatprep.subr.bf16.mxu1 %v5789_v41  ;;  %v5847_v41 = vld [vmem:[#allocation8 + $0x260] ss:$8 sps:$4 sm:$0xff]  }
 0x38b   : > { %3106 = vmatmul.mubr.bf16.gmra.mrb[36].mxu1 %v7041_v18 }
 0x38c   : > { %3115 = vmatprep.mubr.bf16.mxu1 %v7043_v30  ;;  %3181 = vmatpush1.bf16.msra.mxu1 %v5787_v21  ;;  %v5852_v21 = vld [vmem:[#allocation8 + $0x274] ss:$8 sps:$4 sm:$0xff]  }
 0x38d   : > { %3182 = vmatprep.subr.bf16.mxu1 %v5792_v52  ;;  %v5850_v52 = vld [vmem:[#allocation8 + $0x270] ss:$8 sps:$4 sm:$0xff]  }
 0x390   : > { %3183 = vmatpush1.bf16.msra.mxu1 %v5790_v6  ;;  %v5855_v6 = vld [vmem:[#allocation8 + $0x284] ss:$8 sps:$4 sm:$0xff]  }
 0x391   : > { %3184 = vmatprep.subr.bf16.mxu1 %v5795_v43  ;;  %v5853_v43 = vld [vmem:[#allocation8 + $0x280] ss:$8 sps:$4 sm:$0xff]  }
 0x393   : > { %3116 = vmatmul.mubr.bf16.gmra.mrb[40].mxu1 %v7047_v46 }
 0x394   : > { %3125 = vmatprep.mubr.bf16.mxu1 %v7049_v8  ;;  %3185 = vmatpush1.bf16.msra.mxu1 %v5793_v16  ;;  %v5858_v16 = vld [vmem:[#allocation8 + $0x294] ss:$8 sps:$4 sm:$0xff]  }
 0x395   : > { %3186 = vmatprep.subr.bf16.mxu1 %v5798_v22  ;;  %v5856_v22 = vld [vmem:[#allocation8 + $0x290] ss:$8 sps:$4 sm:$0xff]  }
 0x398   : > { %3187 = vmatpush1.bf16.msra.mxu1 %v5796_v63  ;;  %v5861_v63 = vld [vmem:[#allocation8 + $0x2a4] ss:$8 sps:$4 sm:$0xff]  }
 0x399   : > { %3188 = vmatprep.subr.bf16.mxu1 %v5801_v19  ;;  %v5859_v19 = vld [vmem:[#allocation8 + $0x2a0] ss:$8 sps:$4 sm:$0xff]  }
 0x39b   : > { %3126 = vmatmul.mubr.bf16.gmra.mrb[44].mxu1 %v7053_v4 }
 0x39c   : > { %3135 = vmatprep.mubr.bf16.mxu1 %v7055_v27  ;;  %3189 = vmatpush1.bf16.msra.mxu1 %v5799_v3  ;;  %v5864_v3 = vld [vmem:[#allocation8 + $0x2b4] ss:$8 sps:$4 sm:$0xff]  }
 0x39d   : > { %3190 = vmatprep.subr.bf16.mxu1 %v5804_v45  ;;  %v5867_v45 = vld [vmem:[#allocation8 + $0x2c4] ss:$8 sps:$4 sm:$0xff]  }
 0x3a0   : > { %3191 = vmatpush1.bf16.msra.mxu1 %v5802_v7  ;;  %v5870_v7 = vld [vmem:[#allocation8 + $0x2d4] ss:$8 sps:$4 sm:$0xff]  }
 0x3a1   : > { %3644 = vmatprep.subr.bf16.mxu1 %v5807_v40  ;;  %v5868_v40 = vld [vmem:[#allocation8 + $0x2d0] ss:$8 sps:$4 sm:$0xff]  }
 0x3a3   : > { %3136 = vmatmul.mubr.bf16.gmra.mrb[48].mxu1 %v7059_v60 }
 0x3a4   : > { %3145 = vmatprep.mubr.bf16.mxu1 %v7061_v44 }
 0x3ab   : > { %3146 = vmatmul.mubr.bf16.gmra.mrb[52].mxu1 %v7065_v12 }
 0x3ac   : > { %3155 = vmatprep.mubr.bf16.mxu1 %v7067_v32 }
 0x3b3   : > { %3156 = vmatmul.mubr.bf16.gmra.mrb[56].mxu1 %v7071_v23 }
 0x3b4   : > { %3165 = vmatprep.mubr.bf16.mxu1 %v7073_v29 }
 0x3bb   : > { %3166 = vmatmul.mubr.bf16.gmra.mrb[60].mxu1 %v7077_v55 }
 0x3bc   : > { %3208 = vmatprep.mubr.bf16.mxu1 %v7350_v39 }
 0x3c3   : > { %3209 = vmatmul.mubr.bf16.vlgmr.msra.gmra.mrb[32].mxu1 %v2753_v15  ;;  %v5873_v15 = vld [vmem:[#allocation8 + $0x2e4] ss:$8 sps:$4 sm:$0xff]  }
 0x3c4   : > { %3645 = vmatpush1.bf16.msra.mxu1 %v5805_v20  ;;  %3218 = vmatprep.mubr.bf16.mxu1 %v7350_v39  ;;  %v5871_v20 = vld [vmem:[#allocation8 + $0x2e0] ss:$8 sps:$4 sm:$0xff]  }
 0x3c5   : > { %3646 = vmatprep.subr.bf16.mxu1 %v5810_v33  ;;  %v5876_v33 = vld [vmem:[#allocation8 + $0x2f4] ss:$8 sps:$4 sm:$0xff]  }
 0x3c8   : > { %3647 = vmatpush1.bf16.msra.mxu1 %v5808_v26  ;;  %v5874_v26 = vld [vmem:[#allocation8 + $0x2f0] ss:$8 sps:$4 sm:$0xff]  }
 0x3c9   : > { %3648 = vmatprep.subr.bf16.mxu1 %v5813_v28  ;;  %v5879_v28 = vld [vmem:[#allocation8 + $0x304] ss:$8 sps:$4 sm:$0xff]  }
 0x3cb   : > { %3219 = vmatmul.mubr.bf16.gmra.mrb[36].mxu1 %v7082_v62 }
 0x3cc   : > { %3649 = vmatpush1.bf16.msra.mxu1 %v5811_v42  ;;  %3228 = vmatprep.mubr.bf16.mxu1 %v7350_v39  ;;  %v7122_v42 = vld [vmem:[#allocation3 + $0xc8] sm:$0xff] }
 0x3cd   : > { %3650 = vmatprep.subr.bf16.mxu1 %v5816_v56  ;;  %v7126_v56 = vld [vmem:[#allocation3 + $0xc0] sm:$0xff] }
 0x3d0   : > { %3651 = vmatpush1.bf16.msra.mxu1 %v5814_v17  ;;  %v5877_v17 = vld [vmem:[#allocation8 + $0x300] ss:$8 sps:$4 sm:$0xff]  }
 0x3d1   : > { %3652 = vmatprep.subr.bf16.mxu1 %v5819_v51  ;;  %v5882_v51 = vld [vmem:[#allocation8 + $0x314] ss:$8 sps:$4 sm:$0xff]  }
 0x3d3   : > { %3229 = vmatmul.mubr.bf16.gmra.mrb[40].mxu1 %v7086_v38 }
 0x3d4   : > { %3653 = vmatpush1.bf16.msra.mxu1 %v5817_v35  ;;  %3238 = vmatprep.mubr.bf16.mxu1 %v7350_v39  ;;  %v5880_v35 = vld [vmem:[#allocation8 + $0x310] ss:$8 sps:$4 sm:$0xff]  }
 0x3d5   : > { %3654 = vmatprep.subr.bf16.mxu1 %v5822_v59  ;;  %v5885_v59 = vld [vmem:[#allocation8 + $0x324] ss:$8 sps:$4 sm:$0xff]  }
 0x3d8   : > { %3655 = vmatpush1.bf16.msra.mxu1 %v5820_v61  ;;  %v5883_v61 = vld [vmem:[#allocation8 + $0x320] ss:$8 sps:$4 sm:$0xff]  }
 0x3d9   : > { %3656 = vmatprep.subr.bf16.mxu1 %v5825_v11  ;;  %v5888_v11 = vld [vmem:[#allocation8 + $0x334] ss:$8 sps:$4 sm:$0xff]  }
 0x3db   : > { %3239 = vmatmul.mubr.bf16.gmra.mrb[44].mxu1 %v7090_v58 }
 0x3dc   : > { %3657 = vmatpush1.bf16.msra.mxu1 %v5823_v13  ;;  %3248 = vmatprep.mubr.bf16.mxu1 %v7350_v39  ;;  %v5886_v13 = vld [vmem:[#allocation8 + $0x330] ss:$8 sps:$4 sm:$0xff]  }
 0x3dd   : > { %3658 = vmatprep.subr.bf16.mxu1 %v5828_v1  ;;  %v5891_v1 = vld [vmem:[#allocation8 + $0x344] ss:$8 sps:$4 sm:$0xff]  }
 0x3e0   : > { %3659 = vmatpush1.bf16.msra.mxu1 %v5826_v37  ;;  %v5894_v37 = vld [vmem:[#allocation8 + $0x354] ss:$8 sps:$4 sm:$0xff]  }
 0x3e1   : > { %3660 = vmatprep.subr.bf16.mxu1 %v5831_v31  ;;  %v5892_v31 = vld [vmem:[#allocation8 + $0x350] ss:$8 sps:$4 sm:$0xff]  }
 0x3e3   : > { %3249 = vmatmul.mubr.bf16.gmra.mrb[48].mxu1 %v7094_v53 }
 0x3e4   : > { %3661 = vmatpush1.bf16.msra.mxu1 %v5829_v34  ;;  %3258 = vmatprep.mubr.bf16.mxu1 %v7350_v39  ;;  %v5897_v34 = vld [vmem:[#allocation8 + $0x364] ss:$8 sps:$4 sm:$0xff]  }
 0x3e5   : > { %3662 = vmatprep.subr.bf16.mxu1 %v5834_v49  ;;  %v5895_v49 = vld [vmem:[#allocation8 + $0x360] ss:$8 sps:$4 sm:$0xff]  }
 0x3e8   : > { %3663 = vmatpush1.bf16.msra.mxu1 %v5832_v10  ;;  %v5900_v10 = vld [vmem:[#allocation8 + $0x374] ss:$8 sps:$4 sm:$0xff]  }
 0x3e9   : > { %3664 = vmatprep.subr.bf16.mxu1 %v5837_v50  ;;  %v5898_v50 = vld [vmem:[#allocation8 + $0x370] ss:$8 sps:$4 sm:$0xff]  }
 0x3eb   : > { %3259 = vmatmul.mubr.bf16.gmra.mrb[52].mxu1 %v7098_v14 }
 0x3ec   : > { %3665 = vmatpush1.bf16.msra.mxu1 %v5835_v5  ;;  %3268 = vmatprep.mubr.bf16.mxu1 %v7350_v39  ;;  %v5903_v5 = vld [vmem:[#allocation8 + $0x384] ss:$8 sps:$4 sm:$0xff]  }
 0x3ed   : > { %3666 = vmatprep.subr.bf16.mxu1 %v5840_v0  ;;  %v5901_v0 = vld [vmem:[#allocation8 + $0x380] ss:$8 sps:$4 sm:$0xff]  }
 0x3f0   : > { %3667 = vmatpush1.bf16.msra.mxu1 %v5838_v2  ;;  %v5906_v2 = vld [vmem:[#allocation8 + $0x394] ss:$8 sps:$4 sm:$0xff]  }
 0x3f1   : > { %3668 = vmatprep.subr.bf16.mxu1 %v5843_v47  ;;  %v5904_v47 = vld [vmem:[#allocation8 + $0x390] ss:$8 sps:$4 sm:$0xff]  }
 0x3f3   : > { %3269 = vmatmul.mubr.bf16.gmra.mrb[56].mxu1 %v7102_v54 }
 0x3f4   : > { %3669 = vmatpush1.bf16.msra.mxu1 %v5841_v36  ;;  %3278 = vmatprep.mubr.bf16.mxu1 %v7350_v39  ;;  %v5909_v36 = vld [vmem:[#allocation8 + $0x3a4] ss:$8 sps:$4 sm:$0xff]  }
 0x3f5   : > { %3670 = vmatprep.subr.bf16.mxu1 %v5846_v24  ;;  %v5907_v24 = vld [vmem:[#allocation8 + $0x3a0] ss:$8 sps:$4 sm:$0xff]  }
 0x3f8   : > { %3671 = vmatpush1.bf16.msra.mxu1 %v5844_v48  ;;  %v5912_v48 = vld [vmem:[#allocation8 + $0x3b4] ss:$8 sps:$4 sm:$0xff]  }
 0x3f9   : > { %3672 = vmatprep.subr.bf16.mxu1 %v5849_v9  ;;  %v5910_v9 = vld [vmem:[#allocation8 + $0x3b0] ss:$8 sps:$4 sm:$0xff]  }
 0x3fb   : > { %3279 = vmatmul.mubr.bf16.gmra.mrb[60].mxu1 %v7106_v57 }
 0x3fc   : > { %3673 = vmatpush1.bf16.msra.mxu1 %v5847_v41  ;;  %3676 = vmatprep.mubr.bf16.mxu1 %v7038_v25  ;;  %v5862_v25 = vld [vmem:[#allocation8 + $0x2b0] ss:$8 sps:$4 sm:$0xff]   ;;  %v5915_v41 = vld [vmem:[#allocation8 + $0x3c4] ss:$8 sps:$4 sm:$0xff]  }
 0x3fd   : > { %3674 = vmatprep.subr.bf16.mxu1 %v5852_v21  ;;  %v5913_v21 = vld [vmem:[#allocation8 + $0x3c0] ss:$8 sps:$4 sm:$0xff]  }
 0x400   : > { %3675 = vmatpush1.bf16.msra.mxu1 %v5850_v52  ;;  %v5918_v52 = vld [vmem:[#allocation8 + $0x3d4] ss:$8 sps:$4 sm:$0xff]  }
 0x401   : > { %3757 = vmatprep.subr.bf16.mxu1 %v5855_v6  ;;  %v5916_v6 = vld [vmem:[#allocation8 + $0x3d0] ss:$8 sps:$4 sm:$0xff]  }
 0x403   : > { %3677 = vmatmul.mubr.bf16.vlgmr.msra.gmra.mrb[32].mxu1 %v7041_v18  ;;  %v5865_v18 = vld [vmem:[#allocation8 + $0x2c0] ss:$8 sps:$4 sm:$0xff]  }
 0x404   : > { %3758 = vmatpush1.bf16.msra.mxu1 %v5853_v43  ;;  %3686 = vmatprep.mubr.bf16.mxu1 %v7043_v30  ;;  %v5921_v43 = vld [vmem:[#allocation8 + $0x3e4] ss:$8 sps:$4 sm:$0xff]  }
 0x405   : > { %3759 = vmatprep.subr.bf16.mxu1 %v5858_v16  ;;  %v7144_v16 = vld [vmem:[#allocation3 + $0xd0] sm:$0xff] }
 0x408   : > { %3760 = vmatpush1.bf16.msra.mxu1 %v5856_v22  ;;  %v5919_v22 = vld [vmem:[#allocation8 + $0x3e0] ss:$8 sps:$4 sm:$0xff]  }
 0x409   : > { %3761 = vmatprep.subr.bf16.mxu1 %v5861_v63  ;;  %v5924_v63 = vld [vmem:[#allocation8 + $0x3f4] ss:$8 sps:$4 sm:$0xff]  }
 0x40b   : > { %3687 = vmatmul.mubr.bf16.gmra.mrb[36].mxu1 %v7047_v46 }
 0x40c   : > { %3696 = vmatprep.mubr.bf16.mxu1 %v7049_v8  ;;  %3762 = vmatpush1.bf16.msra.mxu1 %v5859_v19  ;;  %v5922_v19 = vld [vmem:[#allocation8 + $0x3f0] ss:$8 sps:$4 sm:$0xff]  }
 0x40d   : > { %3763 = vmatprep.subr.bf16.mxu1 %v5864_v3  ;;  %v5927_v3 = vld [vmem:[#allocation8 + $0x404] ss:$8 sps:$4 sm:$0xff]  }
 0x410   : > { %3764 = vmatpush1.bf16.msra.mxu1 %v5862_v25  ;;  %v5925_v25 = vld [vmem:[#allocation8 + $0x400] ss:$8 sps:$4 sm:$0xff]  }
 0x411   : > { %3765 = vmatprep.subr.bf16.mxu1 %v5867_v45  ;;  %v5930_v45 = vld [vmem:[#allocation8 + $0x414] ss:$8 sps:$4 sm:$0xff]  }
 0x413   : > { %3697 = vmatmul.mubr.bf16.gmra.mrb[40].mxu1 %v7053_v4 }
 0x414   : > { %3706 = vmatprep.mubr.bf16.mxu1 %v7055_v27  ;;  %3766 = vmatpush1.bf16.msra.mxu1 %v5865_v18  ;;  %v5928_v18 = vld [vmem:[#allocation8 + $0x410] ss:$8 sps:$4 sm:$0xff]  }
 0x415   : > { %3767 = vmatprep.subr.bf16.mxu1 %v5870_v7  ;;  %v5933_v7 = vld [vmem:[#allocation8 + $0x424] ss:$8 sps:$4 sm:$0xff]  }
 0x418   : > { %3768 = vmatpush1.bf16.msra.mxu1 %v5868_v40  ;;  %v5931_v40 = vld [vmem:[#allocation8 + $0x420] ss:$8 sps:$4 sm:$0xff]  }
 0x419   : > { %3769 = vmatprep.subr.bf16.mxu1 %v5873_v15  ;;  %v5936_v15 = vld [vmem:[#allocation8 + $0x434] ss:$8 sps:$4 sm:$0xff]  }
 0x41b   : > { %3707 = vmatmul.mubr.bf16.gmra.mrb[44].mxu1 %v7059_v60 }
 0x41c   : > { %3716 = vmatprep.mubr.bf16.mxu1 %v7061_v44  ;;  %3770 = vmatpush1.bf16.msra.mxu1 %v5871_v20  ;;  %v5939_v20 = vld [vmem:[#allocation8 + $0x444] ss:$8 sps:$4 sm:$0xff]  }
 0x41d   : > { %3771 = vmatprep.subr.bf16.mxu1 %v5876_v33  ;;  %v5942_v33 = vld [vmem:[#allocation8 + $0x454] ss:$8 sps:$4 sm:$0xff]  }
 0x420   : > { %3772 = vmatpush1.bf16.msra.mxu1 %v5874_v26  ;;  %v5945_v26 = vld [vmem:[#allocation8 + $0x464] ss:$8 sps:$4 sm:$0xff]  }
 0x421   : > { %4214 = vmatprep.subr.bf16.mxu1 %v5879_v28  ;;  %v5946_v28 = vld [vmem:[#allocation8 + $0x470] ss:$8 sps:$4 sm:$0xff]  }
 0x423   : > { %3717 = vmatmul.mubr.bf16.gmra.mrb[48].mxu1 %v7065_v12 }
 0x424   : > { %3726 = vmatprep.mubr.bf16.mxu1 %v7067_v32 }
 0x42b   : > { %3727 = vmatmul.mubr.bf16.gmra.mrb[52].mxu1 %v7071_v23 }
 0x42c   : > { %3736 = vmatprep.mubr.bf16.mxu1 %v7073_v29 }
 0x433   : > { %3737 = vmatmul.mubr.bf16.gmra.mrb[56].mxu1 %v7077_v55 }
 0x434   : > { %3746 = vmatprep.mubr.bf16.mxu1 %v7122_v42 }
 0x43b   : > { %3747 = vmatmul.mubr.bf16.gmra.mrb[60].mxu1 %v7126_v56 }
 0x43c   : > { %3789 = vmatprep.mubr.bf16.mxu1 %v7350_v39 }
 0x443   : > { %3790 = vmatmul.mubr.bf16.vlgmr.msra.gmra.mrb[32].mxu1 %v7082_v62  ;;  %v5889_v62 = vld [vmem:[#allocation8 + $0x340] ss:$8 sps:$4 sm:$0xff]  }
 0x444   : > { %4215 = vmatpush1.bf16.msra.mxu1 %v5877_v17  ;;  %3799 = vmatprep.mubr.bf16.mxu1 %v7350_v39 }
 0x445   : > { %4216 = vmatprep.subr.bf16.mxu1 %v5882_v51 }
 0x448   : > { %4217 = vmatpush1.bf16.msra.mxu1 %v5880_v35 }
 0x449   : > { %4218 = vmatprep.subr.bf16.mxu1 %v5885_v59  ;;  %v4490_v59 = vld [vmem:[#allocation2 + $0x28] sm:$0xff] }
 0x44b   : > { %3800 = vmatmul.mubr.bf16.gmra.mrb[36].mxu1 %v7086_v38 }
 0x44c   : > { %4219 = vmatpush1.bf16.msra.mxu1 %v5883_v61  ;;  %3809 = vmatprep.mubr.bf16.mxu1 %v7350_v39 }
 0x44d   : > { %4220 = vmatprep.subr.bf16.mxu1 %v5888_v11 }
 0x450   : > { %4221 = vmatpush1.bf16.msra.mxu1 %v5886_v13 }
 0x451   : > { %4222 = vmatprep.subr.bf16.mxu1 %v5891_v1 }
 0x453   : > { %3810 = vmatmul.mubr.bf16.gmra.mrb[40].mxu1 %v7090_v58 }
 0x454   : > { %4223 = vmatpush1.bf16.msra.mxu1 %v5889_v62  ;;  %3819 = vmatprep.mubr.bf16.mxu1 %v7350_v39 }
 0x455   : > { %4224 = vmatprep.subr.bf16.mxu1 %v5894_v37 }
 0x458   : > { %4225 = vmatpush1.bf16.msra.mxu1 %v5892_v31 }
 0x459   : > { %4226 = vmatprep.subr.bf16.mxu1 %v5897_v34 }
 0x45b   : > { %3820 = vmatmul.mubr.bf16.gmra.mrb[44].mxu1 %v7094_v53 }
 0x45c   : > { %4227 = vmatpush1.bf16.msra.mxu1 %v5895_v49  ;;  %3829 = vmatprep.mubr.bf16.mxu1 %v7350_v39  ;;  %v4491_v49 = vld [vmem:[#allocation2 + $0x30] sm:$0xff] }
 0x45d   : > { %4228 = vmatprep.subr.bf16.mxu1 %v5900_v10 }
 0x460   : > { %4229 = vmatpush1.bf16.msra.mxu1 %v5898_v50 }
 0x461   : > { %4230 = vmatprep.subr.bf16.mxu1 %v5903_v5 }
 0x463   : > { %3830 = vmatmul.mubr.bf16.gmra.mrb[48].mxu1 %v7098_v14 }
 0x464   : > { %4231 = vmatpush1.bf16.msra.mxu1 %v5901_v0  ;;  %3839 = vmatprep.mubr.bf16.mxu1 %v7350_v39 }
 0x465   : > { %4232 = vmatprep.subr.bf16.mxu1 %v5906_v2  ;;  %v4492_v2 = vld [vmem:[#allocation2 + $0x38] sm:$0xff] }
 0x468   : > { %4233 = vmatpush1.bf16.msra.mxu1 %v5904_v47 }
 0x469   : > { %4234 = vmatprep.subr.bf16.mxu1 %v5909_v36 }
 0x46b   : > { %3840 = vmatmul.mubr.bf16.gmra.mrb[52].mxu1 %v7102_v54 }
 0x46c   : > { %4235 = vmatpush1.bf16.msra.mxu1 %v5907_v24  ;;  %3849 = vmatprep.mubr.bf16.mxu1 %v7350_v39 }
 0x46d   : > { %4236 = vmatprep.subr.bf16.mxu1 %v5912_v48 }
 0x470   : > { %4237 = vmatpush1.bf16.msra.mxu1 %v5910_v9 }
 0x471   : > { %4238 = vmatprep.subr.bf16.mxu1 %v5915_v41 }
 0x473   : > { %3850 = vmatmul.mubr.bf16.gmra.mrb[56].mxu1 %v7106_v57 }
 0x474   : > { %4239 = vmatpush1.bf16.msra.mxu1 %v5913_v21  ;;  %3859 = vmatprep.mubr.bf16.mxu1 %v7350_v39 }
 0x475   : > { %4240 = vmatprep.subr.bf16.mxu1 %v5918_v52 }
 0x478   : > { %4241 = vmatpush1.bf16.msra.mxu1 %v5916_v6  ;;  %v4493_v6 = vld [vmem:[#allocation2 + $0x40] sm:$0xff] }
 0x479   : > { %4242 = vmatprep.subr.bf16.mxu1 %v5921_v43 }
 0x47b   : > { %3860 = vmatmul.mubr.bf16.gmra.mrb[60].mxu1 %v7144_v16 }
 0x47c   : > { %4243 = vmatpush1.bf16.msra.mxu1 %v5919_v22  ;;  %4246 = vmatprep.mubr.bf16.mxu1 %v7043_v30  ;;  %v5934_v30 = vld [vmem:[#allocation8 + $0x430] ss:$8 sps:$4 sm:$0xff]  }
 0x47d   : > { %4244 = vmatprep.subr.bf16.mxu1 %v5924_v63 }
 0x480   : > { %4245 = vmatpush1.bf16.msra.mxu1 %v5922_v19  ;;  %v4494_v19 = vld [vmem:[#allocation2 + $0x48] sm:$0xff] }
 0x481   : > { %4327 = vmatprep.subr.bf16.mxu1 %v5927_v3 }
 0x483   : > { %4247 = vmatmul.mubr.bf16.vlgmr.msra.gmra.mrb[32].mxu1 %v7047_v46  ;;  %v5937_v46 = vld [vmem:[#allocation8 + $0x440] ss:$8 sps:$4 sm:$0xff]  }
 0x484   : > { %4328 = vmatpush1.bf16.msra.mxu1 %v5925_v25  ;;  %4256 = vmatprep.mubr.bf16.mxu1 %v7049_v8  ;;  %v5940_v8 = vld [vmem:[#allocation8 + $0x450] ss:$8 sps:$4 sm:$0xff]  }
 0x485   : > { %4329 = vmatprep.subr.bf16.mxu1 %v5930_v45 }
 0x488   : > { %4330 = vmatpush1.bf16.msra.mxu1 %v5928_v18 }
 0x489   : > { %4331 = vmatprep.subr.bf16.mxu1 %v5933_v7 }
 0x48b   : > { %4257 = vmatmul.mubr.bf16.gmra.mrb[36].mxu1 %v7053_v4  ;;  %v5943_v4 = vld [vmem:[#allocation8 + $0x460] ss:$8 sps:$4 sm:$0xff]  }
 0x48c   : > { %4266 = vmatprep.mubr.bf16.mxu1 %v7055_v27  ;;  %4332 = vmatpush1.bf16.msra.mxu1 %v5931_v40  ;;  %v5948_v27 = vld [vmem:[#allocation8 + $0x474] ss:$8 sps:$4 sm:$0xff]  }
 0x48d   : > { %4333 = vmatprep.subr.bf16.mxu1 %v5936_v15 }
 0x490   : > { %4334 = vmatpush1.bf16.msra.mxu1 %v5934_v30 }
 0x491   : > { %4335 = vmatprep.subr.bf16.mxu1 %v5939_v20  ;;  %v4495_v20 = vld [vmem:[#allocation2 + $0x50] sm:$0xff] }
 0x493   : > { %4267 = vmatmul.mubr.bf16.gmra.mrb[40].mxu1 %v7059_v60  ;;  %v3924_v60 = vld [vmem:[#allocation3 + $0xe0] sm:$0xff] }
 0x494   : > { %4276 = vmatprep.mubr.bf16.mxu1 %v7061_v44  ;;  %4336 = vmatpush1.bf16.msra.mxu1 %v5937_v46  ;;  %v3923_v44 = vld [vmem:[#allocation3 + $0xd8] sm:$0xff] }
 0x495   : > { %4337 = vmatprep.subr.bf16.mxu1 %v5942_v33 }
 0x498   : > { %4338 = vmatpush1.bf16.msra.mxu1 %v5940_v8 }
 0x499   : > { %4339 = vmatprep.subr.bf16.mxu1 %v5945_v26 }
 0x49b   : > { %4277 = vmatmul.mubr.bf16.gmra.mrb[44].mxu1 %v7065_v12  ;;  %v3925_v12 = vld [vmem:[#allocation3 + $0xe8] sm:$0xff] }
 0x49c   : > { %4286 = vmatprep.mubr.bf16.mxu1 %v7067_v32  ;;  %4340 = vmatpush1.bf16.msra.mxu1 %v5943_v4  ;;  %v2750_v32 = vld [vmem:[%s7303_s4] sm:$0x3]  ;;  %v4496_v4 = vld [vmem:[#allocation2 + $0x58] sm:$0xff] }
 0x49d   : > { %4341 = vmatprep.subr.bf16.mxu1 %v5948_v27 }
 0x4a0   : > { %4342 = vmatpush1.bf16.msra.mxu1 %v5946_v28 }
 0x4a3   : > { %4287 = vmatmul.mubr.bf16.gmra.mrb[48].mxu1 %v7071_v23  ;;  %v7351_v23 = vld [vmem:[#allocation28_spill] sm:$0xff] }
 0x4a4   : > { %4296 = vmatprep.mubr.bf16.mxu1 %v7073_v29  ;;  %v7352_v29 = vsub.s32 0, %v7351_v23 }
 0x4ab   : > { %4297 = vmatmul.mubr.bf16.gmra.mrb[52].mxu1 %v7077_v55  ;;  %v7181_v55 = vrot.slane %v2750_v32, %v7352_v29 }
 0x4ac   : > { %4306 = vmatprep.mubr.bf16.mxu1 %v7122_v42  ;;  %v4489_v42 = vld [vmem:[#allocation2 + $0x20] sm:$0xff] }
 0x4b3   : > { %4307 = vmatmul.mubr.bf16.gmra.mrb[56].mxu1 %v7126_v56 }
 0x4b4   : > { %4316 = vmatprep.mubr.bf16.mxu1 %v3924_v60 }
 0x4bb   : > { %4317 = vmatmul.mubr.bf16.gmra.mrb[60].mxu1 %v3923_v44 }
 0x4bc   : > { %4359 = vmatprep.mubr.bf16.mxu1 %v7350_v39 }
 0x4c3   : > { %4360 = vmatmul.mubr.bf16.vlgmr.msra.gmra.mrb[32].mxu1 %v7086_v38  ;;  %v7353_v38 = vsub.s32 1, %v7351_v23 }
 0x4c4   : > { %4369 = vmatprep.mubr.bf16.mxu1 %v7350_v39 }
 0x4cb   : > { %4370 = vmatmul.mubr.bf16.gmra.mrb[36].mxu1 %v7090_v58  ;;  %v7185_v58 = vrot.slane %v2750_v32, %v7353_v38  ;;  %v4497_v38 = vld [vmem:[#allocation2 + $0x60] sm:$0xff] }
 0x4cc   : > { %4379 = vmatprep.mubr.bf16.mxu1 %v7350_v39 }
 0x4d3   : > { %4380 = vmatmul.mubr.bf16.gmra.mrb[40].mxu1 %v7094_v53 }
 0x4d4   : > { %4389 = vmatprep.mubr.bf16.mxu1 %v7350_v39 }
 0x4db   : > { %4390 = vmatmul.mubr.bf16.gmra.mrb[44].mxu1 %v7098_v14 }
 0x4dc   : > { %4399 = vmatprep.mubr.bf16.mxu1 %v7350_v39 }
 0x4e3   : > { %4400 = vmatmul.mubr.bf16.gmra.mrb[48].mxu1 %v7102_v54 }
 0x4e4   : > { %4409 = vmatprep.mubr.bf16.mxu1 %v7350_v39 }
 0x4eb   : > { %4410 = vmatmul.mubr.bf16.gmra.mrb[52].mxu1 %v7106_v57 }
 0x4ec   : > { %4419 = vmatprep.mubr.bf16.mxu1 %v7350_v39 }
 0x4f3   : > { %4420 = vmatmul.mubr.bf16.gmra.mrb[56].mxu1 %v7144_v16 }
 0x4f4   : > { %4429 = vmatprep.mubr.bf16.mxu1 %v7350_v39 }
 0x4fb   : > { %4430 = vmatmul.mubr.bf16.gmra.mrb[60].mxu1 %v3925_v12 }
 0x596   : > { %v4361_v53 = vpop.f32.mrb[32].mxu1 }
 0x597   : > { %v5051_v14 = vadd.f32 %v4361_v53, %v7181_v55  ;;  %v4363_v54 = vpop.f32.mrb[33].mxu1 }
 0x598   : > { %v5052_v39 = vadd.f32 %v4363_v54, %v7185_v58  ;;  %v4365_v57 = vpop.f32.mrb[34].mxu1 }
 0x599   : > { %v5053_v56 = vadd.f32 %v4365_v57, %v7181_v55  ;;  %v4367_v17 = vpop.f32.mrb[35].mxu1  ;;  %v4498_v57 = vld [vmem:[#allocation2 + $0x68] sm:$0xff] }
 0x59a   : > { %v4472_v51 = vmax.f32 %v5051_v14, %v5052_v39  ;;  %v5054_v35 = vadd.f32 %v4367_v17, %v7185_v58 }
 0x59c   : > { %v4505_v61 = vadd.f32 %v4489_v42, %v4472_v51  ;;  %v4473_v11 = vmax.f32 %v5053_v56, %v5054_v35 }
 0x59e   : > { %4521 = vst [vmem:[%s6329_s13] sm:$0xff] %v4505_v61  ;;  %v4506_v13 = vadd.f32 %v4490_v59, %v4473_v11  ;;  %v4371_v1 = vpop.f32.mrb[36].mxu1 }
 0x59f   : > { %v5055_v62 = vadd.f32 %v4371_v1, %v7181_v55  ;;  %v4373_v37 = vpop.f32.mrb[37].mxu1 }
 0x5a0   : > { %4522 = vst [vmem:[%s6329_s13 + $0x8] sm:$0xff] %v4506_v13  ;;  %v5056_v31 = vadd.f32 %v4373_v37, %v7185_v58  ;;  %v4375_v34 = vpop.f32.mrb[38].mxu1  ;;  %v4499_v13 = vld [vmem:[#allocation2 + $0x70] sm:$0xff] }
 0x5a1   : > { %v5057_v10 = vadd.f32 %v4375_v34, %v7181_v55  ;;  %v4377_v50 = vpop.f32.mrb[39].mxu1  ;;  %v4500_v34 = vld [vmem:[#allocation2 + $0x78] sm:$0xff] }
 0x5a2   : > { %v4474_v5 = vmax.f32 %v5055_v62, %v5056_v31  ;;  %v5058_v0 = vadd.f32 %v4377_v50, %v7185_v58 }
 0x5a4   : > { %v4507_v47 = vadd.f32 %v4491_v49, %v4474_v5  ;;  %v4475_v36 = vmax.f32 %v5057_v10, %v5058_v0 }
 0x5a6   : > { %4523 = vst [vmem:[%s6329_s13 + $0x10] sm:$0xff] %v4507_v47  ;;  %v4508_v24 = vadd.f32 %v4492_v2, %v4475_v36  ;;  %v4381_v48 = vpop.f32.mrb[40].mxu1 }
 0x5a7   : > { %v5059_v9 = vadd.f32 %v4381_v48, %v7181_v55  ;;  %v4383_v41 = vpop.f32.mrb[41].mxu1 }
 0x5a8   : > { %4524 = vst [vmem:[%s6329_s13 + $0x18] sm:$0xff] %v4508_v24  ;;  %v5060_v21 = vadd.f32 %v4383_v41, %v7185_v58  ;;  %v4385_v52 = vpop.f32.mrb[42].mxu1  ;;  %v4501_v24 = vld [vmem:[#allocation2 + $0x80] sm:$0xff] }
 0x5a9   : > { %v5061_v43 = vadd.f32 %v4385_v52, %v7181_v55  ;;  %v4387_v16 = vpop.f32.mrb[43].mxu1  ;;  %v4502_v52 = vld [vmem:[#allocation2 + $0x88] sm:$0xff] }
 0x5aa   : > { %v4476_v22 = vmax.f32 %v5059_v9, %v5060_v21  ;;  %v5062_v63 = vadd.f32 %v4387_v16, %v7185_v58 }
 0x5ac   : > { %v4509_v3 = vadd.f32 %v4493_v6, %v4476_v22  ;;  %v4477_v25 = vmax.f32 %v5061_v43, %v5062_v63 }
 0x5ae   : > { %4525 = vst [vmem:[%s6329_s13 + $0x20] sm:$0xff] %v4509_v3  ;;  %v4510_v45 = vadd.f32 %v4494_v19, %v4477_v25  ;;  %v4391_v18 = vpop.f32.mrb[44].mxu1 }
 0x5af   : > { %v5063_v7 = vadd.f32 %v4391_v18, %v7181_v55  ;;  %v4393_v40 = vpop.f32.mrb[45].mxu1 }
 0x5b0   : > { %4526 = vst [vmem:[%s6329_s13 + $0x28] sm:$0xff] %v4510_v45  ;;  %v5064_v15 = vadd.f32 %v4393_v40, %v7185_v58  ;;  %v4395_v30 = vpop.f32.mrb[46].mxu1  ;;  %v4503_v45 = vld [vmem:[#allocation2 + $0x90] sm:$0xff] }
 0x5b1   : > { %v5065_v46 = vadd.f32 %v4395_v30, %v7181_v55  ;;  %v4397_v33 = vpop.f32.mrb[47].mxu1  ;;  %v4504_v30 = vld [vmem:[#allocation2 + $0x98] sm:$0xff] }
 0x5b2   : > { %v4478_v8 = vmax.f32 %v5063_v7, %v5064_v15  ;;  %v5066_v26 = vadd.f32 %v4397_v33, %v7185_v58 }
 0x5b4   : > { %v4511_v27 = vadd.f32 %v4495_v20, %v4478_v8  ;;  %v4479_v28 = vmax.f32 %v5065_v46, %v5066_v26 }
 0x5b6   : > { %4527 = vst [vmem:[%s6329_s13 + $0x30] sm:$0xff] %v4511_v27  ;;  %v4512_v60 = vadd.f32 %v4496_v4, %v4479_v28  ;;  %v4401_v44 = vpop.f32.mrb[48].mxu1 }
 0x5b7   : > { %v5067_v12 = vadd.f32 %v4401_v44, %v7181_v55  ;;  %v4403_v32 = vpop.f32.mrb[49].mxu1 }
 0x5b8   : > { %4528 = vst [vmem:[%s6329_s13 + $0x38] sm:$0xff] %v4512_v60  ;;  %v5068_v23 = vadd.f32 %v4403_v32, %v7185_v58  ;;  %v4405_v29 = vpop.f32.mrb[50].mxu1 }
 0x5b9   : > { %v5069_v53 = vadd.f32 %v4405_v29, %v7181_v55  ;;  %v4407_v14 = vpop.f32.mrb[51].mxu1 }
 0x5ba   : > { %v4480_v54 = vmax.f32 %v5067_v12, %v5068_v23  ;;  %v5070_v39 = vadd.f32 %v4407_v14, %v7185_v58 }
 0x5bc   : > { %v4513_v42 = vadd.f32 %v4497_v38, %v4480_v54  ;;  %v4481_v56 = vmax.f32 %v5069_v53, %v5070_v39 }
 0x5be   : > { %4529 = vst [vmem:[%s6329_s13 + $0x40] sm:$0xff] %v4513_v42  ;;  %v4514_v17 = vadd.f32 %v4498_v57, %v4481_v56  ;;  %v4411_v51 = vpop.f32.mrb[52].mxu1 }
 0x5bf   : > { %v5071_v35 = vadd.f32 %v4411_v51, %v7181_v55  ;;  %v4413_v59 = vpop.f32.mrb[53].mxu1 }
 0x5c0   : > { %4530 = vst [vmem:[%s6329_s13 + $0x48] sm:$0xff] %v4514_v17  ;;  %v5072_v61 = vadd.f32 %v4413_v59, %v7185_v58  ;;  %v4415_v11 = vpop.f32.mrb[54].mxu1 }
 0x5c1   : > { %v5073_v1 = vadd.f32 %v4415_v11, %v7181_v55  ;;  %v4417_v62 = vpop.f32.mrb[55].mxu1 }
 0x5c2   : > { %v4482_v37 = vmax.f32 %v5071_v35, %v5072_v61  ;;  %v5074_v31 = vadd.f32 %v4417_v62, %v7185_v58 }
 0x5c4   : > { %v4515_v49 = vadd.f32 %v4499_v13, %v4482_v37  ;;  %v4483_v10 = vmax.f32 %v5073_v1, %v5074_v31 }
 0x5c6   : > { %4531 = vst [vmem:[%s6329_s13 + $0x50] sm:$0xff] %v4515_v49  ;;  %v4516_v50 = vadd.f32 %v4500_v34, %v4483_v10  ;;  %v4421_v5 = vpop.f32.mrb[56].mxu1 }
 0x5c7   : > { %v5075_v0 = vadd.f32 %v4421_v5, %v7181_v55  ;;  %v4423_v2 = vpop.f32.mrb[57].mxu1 }
 0x5c8   : > { %4532 = vst [vmem:[%s6329_s13 + $0x58] sm:$0xff] %v4516_v50  ;;  %v5076_v47 = vadd.f32 %v4423_v2, %v7185_v58  ;;  %v4425_v36 = vpop.f32.mrb[58].mxu1 }
 0x5c9   : > { %v5077_v48 = vadd.f32 %v4425_v36, %v7181_v55  ;;  %v4427_v9 = vpop.f32.mrb[59].mxu1 }
 0x5ca   : > { %v4484_v41 = vmax.f32 %v5075_v0, %v5076_v47  ;;  %v5078_v21 = vadd.f32 %v4427_v9, %v7185_v58 }
 0x5cc   : > { %v4517_v6 = vadd.f32 %v4501_v24, %v4484_v41  ;;  %v4485_v43 = vmax.f32 %v5077_v48, %v5078_v21 }
 0x5ce   : > { %4533 = vst [vmem:[%s6329_s13 + $0x60] sm:$0xff] %v4517_v6  ;;  %v4518_v16 = vadd.f32 %v4502_v52, %v4485_v43  ;;  %v4431_v22 = vpop.f32.mrb[60].mxu1 }
 0x5cf   : > { %v5079_v63 = vadd.f32 %v4431_v22, %v7181_v55  ;;  %v4433_v19 = vpop.f32.mrb[61].mxu1 }
 0x5d0   : > { %4534 = vst [vmem:[%s6329_s13 + $0x68] sm:$0xff] %v4518_v16  ;;  %v5080_v3 = vadd.f32 %v4433_v19, %v7185_v58  ;;  %v4435_v25 = vpop.f32.mrb[62].mxu1 }
 0x5d1   : > { %v5081_v18 = vadd.f32 %v4435_v25, %v7181_v55  ;;  %v4437_v7 = vpop.f32.mrb[63].mxu1 }
 0x5d2   : > { %v4486_v40 = vmax.f32 %v5079_v63, %v5080_v3  ;;  %v5082_v15 = vadd.f32 %v4437_v7, %v7185_v58 }
 0x5d4   : > { %v4519_v20 = vadd.f32 %v4503_v45, %v4486_v40  ;;  %v4487_v46 = vmax.f32 %v5081_v18, %v5082_v15 }
 0x5d6   : > { %4535 = vst [vmem:[%s6329_s13 + $0x70] sm:$0xff] %v4519_v20  ;;  %v4520_v55 = vadd.f32 %v4504_v30, %v4487_v46 }
 0x5d8   : > { %4536 = vst [vmem:[%s6329_s13 + $0x78] sm:$0xff] %v4520_v55 }
 0x5d9   : > { %6042 = shalt.err (!%p6039_p6)
}
 0x5da   : > { %s6043_s23 = scalar_lea.hbm %s7239_s10, 2048  ;;  %s6047_s16 = scalar_lea.hbm %s7304_s5, 8192 }
 0x5db   : > { %p6044_p7 = scmp.ne.s32.totalorder %s7239_s10, %s6043_s23  ;;  %p6048_p13 = scmp.lt.u32.totalorder %s7239_s10, %s7304_s5 }
 0x5dc   : > { %p6049_p3 = scmp.lt.u32.totalorder %s6047_s16, %s6043_s23  ;;  %p6051_p0 = scmp.lt.u32.totalorder %s6043_s23, %s7239_s10 }
 0x5dd   : > { %p6045_p9 = pnand %p6044_p7, %p7354_p2 }
 0x5de   : > { %p6050_p8 = por %p6049_p3, %p6048_p13 }
 0x5df   : > { %p6046_p11 = pneg %p6045_p9 }
 0x5e0   : > { %p6052_p10 = por %p6051_p0, %p6050_p8 }
 0x5e2   : > { %p6053_p12 = pnand %p6052_p10, %p6046_p11 }
 0x5e4   : > { %6056 = shalt.err (!%p6053_p12)
}
 0x5e5   : > { %s6144_s27 = smov 128   ;;  %s6145_s6 = smov 8  }
 0x5e6   : > { %5419 = dma.vmem_to_hbm [thread:$0]  (%p7354_p2), %s7241_s22, 2048, %s7239_s10, %s7247_s14, %s6144_s27, %s6144_s27, %s6145_s6  }
 0x5e7 PF: > { %p5436_p1 = scmp.ge.s32.totalorder %s6133_s25, 2  ;;  %s4569_s9 = sand.u32 1, %s6105_s18  }
 0x5e8   : > { %p7355_p4 = scmp.ne.s32.totalorder %s7326_s8, 0  ;;  %s4570_s21 = scalar_lea.sflag [#allocation7], %s4569_s9 }
 0x5ea   : > { %p5429_p5 = pnand %p5436_p1, %p7355_p4 }
 0x5ec   : > { %6100 = dma.done.wait (!%p5429_p5), %s4570_s21, 2048  }
 0x5ed   : > { %6102 = vsyncadd (!%p5429_p5), %s4570_s21, 4294965248  ;;  %s20_s25 = sadd.s32 1, %s6133_s25   ;;  %s7356_s30 = sld [smem:[#allocation23_spill]] }
 0x5ee   : > { %p17_p6 = scmp.ge.s32.totalorder %s20_s25, 6   ;;  %s7357_s21 = sld [smem:[#allocation19_spill]] }
 0x5ef   : > { %s7358_s22 = sld [smem:[#allocation20_spill]]  ;;  %s7359_s23 = sld [smem:[#allocation21_spill]] }
 0x5f0   : > { %s7360_s24 = sld [smem:[#allocation22_spill]]  ;;  %s7361_s18 = smov %s6109_s19 }
 0x5f1   : > { %s7362_s19 = smov %s6113_s20  ;;  %19 = sbr.rel (!%p17_p6) target bundleno = 7 (0x7), region = 94 }
 0x5f3   : > { %s7363_s20 = smov %s7356_s30 }
 0x5f8   :  { %4575 = vsyncpa [#allocation6], 1 }
 0x5f9   :  { %4577 = vsyncpa [#allocation6 + $0x1], 1 }
 0x5fa   :  { %4578 = vsyncpa [#allocation9], 1 }
 0x5fb   :  { %4579 = vsyncpa [#allocation7], 1 }
 0x5fc   :  { %4581 = vsyncpa [#allocation7 + $0x1], 1 }
 0x5fd   :  { %4582 = vsyncmov [#allocation4] }
 0x600   :  { %s4583_s7 = vpop.sfrf %4582 }
 0x601   :  { %p4960_p2 = scmp.ne.s32.totalorder %s4583_s7, 0 }
 0x603   :  { %4587 = shalt.err (%p4960_p2)  }

</bundles_post_ra>
